<compile_context>
chip_gen: v7x
topology: tpu7x:2x2x1
jax: 0.10.0
libtpu: 0.0.40
codegen_flags: <defaults>
</compile_context>

<pallas_src>
import jax
import jax.numpy as jnp
from jax import lax
from jax.experimental import pallas as pl
from jax.experimental.pallas import tpu as pltpu


_INV_SQRT2 = 0.7071067811865476


def _erf_poly(x):
    """erf(x) via Abramowitz & Stegun 7.1.26 (max abs error ~1.5e-7).

    Built only from abs/mul/add/div/exp/where so it lowers cleanly inside a
    Pallas TPU kernel (exp goes to the EUP slot).
    """
    p = 0.3275911
    a1, a2, a3, a4, a5 = (0.254829592, -0.284496736, 1.421413741,
                          -1.453152027, 1.061405429)
    sign = jnp.where(x >= 0.0, 1.0, -1.0).astype(x.dtype)
    ax = jnp.abs(x)
    t = 1.0 / (1.0 + p * ax)
    poly = ((((a5 * t + a4) * t + a3) * t + a2) * t + a1) * t
    return sign * (1.0 - poly * jnp.exp(-ax * ax))


def _gelu_exact(x):
    """Exact (erf-based) GELU — matches PyTorch F.gelu default."""
    return 0.5 * x * (1.0 + _erf_poly(x * _INV_SQRT2))


def _ffn_kernel(x_ref, w_in_ref, b_in_ref, dw_w_ref, dw_b_ref,
                w_out_ref, b_out_ref, o_ref, ypad_ref):
    """Fused GDFN feed-forward for one image.

    x_ref    : (1, H, W, C)       input image (NHWC, channel on lanes)
    w_in_ref : (C, 2*hf)          project_in  (1x1 conv as matmul)
    b_in_ref : (1, 2*hf)
    dw_w_ref : (3, 3, 2*hf)       depthwise 3x3 weights (per-channel)
    dw_b_ref : (1, 1, 2*hf)
    w_out_ref: (hf, C)            project_out (1x1 conv as matmul)
    b_out_ref: (1, C)
    o_ref    : (1, H, W, C)
    ypad_ref : VMEM scratch (H+2, W+2, 2*hf) — zero-padded dwconv input (halo)
    """
    H = o_ref.shape[1]
    W = o_ref.shape[2]
    C = x_ref.shape[3]
    C2 = dw_w_ref.shape[2]
    hf = C2 // 2

    # ---- project_in: 1x1 conv == (H*W, C) @ (C, 2*hf) on the MXU -----------
    x2d = x_ref[0].reshape(H * W, C)
    y = jnp.dot(x2d, w_in_ref[...], preferred_element_type=jnp.float32)
    y = y + b_in_ref[...]                                     # (H*W, 2*hf)

    # ---- depthwise 3x3: halo handled in-kernel via a zero-padded scratch ---
    ypad_ref[...] = jnp.zeros_like(ypad_ref)
    ypad_ref[1:H + 1, 1:W + 1, :] = y.reshape(H, W, C2)

    acc = jnp.zeros((H, W, C2), jnp.float32)
    for dy in range(3):                 # unrolled 9 taps; each is a shifted
        for dx in range(3):             # window * per-channel weight (VPU FMA)
            tap_w = dw_w_ref[dy, dx, :].reshape(1, 1, C2)
            acc = acc + ypad_ref[dy:dy + H, dx:dx + W, :] * tap_w
    acc = acc + dw_b_ref[...]                                 # (H, W, 2*hf)

    # ---- gating: gelu(x1) * x2 (channel chunk along the lane axis) ---------
    x1 = acc[:, :, :hf]
    x2 = acc[:, :, hf:]
    g = _gelu_exact(x1) * x2                                  # (H, W, hf)

    # ---- project_out: 1x1 conv == (H*W, hf) @ (hf, C) on the MXU -----------
    z = jnp.dot(g.reshape(H * W, hf), w_out_ref[...],
                preferred_element_type=jnp.float32)
    z = z + b_out_ref[...]
    o_ref[0] = z.reshape(H, W, C).astype(o_ref.dtype)


def feed_forward(x_nchw, w_in_oihw, b_in, dw_w_oihw, dw_b, w_out_oihw, b_out):
    """XRestormer FeedForward forward pass (PyTorch NCHW interface).

    x_nchw     : (B, dim, H, W)
    w_in_oihw  : (2*hf, dim, 1, 1),  b_in  : (2*hf,)
    dw_w_oihw  : (2*hf, 1, 3, 3),    dw_b  : (2*hf,)
    w_out_oihw : (dim, hf, 1, 1),    b_out : (dim,)
    returns    : (B, dim, H, W)
    """
    B, C, H, W = x_nchw.shape
    C2 = w_in_oihw.shape[0]
    hf = C2 // 2

    # Single NCHW->NHWC transpose at the module boundary (channel -> lanes).
    # Weight reshapes are tiny and free relative to activation traffic.
    x_nhwc = jnp.transpose(x_nchw, (0, 2, 3, 1))
    w_in = jnp.transpose(w_in_oihw[:, :, 0, 0], (1, 0))        # (C, C2)
    dw_w = jnp.transpose(dw_w_oihw[:, 0, :, :], (1, 2, 0))     # (3, 3, C2)
    w_out = jnp.transpose(w_out_oihw[:, :, 0, 0], (1, 0))      # (hf, C)
    b_in2 = b_in.reshape(1, C2).astype(jnp.float32)
    dw_b2 = dw_b.reshape(1, 1, C2).astype(jnp.float32)
    b_out2 = b_out.reshape(1, C).astype(jnp.float32)

    flops = 2 * B * H * W * (C * C2 + 9 * C2 + hf * C)
    bytes_accessed = 4 * (2 * B * H * W * C
                          + C * C2 + 9 * C2 + hf * C + 2 * C2 + C + C2)

    out_nhwc = pl.pallas_call(
        _ffn_kernel,
        out_shape=jax.ShapeDtypeStruct((B, H, W, C), x_nchw.dtype),
        grid_spec=pltpu.PrefetchScalarGridSpec(
            num_scalar_prefetch=0,
            grid=(B,),
            in_specs=[
                pl.BlockSpec((1, H, W, C), lambda b: (b, 0, 0, 0)),
                pl.BlockSpec((C, C2), lambda b: (0, 0)),
                pl.BlockSpec((1, C2), lambda b: (0, 0)),
                pl.BlockSpec((3, 3, C2), lambda b: (0, 0, 0)),
                pl.BlockSpec((1, 1, C2), lambda b: (0, 0, 0)),
                pl.BlockSpec((hf, C), lambda b: (0, 0)),
                pl.BlockSpec((1, C), lambda b: (0, 0)),
            ],
            out_specs=pl.BlockSpec((1, H, W, C), lambda b: (b, 0, 0, 0)),
            scratch_shapes=[pltpu.VMEM((H + 2, W + 2, C2), jnp.float32)],
        ),
        compiler_params=pltpu.CompilerParams(
            dimension_semantics=("parallel",),
            vmem_limit_bytes=32 * 1024 * 1024),
        cost_estimate=pl.CostEstimate(
            flops=flops,
            transcendentals=B * H * W * hf,
            bytes_accessed=bytes_accessed),
    )(x_nhwc, w_in, b_in2, dw_w, dw_b2, w_out, b_out2)

    # Back to NCHW at the module boundary (PyTorch layout).
    return jnp.transpose(out_nhwc, (0, 3, 1, 2))


def _reference_feed_forward(x, w_in, b_in, dw_w, dw_b, w_out, b_out):
    """Pure-JAX reference (lax convs + exact gelu) for correctness check."""
    dn = ("NCHW", "OIHW", "NCHW")
    C2 = w_in.shape[0]
    hf = C2 // 2
    y = lax.conv_general_dilated(x, w_in, (1, 1), ((0, 0), (0, 0)),
                                 dimension_numbers=dn)
    y = y + b_in.reshape(1, -1, 1, 1)
    d = lax.conv_general_dilated(y, dw_w, (1, 1), ((1, 1), (1, 1)),
                                 dimension_numbers=dn, feature_group_count=C2)
    d = d + dw_b.reshape(1, -1, 1, 1)
    g = jax.nn.gelu(d[:, :hf], approximate=False) * d[:, hf:]
    z = lax.conv_general_dilated(g, w_out, (1, 1), ((0, 0), (0, 0)),
                                 dimension_numbers=dn)
    return z + b_out.reshape(1, -1, 1, 1)


if __name__ == "__main__":
    key = jax.random.PRNGKey(0)
    ks = jax.random.split(key, 7)

    B, dim, H, W = 2, 4, 16, 16
    ffn_expansion_factor = 2.0
    hf = int(dim * ffn_expansion_factor)        # hidden_features = 8
    C2 = 2 * hf                                 # 16

    x = jax.random.normal(ks[0], (B, dim, H, W), dtype=jnp.float32)
    w_in = jax.random.normal(ks[1], (C2, dim, 1, 1), dtype=jnp.float32) * 0.2
    b_in = jax.random.normal(ks[2], (C2,), dtype=jnp.float32) * 0.1
    dw_w = jax.random.normal(ks[3], (C2, 1, 3, 3), dtype=jnp.float32) * 0.2
    dw_b = jax.random.normal(ks[4], (C2,), dtype=jnp.float32) * 0.1
    w_out = jax.random.normal(ks[5], (dim, hf, 1, 1), dtype=jnp.float32) * 0.2
    b_out = jax.random.normal(ks[6], (dim,), dtype=jnp.float32) * 0.1

    out = feed_forward(x, w_in, b_in, dw_w, dw_b, w_out, b_out)
    out = jax.block_until_ready(out)

    ref = _reference_feed_forward(x, w_in, b_in, dw_w, dw_b, w_out, b_out)
    assert out.shape == (B, dim, H, W), out.shape
    # Tolerance covers MXU default-precision differences between the Pallas
    # matmuls and XLA's conv path; any logic error (padding, chunk split,
    # missing bias, wrong gelu) would be orders of magnitude larger.
    assert jnp.allclose(out, ref, atol=2e-3, rtol=2e-3), \
        float(jnp.max(jnp.abs(out - ref)))

    print("KERNEL_OK")
</pallas_src>

<mosaic_0001>
module attributes {stable_mosaic.version = 11 : i64} {
  func.func @_ffn_kernel(%arg0: i32, %arg1: memref<1x16x16x4xf32, #tpu.memory_space<vmem>>, %arg2: memref<4x16xf32, #tpu.memory_space<vmem>>, %arg3: memref<1x16xf32, #tpu.memory_space<vmem>>, %arg4: memref<3x3x16xf32, #tpu.memory_space<vmem>>, %arg5: memref<1x1x16xf32, #tpu.memory_space<vmem>>, %arg6: memref<8x4xf32, #tpu.memory_space<vmem>>, %arg7: memref<1x4xf32, #tpu.memory_space<vmem>>, %arg8: memref<1x16x16x4xf32, #tpu.memory_space<vmem>>, %arg9: memref<18x18x16xf32, #tpu.memory_space<vmem>>) attributes {dimension_semantics = [#tpu.dimension_semantics<parallel>], iteration_bounds = array<i64: 2>, scalar_prefetch = 0 : i64, scratch_operands = 1 : i64, tpu.core_type = #tpu.core_type<tc>, window_params = [{transform_indices = @transform_0, window_bounds = array<i64: 1, 16, 16, 4>}, {pipeline_mode = #tpu.pipeline_mode<synchronous>, transform_indices = @transform_1, window_bounds = array<i64: 4, 16>}, {pipeline_mode = #tpu.pipeline_mode<synchronous>, transform_indices = @transform_2, window_bounds = array<i64: 1, 16>}, {pipeline_mode = #tpu.pipeline_mode<synchronous>, transform_indices = @transform_3, window_bounds = array<i64: 3, 3, 16>}, {pipeline_mode = #tpu.pipeline_mode<synchronous>, transform_indices = @transform_4, window_bounds = array<i64: 1, 1, 16>}, {pipeline_mode = #tpu.pipeline_mode<synchronous>, transform_indices = @transform_5, window_bounds = array<i64: 8, 4>}, {pipeline_mode = #tpu.pipeline_mode<synchronous>, transform_indices = @transform_6, window_bounds = array<i64: 1, 4>}, {transform_indices = @transform_7, window_bounds = array<i64: 1, 16, 16, 4>}]} {
    %c0 = arith.constant 0 : index
    %c0_0 = arith.constant 0 : index
    %c0_1 = arith.constant 0 : index
    %c0_2 = arith.constant 0 : index
    %0 = vector.load %arg1[%c0, %c0_0, %c0_1, %c0_2] : memref<1x16x16x4xf32, #tpu.memory_space<vmem>>, vector<1x16x16x4xf32>
    %1 = vector.shape_cast %0 : vector<1x16x16x4xf32> to vector<16x16x4xf32>
    %2 = vector.shape_cast %1 : vector<16x16x4xf32> to vector<256x4xf32>
    %c0_3 = arith.constant 0 : index
    %c0_4 = arith.constant 0 : index
    %3 = vector.load %arg2[%c0_3, %c0_4] : memref<4x16xf32, #tpu.memory_space<vmem>>, vector<4x16xf32>
    %cst = arith.constant dense<0.000000e+00> : vector<256x16xf32>
    %4 = tpu.matmul %2, %3, %cst {dimension_numbers = #tpu.dot_dimension_numbers<[1], [0], [0], [1], [0, 0, 1, 1], [], []>} : vector<256x4xf32>, vector<4x16xf32>, vector<256x16xf32> -> vector<256x16xf32>
    %c0_5 = arith.constant 0 : index
    %c0_6 = arith.constant 0 : index
    %5 = vector.load %arg3[%c0_5, %c0_6] : memref<1x16xf32, #tpu.memory_space<vmem>>, vector<1x16xf32>
    %6 = vector.broadcast %5 : vector<1x16xf32> to vector<256x16xf32>
    %7 = arith.addf %4, %6 : vector<256x16xf32>
    %cst_7 = arith.constant 0.000000e+00 : f32
    %8 = vector.broadcast %cst_7 : f32 to vector<18x18x16xf32>
    %c0_8 = arith.constant 0 : index
    %c0_9 = arith.constant 0 : index
    %c0_10 = arith.constant 0 : index
    %9 = vector.load %arg9[%c0_8, %c0_9, %c0_10] : memref<18x18x16xf32, #tpu.memory_space<vmem>>, vector<18x18x16xf32>
    tpu.vector_store %arg9[%c0_8, %c0_9, %c0_10], %8 {strides = array<i32>} : memref<18x18x16xf32, #tpu.memory_space<vmem>>, vector<18x18x16xf32>,
    %10 = vector.shape_cast %7 : vector<256x16xf32> to vector<16x16x16xf32>
    %c1 = arith.constant 1 : index
    %c1_11 = arith.constant 1 : index
    %c0_12 = arith.constant 0 : index
    %11 = vector.load %arg9[%c1, %c1_11, %c0_12] : memref<18x18x16xf32, #tpu.memory_space<vmem>>, vector<16x16x16xf32>
    tpu.vector_store %arg9[%c1, %c1_11, %c0_12], %10 {strides = array<i32>} : memref<18x18x16xf32, #tpu.memory_space<vmem>>, vector<16x16x16xf32>,
    %cst_13 = arith.constant 0.000000e+00 : f32
    %12 = vector.broadcast %cst_13 : f32 to vector<16x16x16xf32>
    %c0_14 = arith.constant 0 : index
    %c0_15 = arith.constant 0 : index
    %c0_16 = arith.constant 0 : index
    %13 = vector.load %arg4[%c0_14, %c0_15, %c0_16] : memref<3x3x16xf32, #tpu.memory_space<vmem>>, vector<1x1x16xf32>
    %14 = vector.shape_cast %13 : vector<1x1x16xf32> to vector<16xf32>
    %15 = vector.shape_cast %14 : vector<16xf32> to vector<1x1x16xf32>
    %c0_17 = arith.constant 0 : index
    %c0_18 = arith.constant 0 : index
    %c0_19 = arith.constant 0 : index
    %16 = vector.load %arg9[%c0_17, %c0_18, %c0_19] : memref<18x18x16xf32, #tpu.memory_space<vmem>>, vector<16x16x16xf32>
    %17 = vector.broadcast %15 : vector<1x1x16xf32> to vector<16x16x16xf32>
    %18 = arith.mulf %16, %17 : vector<16x16x16xf32>
    %19 = arith.addf %12, %18 : vector<16x16x16xf32>
    %c0_20 = arith.constant 0 : index
    %c1_21 = arith.constant 1 : index
    %c0_22 = arith.constant 0 : index
    %20 = vector.load %arg4[%c0_20, %c1_21, %c0_22] : memref<3x3x16xf32, #tpu.memory_space<vmem>>, vector<1x1x16xf32>
    %21 = vector.shape_cast %20 : vector<1x1x16xf32> to vector<16xf32>
    %22 = vector.shape_cast %21 : vector<16xf32> to vector<1x1x16xf32>
    %c0_23 = arith.constant 0 : index
    %c1_24 = arith.constant 1 : index
    %c0_25 = arith.constant 0 : index
    %23 = vector.load %arg9[%c0_23, %c1_24, %c0_25] : memref<18x18x16xf32, #tpu.memory_space<vmem>>, vector<16x16x16xf32>
    %24 = vector.broadcast %22 : vector<1x1x16xf32> to vector<16x16x16xf32>
    %25 = arith.mulf %23, %24 : vector<16x16x16xf32>
    %26 = arith.addf %19, %25 : vector<16x16x16xf32>
    %c0_26 = arith.constant 0 : index
    %c2 = arith.constant 2 : index
    %c0_27 = arith.constant 0 : index
    %27 = vector.load %arg4[%c0_26, %c2, %c0_27] : memref<3x3x16xf32, #tpu.memory_space<vmem>>, vector<1x1x16xf32>
    %28 = vector.shape_cast %27 : vector<1x1x16xf32> to vector<16xf32>
    %29 = vector.shape_cast %28 : vector<16xf32> to vector<1x1x16xf32>
    %c0_28 = arith.constant 0 : index
    %c2_29 = arith.constant 2 : index
    %c0_30 = arith.constant 0 : index
    %30 = vector.load %arg9[%c0_28, %c2_29, %c0_30] : memref<18x18x16xf32, #tpu.memory_space<vmem>>, vector<16x16x16xf32>
    %31 = vector.broadcast %29 : vector<1x1x16xf32> to vector<16x16x16xf32>
    %32 = arith.mulf %30, %31 : vector<16x16x16xf32>
    %33 = arith.addf %26, %32 : vector<16x16x16xf32>
    %c1_31 = arith.constant 1 : index
    %c0_32 = arith.constant 0 : index
    %c0_33 = arith.constant 0 : index
    %34 = vector.load %arg4[%c1_31, %c0_32, %c0_33] : memref<3x3x16xf32, #tpu.memory_space<vmem>>, vector<1x1x16xf32>
    %35 = vector.shape_cast %34 : vector<1x1x16xf32> to vector<16xf32>
    %36 = vector.shape_cast %35 : vector<16xf32> to vector<1x1x16xf32>
    %c1_34 = arith.constant 1 : index
    %c0_35 = arith.constant 0 : index
    %c0_36 = arith.constant 0 : index
    %37 = vector.load %arg9[%c1_34, %c0_35, %c0_36] : memref<18x18x16xf32, #tpu.memory_space<vmem>>, vector<16x16x16xf32>
    %38 = vector.broadcast %36 : vector<1x1x16xf32> to vector<16x16x16xf32>
    %39 = arith.mulf %37, %38 : vector<16x16x16xf32>
    %40 = arith.addf %33, %39 : vector<16x16x16xf32>
    %c1_37 = arith.constant 1 : index
    %c1_38 = arith.constant 1 : index
    %c0_39 = arith.constant 0 : index
    %41 = vector.load %arg4[%c1_37, %c1_38, %c0_39] : memref<3x3x16xf32, #tpu.memory_space<vmem>>, vector<1x1x16xf32>
    %42 = vector.shape_cast %41 : vector<1x1x16xf32> to vector<16xf32>
    %43 = vector.shape_cast %42 : vector<16xf32> to vector<1x1x16xf32>
    %c1_40 = arith.constant 1 : index
    %c1_41 = arith.constant 1 : index
    %c0_42 = arith.constant 0 : index
    %44 = vector.load %arg9[%c1_40, %c1_41, %c0_42] : memref<18x18x16xf32, #tpu.memory_space<vmem>>, vector<16x16x16xf32>
    %45 = vector.broadcast %43 : vector<1x1x16xf32> to vector<16x16x16xf32>
    %46 = arith.mulf %44, %45 : vector<16x16x16xf32>
    %47 = arith.addf %40, %46 : vector<16x16x16xf32>
    %c1_43 = arith.constant 1 : index
    %c2_44 = arith.constant 2 : index
    %c0_45 = arith.constant 0 : index
    %48 = vector.load %arg4[%c1_43, %c2_44, %c0_45] : memref<3x3x16xf32, #tpu.memory_space<vmem>>, vector<1x1x16xf32>
    %49 = vector.shape_cast %48 : vector<1x1x16xf32> to vector<16xf32>
    %50 = vector.shape_cast %49 : vector<16xf32> to vector<1x1x16xf32>
    %c1_46 = arith.constant 1 : index
    %c2_47 = arith.constant 2 : index
    %c0_48 = arith.constant 0 : index
    %51 = vector.load %arg9[%c1_46, %c2_47, %c0_48] : memref<18x18x16xf32, #tpu.memory_space<vmem>>, vector<16x16x16xf32>
    %52 = vector.broadcast %50 : vector<1x1x16xf32> to vector<16x16x16xf32>
    %53 = arith.mulf %51, %52 : vector<16x16x16xf32>
    %54 = arith.addf %47, %53 : vector<16x16x16xf32>
    %c2_49 = arith.constant 2 : index
    %c0_50 = arith.constant 0 : index
    %c0_51 = arith.constant 0 : index
    %55 = vector.load %arg4[%c2_49, %c0_50, %c0_51] : memref<3x3x16xf32, #tpu.memory_space<vmem>>, vector<1x1x16xf32>
    %56 = vector.shape_cast %55 : vector<1x1x16xf32> to vector<16xf32>
    %57 = vector.shape_cast %56 : vector<16xf32> to vector<1x1x16xf32>
    %c2_52 = arith.constant 2 : index
    %c0_53 = arith.constant 0 : index
    %c0_54 = arith.constant 0 : index
    %58 = vector.load %arg9[%c2_52, %c0_53, %c0_54] : memref<18x18x16xf32, #tpu.memory_space<vmem>>, vector<16x16x16xf32>
    %59 = vector.broadcast %57 : vector<1x1x16xf32> to vector<16x16x16xf32>
    %60 = arith.mulf %58, %59 : vector<16x16x16xf32>
    %61 = arith.addf %54, %60 : vector<16x16x16xf32>
    %c2_55 = arith.constant 2 : index
    %c1_56 = arith.constant 1 : index
    %c0_57 = arith.constant 0 : index
    %62 = vector.load %arg4[%c2_55, %c1_56, %c0_57] : memref<3x3x16xf32, #tpu.memory_space<vmem>>, vector<1x1x16xf32>
    %63 = vector.shape_cast %62 : vector<1x1x16xf32> to vector<16xf32>
    %64 = vector.shape_cast %63 : vector<16xf32> to vector<1x1x16xf32>
    %c2_58 = arith.constant 2 : index
    %c1_59 = arith.constant 1 : index
    %c0_60 = arith.constant 0 : index
    %65 = vector.load %arg9[%c2_58, %c1_59, %c0_60] : memref<18x18x16xf32, #tpu.memory_space<vmem>>, vector<16x16x16xf32>
    %66 = vector.broadcast %64 : vector<1x1x16xf32> to vector<16x16x16xf32>
    %67 = arith.mulf %65, %66 : vector<16x16x16xf32>
    %68 = arith.addf %61, %67 : vector<16x16x16xf32>
    %c2_61 = arith.constant 2 : index
    %c2_62 = arith.constant 2 : index
    %c0_63 = arith.constant 0 : index
    %69 = vector.load %arg4[%c2_61, %c2_62, %c0_63] : memref<3x3x16xf32, #tpu.memory_space<vmem>>, vector<1x1x16xf32>
    %70 = vector.shape_cast %69 : vector<1x1x16xf32> to vector<16xf32>
    %71 = vector.shape_cast %70 : vector<16xf32> to vector<1x1x16xf32>
    %c2_64 = arith.constant 2 : index
    %c2_65 = arith.constant 2 : index
    %c0_66 = arith.constant 0 : index
    %72 = vector.load %arg9[%c2_64, %c2_65, %c0_66] : memref<18x18x16xf32, #tpu.memory_space<vmem>>, vector<16x16x16xf32>
    %73 = vector.broadcast %71 : vector<1x1x16xf32> to vector<16x16x16xf32>
    %74 = arith.mulf %72, %73 : vector<16x16x16xf32>
    %75 = arith.addf %68, %74 : vector<16x16x16xf32>
    %c0_67 = arith.constant 0 : index
    %c0_68 = arith.constant 0 : index
    %c0_69 = arith.constant 0 : index
    %76 = vector.load %arg5[%c0_67, %c0_68, %c0_69] : memref<1x1x16xf32, #tpu.memory_space<vmem>>, vector<1x1x16xf32>
    %77 = vector.broadcast %76 : vector<1x1x16xf32> to vector<16x16x16xf32>
    %78 = arith.addf %75, %77 : vector<16x16x16xf32>
    %79 = vector.extract_strided_slice %78 {offsets = [0, 0, 0], sizes = [16, 16, 8], strides = [1, 1, 1]} : vector<16x16x16xf32> to vector<16x16x8xf32>
    %80 = vector.extract_strided_slice %78 {offsets = [0, 0, 8], sizes = [16, 16, 8], strides = [1, 1, 1]} : vector<16x16x16xf32> to vector<16x16x8xf32>
    %cst_70 = arith.constant 5.000000e-01 : f32
    %81 = vector.broadcast %cst_70 : f32 to vector<16x16x8xf32>
    %82 = arith.mulf %81, %79 : vector<16x16x8xf32>
    %cst_71 = arith.constant 0.707106769 : f32
    %83 = vector.broadcast %cst_71 : f32 to vector<16x16x8xf32>
    %84 = arith.mulf %79, %83 : vector<16x16x8xf32>
    %cst_72 = arith.constant 0.000000e+00 : f32
    %85 = vector.broadcast %cst_72 : f32 to vector<16x16x8xf32>
    %86 = arith.cmpf oge, %84, %85 : vector<16x16x8xf32>
    %cst_73 = arith.constant 1.000000e+00 : f32
    %cst_74 = arith.constant -1.000000e+00 : f32
    %87 = vector.broadcast %cst_73 : f32 to vector<16x16x8xf32>
    %88 = vector.broadcast %cst_74 : f32 to vector<16x16x8xf32>
    %89 = arith.select %86, %87, %88 : vector<16x16x8xi1>, vector<16x16x8xf32>
    %90 = math.absf %84 : vector<16x16x8xf32>
    %cst_75 = arith.constant 0.327591091 : f32
    %91 = vector.broadcast %cst_75 : f32 to vector<16x16x8xf32>
    %92 = arith.mulf %91, %90 : vector<16x16x8xf32>
    %cst_76 = arith.constant 1.000000e+00 : f32
    %93 = vector.broadcast %cst_76 : f32 to vector<16x16x8xf32>
    %94 = arith.addf %93, %92 : vector<16x16x8xf32>
    %cst_77 = arith.constant 1.000000e+00 : f32
    %95 = vector.broadcast %cst_77 : f32 to vector<16x16x8xf32>
    %96 = arith.divf %95, %94 : vector<16x16x8xf32>
    %cst_78 = arith.constant 1.06140542 : f32
    %97 = vector.broadcast %cst_78 : f32 to vector<16x16x8xf32>
    %98 = arith.mulf %97, %96 : vector<16x16x8xf32>
    %cst_79 = arith.constant -1.45315206 : f32
    %99 = vector.broadcast %cst_79 : f32 to vector<16x16x8xf32>
    %100 = arith.addf %98, %99 : vector<16x16x8xf32>
    %101 = arith.mulf %100, %96 : vector<16x16x8xf32>
    %cst_80 = arith.constant 1.42141378 : f32
    %102 = vector.broadcast %cst_80 : f32 to vector<16x16x8xf32>
    %103 = arith.addf %101, %102 : vector<16x16x8xf32>
    %104 = arith.mulf %103, %96 : vector<16x16x8xf32>
    %cst_81 = arith.constant -0.284496725 : f32
    %105 = vector.broadcast %cst_81 : f32 to vector<16x16x8xf32>
    %106 = arith.addf %104, %105 : vector<16x16x8xf32>
    %107 = arith.mulf %106, %96 : vector<16x16x8xf32>
    %cst_82 = arith.constant 0.254829586 : f32
    %108 = vector.broadcast %cst_82 : f32 to vector<16x16x8xf32>
    %109 = arith.addf %107, %108 : vector<16x16x8xf32>
    %110 = arith.mulf %109, %96 : vector<16x16x8xf32>
    %cst_83 = arith.constant 0.000000e+00 : f32
    %111 = vector.broadcast %cst_83 : f32 to vector<16x16x8xf32>
    %112 = arith.subf %111, %90 : vector<16x16x8xf32>
    %113 = arith.mulf %112, %90 : vector<16x16x8xf32>
    %114 = math.exp %113 : vector<16x16x8xf32>
    %115 = arith.mulf %110, %114 : vector<16x16x8xf32>
    %cst_84 = arith.constant 1.000000e+00 : f32
    %116 = vector.broadcast %cst_84 : f32 to vector<16x16x8xf32>
    %117 = arith.subf %116, %115 : vector<16x16x8xf32>
    %118 = arith.mulf %89, %117 : vector<16x16x8xf32>
    %cst_85 = arith.constant 1.000000e+00 : f32
    %119 = vector.broadcast %cst_85 : f32 to vector<16x16x8xf32>
    %120 = arith.addf %119, %118 : vector<16x16x8xf32>
    %121 = arith.mulf %82, %120 : vector<16x16x8xf32>
    %122 = arith.mulf %121, %80 : vector<16x16x8xf32>
    %123 = vector.shape_cast %122 : vector<16x16x8xf32> to vector<256x8xf32>
    %c0_86 = arith.constant 0 : index
    %c0_87 = arith.constant 0 : index
    %124 = vector.load %arg6[%c0_86, %c0_87] : memref<8x4xf32, #tpu.memory_space<vmem>>, vector<8x4xf32>
    %cst_88 = arith.constant dense<0.000000e+00> : vector<256x4xf32>
    %125 = tpu.matmul %123, %124, %cst_88 {dimension_numbers = #tpu.dot_dimension_numbers<[1], [0], [0], [1], [0, 0, 1, 1], [], []>} : vector<256x8xf32>, vector<8x4xf32>, vector<256x4xf32> -> vector<256x4xf32>
    %c0_89 = arith.constant 0 : index
    %c0_90 = arith.constant 0 : index
    %126 = vector.load %arg7[%c0_89, %c0_90] : memref<1x4xf32, #tpu.memory_space<vmem>>, vector<1x4xf32>
    %127 = vector.broadcast %126 : vector<1x4xf32> to vector<256x4xf32>
    %128 = arith.addf %125, %127 : vector<256x4xf32>
    %129 = vector.shape_cast %128 : vector<256x4xf32> to vector<16x16x4xf32>
    %c0_91 = arith.constant 0 : index
    %c0_92 = arith.constant 0 : index
    %c0_93 = arith.constant 0 : index
    %c0_94 = arith.constant 0 : index
    %130 = vector.load %arg8[%c0_91, %c0_92, %c0_93, %c0_94] : memref<1x16x16x4xf32, #tpu.memory_space<vmem>>, vector<1x16x16x4xf32>
    %131 = vector.shape_cast %130 : vector<1x16x16x4xf32> to vector<16x16x4xf32>
    %132 = vector.shape_cast %129 : vector<16x16x4xf32> to vector<1x16x16x4xf32>
    tpu.vector_store %arg8[%c0_91, %c0_92, %c0_93, %c0_94], %132 {strides = array<i32>} : memref<1x16x16x4xf32, #tpu.memory_space<vmem>>, vector<1x16x16x4xf32>,
    return
  }
  func.func @transform_0(%arg0: i32) -> (i32, i32, i32, i32) {
    %c0_i32 = arith.constant 0 : i32
    %c0_i32_0 = arith.constant 0 : i32
    %c0_i32_1 = arith.constant 0 : i32
    %c0_i32_2 = arith.constant 0 : i32
    return %arg0, %c0_i32, %c0_i32_0, %c0_i32_1 : i32, i32, i32, i32
  }
  func.func @transform_1(%arg0: i32) -> (i32, i32) {
    %c0_i32 = arith.constant 0 : i32
    %c0_i32_0 = arith.constant 0 : i32
    %c0_i32_1 = arith.constant 0 : i32
    return %c0_i32, %c0_i32_0 : i32, i32
  }
  func.func @transform_2(%arg0: i32) -> (i32, i32) {
    %c0_i32 = arith.constant 0 : i32
    %c0_i32_0 = arith.constant 0 : i32
    %c0_i32_1 = arith.constant 0 : i32
    return %c0_i32, %c0_i32_0 : i32, i32
  }
  func.func @transform_3(%arg0: i32) -> (i32, i32, i32) {
    %c0_i32 = arith.constant 0 : i32
    %c0_i32_0 = arith.constant 0 : i32
    %c0_i32_1 = arith.constant 0 : i32
    %c0_i32_2 = arith.constant 0 : i32
    return %c0_i32, %c0_i32_0, %c0_i32_1 : i32, i32, i32
  }
  func.func @transform_4(%arg0: i32) -> (i32, i32, i32) {
    %c0_i32 = arith.constant 0 : i32
    %c0_i32_0 = arith.constant 0 : i32
    %c0_i32_1 = arith.constant 0 : i32
    %c0_i32_2 = arith.constant 0 : i32
    return %c0_i32, %c0_i32_0, %c0_i32_1 : i32, i32, i32
  }
  func.func @transform_5(%arg0: i32) -> (i32, i32) {
    %c0_i32 = arith.constant 0 : i32
    %c0_i32_0 = arith.constant 0 : i32
    %c0_i32_1 = arith.constant 0 : i32
    return %c0_i32, %c0_i32_0 : i32, i32
  }
  func.func @transform_6(%arg0: i32) -> (i32, i32) {
    %c0_i32 = arith.constant 0 : i32
    %c0_i32_0 = arith.constant 0 : i32
    %c0_i32_1 = arith.constant 0 : i32
    return %c0_i32, %c0_i32_0 : i32, i32
  }
  func.func @transform_7(%arg0: i32) -> (i32, i32, i32, i32) {
    %c0_i32 = arith.constant 0 : i32
    %c0_i32_0 = arith.constant 0 : i32
    %c0_i32_1 = arith.constant 0 : i32
    %c0_i32_2 = arith.constant 0 : i32
    return %arg0, %c0_i32, %c0_i32_0, %c0_i32_1 : i32, i32, i32, i32
  }
}

</mosaic_0001>

<bundles_post_ra>
// kernel: tpu_custom_call.1
= control target key start
LH: loop header
LB: loop body
LE: loop exit
PB: predicated region body
PF: predicated region fallthrough
CT: control target
= control target key end

     0   :  { %s3599_s24 = smov 0   ;;  %s5548_s0 = inlined_call_operand.vmem [shape: f32[2,16,16,4], index: 0, kind: input, shape index: {}]   ;;  %s5549_s1 = inlined_call_operand.vmem [shape: f32[4,16], index: 1, kind: input, shape index: {}]   ;;  %s5550_s2 = inlined_call_operand.vmem [shape: f32[1,16], index: 2, kind: input, shape index: {}]   ;;  %s5551_s3 = inlined_call_operand.vmem [shape: f32[3,3,16], index: 3, kind: input, shape index: {}]   ;;  %s5552_s4 = inlined_call_operand.vmem [shape: f32[1,1,16], index: 4, kind: input, shape index: {}]   ;;  %s5553_s5 = inlined_call_operand.vmem [shape: f32[8,4], index: 5, kind: input, shape index: {}]   ;;  %s5554_s6 = inlined_call_operand.vmem [shape: f32[1,4], index: 6, kind: input, shape index: {}]   ;;  %s5555_s7 = inlined_call_operand.vmem [shape: f32[2,16,16,4], index: 7, kind: output, shape index: {}]  }
   0x1 LB: > { %s3126_s25 = sadd.s32 4294967295, %s3554_s24   ;;  %p3130_p0 = scmp.ge.s32.totalorder %s3554_s24, 1  ;;  %s3554_s24 = sphi %s3599_s24, %s17_s24  }
   0x2   : > { %p237_p1 = scmp.lt.s32.totalorder %s3554_s24, 3 }
   0x4   : > { %p238_p2 = pnand %p3130_p0, %p237_p1 }
   0x6   : > { %241 = sbr.rel (%p238_p2) target bundleno = 835 (0x343), region = 48 }
   0xd   : > { %v311_v0 = vld [vmem:[%s5549_s1] sm:$0xf]  ;;  %vm416_vm0 = vcmask 1043456   ;;  %p269_p3 = scmp.lt.s32.totalorder %s3126_s25, 1  ;;  %vm319_vm1 = vcmask 31744   ;;  %vm645_vm2 = vcmask 130048  }
   0xe   : > { %3288 = vmatprep.subr.msk.mxu0 %vm416_vm0, %v311_v0  ;;  %vm648_vm3 = vcmask 123904   ;;  %v3556_v33 = vmov 0.0   ;;  %v3741_v34 = vld [vmem:[%s5550_s2] ss:$0 sm:$0xff]  ;;  %v3751_v37 = vld [vmem:[%s5551_s3 + $0x1] ss:$0 sm:$0xff] }
   0xf   : > { %3289 = vmatpush3.msk.msra.mxu0 %vm416_vm0, %v311_v0  ;;  %s5794_s25 = smov (!%p269_p3, %s3126_s25), 1  ;;  %651 = vst.msk [vmem:[#allocation2 + $0x20] sm:$0xff] %vm645_vm2, %v3556_v33  ;;  %646 = vst.msk [vmem:[#allocation2] sm:$0xff] %vm645_vm2, %v3556_v33  ;;  %v3746_v35 = vld [vmem:[%s5551_s3] ss:$0 sm:$0xff]  ;;  %s3557_s11 = smov 120  }
  0x10   : > { %s3220_s28 = sshll.u32 %s5794_s25, 8  ;;  %652 = vst.msk [vmem:[#allocation2 + $0x28] sm:$0x3] %vm648_vm3, %v3556_v33  ;;  %649 = vst.msk [vmem:[#allocation2 + $0x10] sm:$0x3] %vm648_vm3, %v3556_v33  ;;  %vm2717_vm7 = vcmask 64512  }
  0x11   : > { %s3618_s8 = scalar_lea.vmem %s5548_s0, %s3220_s28  ;;  %647 = vst.msk [vmem:[#allocation2 + $0x8] sm:$0xff] %vm645_vm2, %v3556_v33  ;;  %650 = vst.msk [vmem:[#allocation2 + $0x18] sm:$0xff] %vm645_vm2, %v3556_v33  ;;  %v3761_v47 = vld [vmem:[%s5551_s3 + $0x2] ss:$0 sm:$0xff]  ;;  %v3775_v61 = vld [vmem:[%s5551_s3 + $0x5] ss:$0 sm:$0xff]  ;;  %s5447_s21 = scalar_lea.vmem %s5555_s7, %s3220_s28 }
  0x12   : > { %v279_v1 = vld [vmem:[%s3618_s8] sm:$0xff]  ;;  %v280_v2 = vld [vmem:[%s3618_s8 + $0x8] sm:$0xff]  ;;  %v281_v3 = vld [vmem:[%s3618_s8 + $0x10] sm:$0xff]  ;;  %653 = vst.msk [vmem:[#allocation2 + $0x30] sm:$0xff] %vm645_vm2, %v3556_v33 }
  0x13   : > { %3290 = vmatprep.mubr.msk.f32.mxu0 %vm319_vm1, %v279_v1  ;;  %v282_v4 = vld [vmem:[%s3618_s8 + $0x18] sm:$0xff]  ;;  %v283_v5 = vld [vmem:[%s3618_s8 + $0x20] sm:$0xff]  ;;  %v284_v6 = vld [vmem:[%s3618_s8 + $0x28] sm:$0xff]  ;;  %654 = vst.msk [vmem:[#allocation2 + $0x38] sm:$0xff] %vm645_vm2, %v3556_v33 }
  0x14   : > { %3291 = vmatmul.mubr.msk.f32.vlgmr.msra.gmra.mrb[0].mxu0 %vm319_vm1, %v280_v2  ;;  %v285_v7 = vld [vmem:[%s3618_s8 + $0x30] sm:$0xff]  ;;  %v286_v8 = vld [vmem:[%s3618_s8 + $0x38] sm:$0xff]  ;;  %v287_v9 = vld [vmem:[%s3618_s8 + $0x40] sm:$0xff]  ;;  %655 = vst.msk [vmem:[#allocation2 + $0x40] sm:$0x3] %vm648_vm3, %v3556_v33 }
  0x15   : > { %3293 = vmatprep.mubr.msk.f32.mxu0 %vm319_vm1, %v281_v3  ;;  %v288_v10 = vld [vmem:[%s3618_s8 + $0x48] sm:$0xff]  ;;  %v289_v11 = vld [vmem:[%s3618_s8 + $0x50] sm:$0xff]  ;;  %v290_v12 = vld [vmem:[%s3618_s8 + $0x58] sm:$0xff]  ;;  %656 = vst.msk [vmem:[#allocation2 + $0x48] sm:$0xff] %vm645_vm2, %v3556_v33 }
  0x16   : > { %v291_v13 = vld [vmem:[%s3618_s8 + $0x60] sm:$0xff]  ;;  %v292_v14 = vld [vmem:[%s3618_s8 + $0x68] sm:$0xff]  ;;  %v293_v15 = vld [vmem:[%s3618_s8 + $0x70] sm:$0xff]  ;;  %657 = vst.msk [vmem:[#allocation2 + $0x50] sm:$0xff] %vm645_vm2, %v3556_v33 }
  0x17   : > { %v294_v16 = vld [vmem:[%s3618_s8 + $0x78] sm:$0xff]  ;;  %v295_v17 = vld [vmem:[%s3618_s8 + $0x80] sm:$0xff]  ;;  %v296_v18 = vld [vmem:[%s3618_s8 + $0x88] sm:$0xff]  ;;  %658 = vst.msk [vmem:[#allocation2 + $0x58] sm:$0x3] %vm648_vm3, %v3556_v33 }
  0x18   : > { %3294 = vmatmul.mubr.msk.f32.gmra.mrb[2].mxu0 %vm319_vm1, %v282_v4  ;;  %v297_v19 = vld [vmem:[%s3618_s8 + $0x90] sm:$0xff]  ;;  %v298_v20 = vld [vmem:[%s3618_s8 + $0x98] sm:$0xff]  ;;  %v299_v21 = vld [vmem:[%s3618_s8 + $0xa0] sm:$0xff]  ;;  %659 = vst.msk [vmem:[#allocation2 + $0x60] sm:$0xff] %vm645_vm2, %v3556_v33 }
  0x19   : > { %3296 = vmatprep.mubr.msk.f32.mxu0 %vm319_vm1, %v283_v5  ;;  %v300_v22 = vld [vmem:[%s3618_s8 + $0xa8] sm:$0xff]  ;;  %v301_v23 = vld [vmem:[%s3618_s8 + $0xb0] sm:$0xff]  ;;  %v302_v24 = vld [vmem:[%s3618_s8 + $0xb8] sm:$0xff]  ;;  %660 = vst.msk [vmem:[#allocation2 + $0x68] sm:$0xff] %vm645_vm2, %v3556_v33 }
  0x1a   : > { %v303_v25 = vld [vmem:[%s3618_s8 + $0xc0] sm:$0xff]  ;;  %v304_v26 = vld [vmem:[%s3618_s8 + $0xc8] sm:$0xff]  ;;  %v305_v27 = vld [vmem:[%s3618_s8 + $0xd0] sm:$0xff]  ;;  %661 = vst.msk [vmem:[#allocation2 + $0x70] sm:$0x3] %vm648_vm3, %v3556_v33 }
  0x1b   : > { %v306_v28 = vld [vmem:[%s3618_s8 + $0xd8] sm:$0xff]  ;;  %v307_v29 = vld [vmem:[%s3618_s8 + $0xe0] sm:$0xff]  ;;  %v308_v30 = vld [vmem:[%s3618_s8 + $0xe8] sm:$0xff]  ;;  %662 = vst.msk [vmem:[#allocation2 + $0x78] sm:$0xff] %vm645_vm2, %v3556_v33 }
  0x1c   : > { %3297 = vmatmul.mubr.msk.f32.gmra.mrb[4].mxu0 %vm319_vm1, %v284_v6  ;;  %v309_v31 = vld [vmem:[%s3618_s8 + $0xf0] sm:$0xff]  ;;  %v310_v32 = vld [vmem:[%s3618_s8 + $0xf8] sm:$0xff]  ;;  %663 = vst.msk [vmem:[#allocation2 + $0x80] sm:$0xff] %vm645_vm2, %v3556_v33  ;;  %665 = vst.msk [vmem:[#allocation2 + $0x90] sm:$0xff] %vm645_vm2, %v3556_v33 }
  0x1d   : > { %3299 = vmatprep.mubr.msk.f32.mxu0 %vm319_vm1, %v285_v7  ;;  %664 = vst.msk [vmem:[#allocation2 + $0x88] sm:$0x3] %vm648_vm3, %v3556_v33  ;;  %667 = vst.msk [vmem:[#allocation2 + $0xa0] sm:$0x3] %vm648_vm3, %v3556_v33  ;;  %v735_v36 = vld [vmem:[#allocation2] sm:$0xff]  ;;  %v736_v40 = vld [vmem:[#allocation2 + $0x8] sm:$0xff] }
  0x1e   : > { %666 = vst.msk [vmem:[#allocation2 + $0x98] sm:$0xff] %vm645_vm2, %v3556_v33  ;;  %668 = vst.msk [vmem:[#allocation2 + $0xa8] sm:$0xff] %vm645_vm2, %v3556_v33  ;;  %v836_v38 = vld [vmem:[#allocation2 + $0x1] sm:$0xff]  ;;  %v837_v41 = vld [vmem:[#allocation2 + $0x9] sm:$0xff]  ;;  %v771_v45 = vmul.f32 %v3746_v35, %v735_v36  ;;  %v772_v49 = vmul.f32 %v3746_v35, %v736_v40 }
  0x1f   : > { %669 = vst.msk [vmem:[#allocation2 + $0xb0] sm:$0xff] %vm645_vm2, %v3556_v33  ;;  %671 = vst.msk [vmem:[#allocation2 + $0xc0] sm:$0xff] %vm645_vm2, %v3556_v33  ;;  %v872_v46 = vmul.f32 %v3751_v37, %v836_v38  ;;  %v937_v48 = vld [vmem:[#allocation2 + $0x2] sm:$0xff]  ;;  %v873_v50 = vmul.f32 %v3751_v37, %v837_v41  ;;  %v938_v52 = vld [vmem:[#allocation2 + $0xa] sm:$0xff] }
  0x20   : > { %3300 = vmatmul.mubr.msk.f32.gmra.mrb[6].mxu0 %vm319_vm1, %v286_v8  ;;  %670 = vst.msk [vmem:[#allocation2 + $0xb8] sm:$0x3] %vm648_vm3, %v3556_v33  ;;  %673 = vst.msk [vmem:[#allocation2 + $0xd0] sm:$0x3] %vm648_vm3, %v3556_v33  ;;  %v973_v57 = vmul.f32 %v3761_v47, %v937_v48  ;;  %v974_v59 = vmul.f32 %v3761_v47, %v938_v52  ;;  %v3780_v62 = vld [vmem:[%s5551_s3 + $0x6] ss:$0 sm:$0xff] }
  0x21   : > { %3302 = vmatprep.mubr.msk.f32.mxu0 %vm319_vm1, %v287_v9  ;;  %672 = vst.msk [vmem:[#allocation2 + $0xc8] sm:$0xff] %vm645_vm2, %v3556_v33  ;;  %674 = vst.msk [vmem:[#allocation2 + $0xd8] sm:$0xff] %vm645_vm2, %v3556_v33  ;;  %v904_v56 = vadd.f32 %v872_v46, %v771_v45  ;;  %v905_v58 = vadd.f32 %v873_v50, %v772_v49  ;;  %v3786_v1 = vld [vmem:[%s5551_s3 + $0x4] ss:$0 sm:$0xff] }
  0x22   : > { %675 = vst.msk [vmem:[#allocation2 + $0xe0] sm:$0xff] %vm645_vm2, %v3556_v33  ;;  %677 = vst.msk [vmem:[#allocation2 + $0xf0] sm:$0xff] %vm645_vm2, %v3556_v33 }
  0x23   : > { %676 = vst.msk [vmem:[#allocation2 + $0xe8] sm:$0x3] %vm648_vm3, %v3556_v33  ;;  %679 = vst.msk [vmem:[#allocation2 + $0x100] sm:$0x3] %vm648_vm3, %v3556_v33  ;;  %v1005_v3 = vadd.f32 %v973_v57, %v904_v56  ;;  %v1006_v9 = vadd.f32 %v974_v59, %v905_v58 }
  0x24   : > { %3303 = vmatmul.mubr.msk.f32.gmra.mrb[8].mxu0 %vm319_vm1, %v288_v10  ;;  %678 = vst.msk [vmem:[#allocation2 + $0xf8] sm:$0xff] %vm645_vm2, %v3556_v33  ;;  %680 = vst.msk [vmem:[#allocation2 + $0x108] sm:$0xff] %vm645_vm2, %v3556_v33 }
  0x25   : > { %3305 = vmatprep.mubr.msk.f32.mxu0 %vm319_vm1, %v289_v11  ;;  %681 = vst.msk [vmem:[#allocation2 + $0x110] sm:$0xff] %vm645_vm2, %v3556_v33  ;;  %683 = vst.msk [vmem:[#allocation2 + $0x120] sm:$0xff] %vm645_vm2, %v3556_v33 }
  0x26   : > { %682 = vst.msk [vmem:[#allocation2 + $0x118] sm:$0x3] %vm648_vm3, %v3556_v33  ;;  %685 = vst.msk [vmem:[#allocation2 + $0x130] sm:$0x3] %vm648_vm3, %v3556_v33 }
  0x27   : > { %684 = vst.msk [vmem:[#allocation2 + $0x128] sm:$0xff] %vm645_vm2, %v3556_v33  ;;  %686 = vst.msk [vmem:[#allocation2 + $0x138] sm:$0xff] %vm645_vm2, %v3556_v33 }
  0x28   : > { %3306 = vmatmul.mubr.msk.f32.gmra.mrb[10].mxu0 %vm319_vm1, %v290_v12  ;;  %687 = vst.msk [vmem:[#allocation2 + $0x140] sm:$0xff] %vm645_vm2, %v3556_v33  ;;  %689 = vst.msk [vmem:[#allocation2 + $0x150] sm:$0xff] %vm645_vm2, %v3556_v33 }
  0x29   : > { %3308 = vmatprep.mubr.msk.f32.mxu0 %vm319_vm1, %v291_v13  ;;  %688 = vst.msk [vmem:[#allocation2 + $0x148] sm:$0x3] %vm648_vm3, %v3556_v33  ;;  %691 = vst.msk [vmem:[#allocation2 + $0x160] sm:$0x3] %vm648_vm3, %v3556_v33 }
  0x2a   : > { %690 = vst.msk [vmem:[#allocation2 + $0x158] sm:$0xff] %vm645_vm2, %v3556_v33  ;;  %692 = vst.msk [vmem:[#allocation2 + $0x168] sm:$0xff] %vm645_vm2, %v3556_v33 }
  0x2b   : > { %693 = vst.msk [vmem:[#allocation2 + $0x170] sm:$0xff] %vm645_vm2, %v3556_v33  ;;  %695 = vst.msk [vmem:[#allocation2 + $0x180] sm:$0xff] %vm645_vm2, %v3556_v33 }
  0x2c   : > { %3309 = vmatmul.mubr.msk.f32.gmra.mrb[12].mxu0 %vm319_vm1, %v292_v14  ;;  %694 = vst.msk [vmem:[#allocation2 + $0x178] sm:$0x3] %vm648_vm3, %v3556_v33  ;;  %697 = vst.msk [vmem:[#allocation2 + $0x190] sm:$0x3] %vm648_vm3, %v3556_v33  ;;  %v3797_v14 = vld [vmem:[%s5551_s3 + $0x9] ss:$0 sm:$0xff] }
  0x2d   : > { %3311 = vmatprep.mubr.msk.f32.mxu0 %vm319_vm1, %v293_v15  ;;  %696 = vst.msk [vmem:[#allocation2 + $0x188] sm:$0xff] %vm645_vm2, %v3556_v33  ;;  %698 = vst.msk [vmem:[#allocation2 + $0x198] sm:$0xff] %vm645_vm2, %v3556_v33 }
  0x2e   : > { %699 = vst.msk [vmem:[#allocation2 + $0x1a0] sm:$0xff] %vm645_vm2, %v3556_v33 }
  0x2f   : > { %700 = vst.msk [vmem:[#allocation2 + $0x1a8] sm:$0x3] %vm648_vm3, %v3556_v33 }
  0x30   : > { %3312 = vmatmul.mubr.msk.f32.gmra.mrb[14].mxu0 %vm319_vm1, %v294_v16 }
  0x31   : > { %3314 = vmatprep.mubr.msk.f32.mxu0 %vm319_vm1, %v295_v17 }
  0x34   : > { %3315 = vmatmul.mubr.msk.f32.gmra.mrb[16].mxu0 %vm319_vm1, %v296_v18 }
  0x35   : > { %3317 = vmatprep.mubr.msk.f32.mxu0 %vm319_vm1, %v297_v19 }
  0x38   : > { %3318 = vmatmul.mubr.msk.f32.gmra.mrb[18].mxu0 %vm319_vm1, %v298_v20 }
  0x39   : > { %3320 = vmatprep.mubr.msk.f32.mxu0 %vm319_vm1, %v299_v21 }
  0x3c   : > { %3321 = vmatmul.mubr.msk.f32.gmra.mrb[20].mxu0 %vm319_vm1, %v300_v22  ;;  %v3811_v22 = vld [vmem:[%s5551_s3 + $0x8] ss:$0 sm:$0xff] }
  0x3d   : > { %3323 = vmatprep.mubr.msk.f32.mxu0 %vm319_vm1, %v301_v23  ;;  %v3816_v23 = vld [vmem:[%s5551_s3 + $0xa] ss:$0 sm:$0xff] }
  0x40   : > { %3324 = vmatmul.mubr.msk.f32.gmra.mrb[22].mxu0 %vm319_vm1, %v302_v24 }
  0x41   : > { %3326 = vmatprep.mubr.msk.f32.mxu0 %vm319_vm1, %v303_v25 }
  0x44   : > { %3327 = vmatmul.mubr.msk.f32.gmra.mrb[24].mxu0 %vm319_vm1, %v304_v26 }
  0x45   : > { %3329 = vmatprep.mubr.msk.f32.mxu0 %vm319_vm1, %v305_v27 }
  0x48   : > { %3330 = vmatmul.mubr.msk.f32.gmra.mrb[26].mxu0 %vm319_vm1, %v306_v28 }
  0x49   : > { %3332 = vmatprep.mubr.msk.f32.mxu0 %vm319_vm1, %v307_v29 }
  0x4c   : > { %3333 = vmatmul.mubr.msk.f32.gmra.mrb[28].mxu0 %vm319_vm1, %v308_v30 }
  0x4d   : > { %3335 = vmatprep.mubr.msk.f32.mxu0 %vm319_vm1, %v309_v31 }
  0x50   : > { %3336 = vmatmul.mubr.msk.f32.gmra.mrb[30].mxu0 %vm319_vm1, %v310_v32 }
  0xe7   : > { %v3292_v39 = vpop.f32.mrb[0].mxu0 }
  0xe8   : > { %v492_v42 = vadd.f32 %v3292_v39, %v3741_v34  ;;  %v486_v43 = vpop.f32.mrb[1].mxu0 }
  0xe9   : > { %v487_v44 = vadd.f32 %v3741_v34, %v486_v43 }
  0xea   : > { %703 = vst.msk [vmem:[#allocation2 + $0x21] sm:$0xff] %vm645_vm2, %v492_v42 }
  0xeb   : > { %702 = vst.msk [vmem:[#allocation2 + $0x19] sm:$0xff] %vm645_vm2, %v487_v44  ;;  %v3295_v51 = vpop.f32.mrb[2].mxu0 }
  0xec   : > { %v502_v53 = vadd.f32 %v3295_v51, %v3741_v34  ;;  %v496_v54 = vpop.f32.mrb[3].mxu0 }
  0xed   : > { %v497_v55 = vadd.f32 %v3741_v34, %v496_v54 }
  0xee   : > { %705 = vst.msk [vmem:[#allocation2 + $0x39] sm:$0xff] %vm645_vm2, %v502_v53 }
  0xef   : > { %704 = vst.msk [vmem:[#allocation2 + $0x31] sm:$0xff] %vm645_vm2, %v497_v55  ;;  %v3298_v60 = vpop.f32.mrb[4].mxu0 }
  0xf0   : > { %v512_v63 = vadd.f32 %v3298_v60, %v3741_v34  ;;  %v506_v0 = vpop.f32.mrb[5].mxu0 }
  0xf1   : > { %v507_v2 = vadd.f32 %v3741_v34, %v506_v0  ;;  %v1141_v4 = vld [vmem:[#allocation2 + $0x21] sm:$0xff] }
  0xf2   : > { %v1242_v5 = vld [vmem:[#allocation2 + $0x22] sm:$0xff]  ;;  %707 = vst.msk [vmem:[#allocation2 + $0x51] sm:$0xff] %vm645_vm2, %v512_v63  ;;  %v1039_v6 = vld [vmem:[#allocation2 + $0x18] sm:$0xff]  ;;  %v1177_v10 = vmul.f32 %v3775_v61, %v1141_v4  ;;  %v3801_v17 = vmul.f32 %v3751_v37, %v1141_v4 }
  0xf3   : > { %v1140_v7 = vld [vmem:[#allocation2 + $0x19] sm:$0xff]  ;;  %v1278_v11 = vmul.f32 %v3780_v62, %v1242_v5  ;;  %706 = vst.msk [vmem:[#allocation2 + $0x49] sm:$0xff] %vm645_vm2, %v507_v2  ;;  %v3301_v12 = vpop.f32.mrb[6].mxu0  ;;  %v1075_v13 = vmul.f32 %v3786_v1, %v1039_v6  ;;  %v773_v16 = vmul.f32 %v3746_v35, %v1039_v6  ;;  %v3804_v18 = vmul.f32 %v3761_v47, %v1242_v5 }
  0xf4   : > { %v1241_v8 = vld [vmem:[#allocation2 + $0x1a] sm:$0xff]  ;;  %v522_v19 = vadd.f32 %v3301_v12, %v3741_v34  ;;  %v516_v20 = vpop.f32.mrb[7].mxu0  ;;  %v1176_v21 = vmul.f32 %v3775_v61, %v1140_v7  ;;  %v874_v25 = vmul.f32 %v3751_v37, %v1140_v7 }
  0xf5   : > { %v1040_v15 = vld [vmem:[#allocation2 + $0x20] sm:$0xff]  ;;  %v517_v26 = vadd.f32 %v3741_v34, %v516_v20  ;;  %v1107_v27 = vadd.f32 %v1075_v13, %v1005_v3  ;;  %v1277_v28 = vmul.f32 %v3780_v62, %v1241_v8  ;;  %v975_v31 = vmul.f32 %v3761_v47, %v1241_v8 }
  0xf6   : > { %v1076_v24 = vmul.f32 %v3786_v1, %v1040_v15  ;;  %v3822_v29 = vld [vmem:[#allocation2 + $0x39] sm:$0xff]  ;;  %709 = vst.msk [vmem:[#allocation2 + $0x69] sm:$0xff] %vm645_vm2, %v522_v19  ;;  %v1344_v32 = vld [vmem:[#allocation2 + $0x30] sm:$0xff]  ;;  %v906_v40 = vadd.f32 %v874_v25, %v773_v16  ;;  %v3831_v41 = vmul.f32 %v3746_v35, %v1040_v15 }
  0xf7   : > { %v3824_v30 = vld [vmem:[#allocation2 + $0x3a] sm:$0xff]  ;;  %v1445_v33 = vld [vmem:[#allocation2 + $0x31] sm:$0xff]  ;;  %v1482_v39 = vmul.f32 %v3797_v14, %v3822_v29  ;;  %708 = vst.msk [vmem:[#allocation2 + $0x61] sm:$0xff] %vm645_vm2, %v517_v26  ;;  %v3304_v42 = vpop.f32.mrb[8].mxu0  ;;  %v1208_v43 = vadd.f32 %v1176_v21, %v1107_v27  ;;  %v1380_v44 = vmul.f32 %v3811_v22, %v1344_v32  ;;  %v1077_v57 = vmul.f32 %v3786_v1, %v1344_v32 }
  0xf8   : > { %v1546_v36 = vld [vmem:[#allocation2 + $0x32] sm:$0xff]  ;;  %v1108_v38 = vadd.f32 %v1076_v24, %v1006_v9  ;;  %v1481_v45 = vmul.f32 %v3797_v14, %v1445_v33  ;;  %v1583_v48 = vmul.f32 %v3816_v23, %v3824_v30  ;;  %v532_v49 = vadd.f32 %v3304_v42, %v3741_v34  ;;  %v526_v50 = vpop.f32.mrb[9].mxu0  ;;  %v3869_v21 = vld [vmem:[%s5552_s4] ss:$0 sm:$0xff] }
  0xf9   : > { %v3836_v46 = vld [vmem:[#allocation2 + $0x38] sm:$0xff]  ;;  %v1582_v51 = vmul.f32 %v3816_v23, %v1546_v36  ;;  %v1007_v53 = vadd.f32 %v975_v31, %v906_v40  ;;  %v527_v54 = vadd.f32 %v3741_v34, %v526_v50  ;;  %v1309_v55 = vadd.f32 %v1277_v28, %v1208_v43 }
  0xfa   : > { %v1209_v52 = vadd.f32 %v1177_v10, %v1108_v38  ;;  %v1381_v56 = vmul.f32 %v3811_v22, %v3836_v46  ;;  %711 = vst.msk [vmem:[#allocation2 + $0x81] sm:$0xff] %vm645_vm2, %v532_v49  ;;  %v1178_v59 = vmul.f32 %v3775_v61, %v1445_v33  ;;  %v3848_v60 = vld [vmem:[#allocation2 + $0x48] sm:$0xff]  ;;  %v775_v0 = vmul.f32 %v3746_v35, %v1344_v32 }
  0xfb   : > { %v3850_v63 = vld [vmem:[#allocation2 + $0x49] sm:$0xff]  ;;  %v876_v2 = vmul.f32 %v3751_v37, %v1445_v33  ;;  %710 = vst.msk [vmem:[#allocation2 + $0x79] sm:$0xff] %vm645_vm2, %v527_v54  ;;  %v3307_v3 = vpop.f32.mrb[10].mxu0  ;;  %v1412_v4 = vadd.f32 %v1380_v44, %v1309_v55  ;;  %v1109_v5 = vadd.f32 %v1077_v57, %v1007_v53  ;;  %v1279_v6 = vmul.f32 %v3780_v62, %v1546_v36 }
  0xfc   : > { %v1310_v58 = vadd.f32 %v1278_v11, %v1209_v52  ;;  %v1382_v7 = vmul.f32 %v3811_v22, %v3848_v60  ;;  %v3858_v8 = vld [vmem:[#allocation2 + $0x4a] sm:$0xff]  ;;  %v542_v9 = vadd.f32 %v3307_v3, %v3741_v34  ;;  %v536_v10 = vpop.f32.mrb[11].mxu0  ;;  %v1483_v12 = vmul.f32 %v3797_v14, %v3850_v63 }
  0xfd   : > { %v908_v13 = vadd.f32 %v876_v2, %v775_v0  ;;  %v537_v15 = vadd.f32 %v3741_v34, %v536_v10  ;;  %v1513_v16 = vadd.f32 %v1481_v45, %v1412_v4  ;;  %v1210_v19 = vadd.f32 %v1178_v59, %v1109_v5  ;;  %v3913_v3 = vld [vmem:[#allocation2 + $0x50] sm:$0xff] }
  0xfe   : > { %v1413_v11 = vadd.f32 %v1381_v56, %v1310_v58  ;;  %v977_v20 = vmul.f32 %v3761_v47, %v1546_v36  ;;  %713 = vst.msk [vmem:[#allocation2 + $0x99] sm:$0xff] %vm645_vm2, %v542_v9  ;;  %v1584_v25 = vmul.f32 %v3816_v23, %v3858_v8  ;;  %v1079_v26 = vmul.f32 %v3786_v1, %v3848_v60  ;;  %v3880_v38 = vld [vmem:[#allocation2 + $0x60] sm:$0xff] }
  0xff   : > { %v1180_v27 = vmul.f32 %v3775_v61, %v3850_v63  ;;  %712 = vst.msk [vmem:[#allocation2 + $0x91] sm:$0xff] %vm645_vm2, %v537_v15  ;;  %v3310_v28 = vpop.f32.mrb[12].mxu0  ;;  %v1614_v31 = vadd.f32 %v1582_v51, %v1513_v16  ;;  %v1311_v32 = vadd.f32 %v1279_v6, %v1210_v19  ;;  %v1281_v36 = vmul.f32 %v3780_v62, %v3858_v8  ;;  %v3884_v40 = vld [vmem:[#allocation2 + $0x62] sm:$0xff] }
 0x100   : > { %v1514_v24 = vadd.f32 %v1482_v39, %v1413_v11  ;;  %v1009_v33 = vadd.f32 %v977_v20, %v908_v13  ;;  %v3882_v39 = vld [vmem:[#allocation2 + $0x61] sm:$0xff]  ;;  %v552_v42 = vadd.f32 %v3310_v28, %v3741_v34  ;;  %v546_v43 = vpop.f32.mrb[13].mxu0  ;;  %v1384_v45 = vmul.f32 %v3811_v22, %v3880_v38 }
 0x101   : > { %v1485_v49 = vmul.f32 %v3797_v14, %v3882_v39  ;;  %v547_v50 = vadd.f32 %v3741_v34, %v546_v43  ;;  %v3893_v51 = vadd.f32 %v3869_v21, %v1614_v31  ;;  %v1414_v52 = vadd.f32 %v1382_v7, %v1311_v32 }
 0x102   : > { %v1615_v44 = vadd.f32 %v1583_v48, %v1514_v24  ;;  %v1111_v53 = vadd.f32 %v1079_v26, %v1009_v33  ;;  %715 = vst.msk [vmem:[#allocation2 + $0xb1] sm:$0xff] %vm645_vm2, %v552_v42  ;;  %v1586_v48 = vmul.f32 %v3816_v23, %v3884_v40  ;;  %v907_v55 = vadd.f32 %v3801_v17, %v3831_v41  ;;  %v3915_v17 = vld [vmem:[#allocation2 + $0x51] sm:$0xff] }
 0x103   : > { %v1078_v56 = vmul.f32 %v3786_v1, %v3836_v46  ;;  %714 = vst.msk [vmem:[#allocation2 + $0xa9] sm:$0xff] %vm645_vm2, %v547_v50  ;;  %v3313_v57 = vpop.f32.mrb[14].mxu0  ;;  %2581 = vrot.lane.b32.xlu0 %v3893_v51, %s3557_s11  ;;  %v3909_v58 = vmul.f32 0.70710677, %v3893_v51  ;;  %v1515_v59 = vadd.f32 %v1483_v12, %v1414_v52  ;;  %v1179_v2 = vmul.f32 %v3775_v61, %v3822_v29 }
 0x104   : > { %v3897_v54 = vadd.f32 %v3869_v21, %v1615_v44  ;;  %v1212_v0 = vadd.f32 %v1180_v27, %v1111_v53  ;;  %v562_v41 = vadd.f32 %v3313_v57, %v3741_v34  ;;  %v556_v4 = vpop.f32.mrb[15].mxu0  ;;  %v1008_v6 = vadd.f32 %v3804_v18, %v907_v55 }
 0x105   : > { %v1280_v7 = vmul.f32 %v3780_v62, %v3824_v30  ;;  %v1813_v9 = vand.u32 2147483647, %v3909_v58  ;;  %v557_v10 = vadd.f32 %v3741_v34, %v556_v4  ;;  %v1616_v11 = vadd.f32 %v1584_v25, %v1515_v59 }
 0x106   : > { %v3919_v5 = vmul.f32 0.70710677, %v3897_v54  ;;  %v1313_v12 = vadd.f32 %v1281_v36, %v1212_v0  ;;  %717 = vst.msk [vmem:[#allocation2 + $0xc9] sm:$0xff] %vm645_vm2, %v562_v41  ;;  %v1110_v15 = vadd.f32 %v1078_v56, %v1008_v6  ;;  %v1383_v16 = vmul.f32 %v3811_v22, %v3913_v3  ;;  %v3939_v36 = vld [vmem:[#allocation2 + $0x52] sm:$0xff] }
 0x107   : > { %v1484_v18 = vmul.f32 %v3797_v14, %v3915_v17  ;;  %v1845_v19 = vmul.f32 0.3275911, %v1813_v9  ;;  %v2261_v20 = vsub.f32 0.0, %v1813_v9  ;;  %716 = vst.msk [vmem:[#allocation2 + $0xc1] sm:$0xff] %vm645_vm2, %v557_v10  ;;  %v3316_v24 = vpop.f32.mrb[16].mxu0  ;;  %2583 = vrot.lane.b32.xlu0 %v3897_v54, %s3557_s11  ;;  %v3936_v25 = vadd.f32 %v3869_v21, %v1616_v11 }
 0x108   : > { %v1814_v13 = vand.u32 2147483647, %v3919_v5  ;;  %v1416_v26 = vadd.f32 %v1384_v45, %v1313_v12  ;;  %v572_v27 = vadd.f32 %v3316_v24, %v3741_v34  ;;  %v566_v32 = vpop.f32.mrb[17].mxu0  ;;  %v1211_v33 = vadd.f32 %v1179_v2, %v1110_v15 }
 0x109   : > { %v1877_v42 = vadd.f32 1.0, %v1845_v19  ;;  %v2293_v43 = vmul.f32 %v2261_v20, %v1813_v9  ;;  %2585 = vrot.lane.b32.xlu1 %v3936_v25, %s3557_s11  ;;  %v3944_v44 = vmul.f32 0.70710677, %v3936_v25  ;;  %v567_v50 = vadd.f32 %v3741_v34, %v566_v32 }
 0x10a   : > { %v1846_v28 = vmul.f32 0.3275911, %v1814_v13  ;;  %v2262_v31 = vsub.f32 0.0, %v1814_v13  ;;  %719 = vst.msk [vmem:[#allocation2 + $0xe1] sm:$0xff] %vm645_vm2, %v572_v27  ;;  %v1517_v53 = vadd.f32 %v1485_v49, %v1416_v26  ;;  %v1312_v55 = vadd.f32 %v1280_v7, %v1211_v33 }
 0x10b   : > { %3399 = vrcp.f32 %v1877_v42  ;;  %v2325_v56 = vmul.f32 1.442695, %v2293_v43  ;;  %v1815_v57 = vand.u32 2147483647, %v3944_v44  ;;  %718 = vst.msk [vmem:[#allocation2 + $0xd9] sm:$0xff] %vm645_vm2, %v567_v50  ;;  %v1585_v0 = vmul.f32 %v3816_v23, %v3939_v36 }
 0x10c   : > { %v1878_v45 = vadd.f32 1.0, %v1846_v28  ;;  %v2294_v52 = vmul.f32 %v2262_v31, %v1814_v13  ;;  %v3319_v59 = vpop.f32.mrb[18].mxu0  ;;  %v1618_v41 = vadd.f32 %v1586_v48, %v1517_v53  ;;  %v777_v6 = vmul.f32 %v3746_v35, %v3848_v60 }
 0x10d   : > { %v582_v2 = vadd.f32 %v3319_v59, %v3741_v34  ;;  %v576_v4 = vpop.f32.mrb[19].mxu0  ;;  %v1847_v7 = vmul.f32 0.3275911, %v1815_v57  ;;  %v2263_v9 = vsub.f32 0.0, %v1815_v57  ;;  %v1415_v10 = vadd.f32 %v1383_v16, %v1312_v55 }
 0x10e   : > { %3401 = vrcp.f32 %v1878_v45  ;;  %v2327_v49 = vmul.f32 1.442695, %v2294_v52  ;;  %v3957_v11 = vadd.f32 %v3869_v21, %v1618_v41  ;;  %v577_v12 = vadd.f32 %v3741_v34, %v576_v4  ;;  %v3980_v52 = vld [vmem:[#allocation2 + $0x78] sm:$0xff] }
 0x10f   : > { %3403 = vpow2.f32 %v2325_v56  ;;  %721 = vst.msk [vmem:[#allocation2 + $0xf9] sm:$0xff] %vm645_vm2, %v582_v2  ;;  %v878_v13 = vmul.f32 %v3751_v37, %v3850_v63  ;;  %v1879_v48 = vadd.f32 1.0, %v1847_v7  ;;  %v2295_v15 = vmul.f32 %v2263_v9, %v1815_v57  ;;  %v3322_v20 = vpop.f32.mrb[20].mxu0  ;;  %v3997_v2 = vld [vmem:[#allocation2 + $0x79] sm:$0xff] }
 0x110   : > { %5633 = vst [vmem:[#allocation3_spill] sm:$0xff] %v3957_v11  ;;  %v1516_v19 = vadd.f32 %v1484_v18, %v1415_v10  ;;  %v979_v60 = vmul.f32 %v3761_v47, %v3858_v8  ;;  %v3965_v16 = vmul.f32 0.70710677, %v3957_v11  ;;  %2589 = vrot.lane.b32.xlu0 %v3957_v11, %s3557_s11  ;;  %720 = vst.msk [vmem:[#allocation2 + $0xf1] sm:$0xff] %vm645_vm2, %v577_v12  ;;  %v586_v27 = vpop.f32.mrb[21].mxu0  ;;  %3405 = vpow2.f32 %v2327_v49  ;;  %v3999_v41 = vld [vmem:[#allocation2 + $0x7a] sm:$0xff] }
 0x111   : > { %v592_v24 = vadd.f32 %v3322_v20, %v3741_v34  ;;  %v910_v26 = vadd.f32 %v878_v13, %v777_v6  ;;  %v1081_v63 = vmul.f32 %v3786_v1, %v3880_v38  ;;  %v2329_v28 = vmul.f32 1.442695, %v2295_v15 }
 0x112   : > { %v1617_v18 = vadd.f32 %v1585_v0, %v1516_v19  ;;  %v1817_v8 = vand.u32 2147483647, %v3965_v16  ;;  %v1182_v32 = vmul.f32 %v3775_v61, %v3882_v39  ;;  %3407 = vrcp.f32 %v1879_v48 }
 0x113   : > { %723 = vst.msk [vmem:[#allocation2 + $0x111] sm:$0xff] %vm645_vm2, %v592_v24  ;;  %v1011_v31 = vadd.f32 %v979_v60, %v910_v26  ;;  %v3325_v42 = vpop.f32.mrb[22].mxu0  ;;  %v776_v53 = vmul.f32 %v3746_v35, %v3836_v46  ;;  %v1283_v59 = vmul.f32 %v3780_v62, %v3884_v40  ;;  %v1386_v0 = vmul.f32 %v3811_v22, %v3980_v52 }
 0x114   : > { %v3978_v33 = vadd.f32 %v3869_v21, %v1617_v18  ;;  %v1849_v43 = vmul.f32 0.3275911, %v1817_v8  ;;  %v2265_v50 = vsub.f32 0.0, %v1817_v8  ;;  %v3984_v55 = vpop.f32.mrb[23].mxu0  ;;  %v877_v46 = vmul.f32 %v3751_v37, %v3822_v29 }
 0x115   : > { %v1113_v45 = vadd.f32 %v1081_v63, %v1011_v31  ;;  %v3986_v56 = vpop.eup %3399  ;;  %3409 = vpow2.f32 %v2329_v28  ;;  %v1487_v7 = vmul.f32 %v3797_v14, %v3997_v2  ;;  %v978_v12 = vmul.f32 %v3761_v47, %v3824_v30  ;;  %v4024_v31 = vld [vmem:[#allocation2 + $0x6a] sm:$0xff] }
 0x116   : > { %5634 = vst [vmem:[#allocation4_spill] sm:$0xff] %v3978_v33  ;;  %v3989_v57 = vmul.f32 0.70710677, %v3978_v33  ;;  %2587 = vrot.lane.b32.xlu1 %v3978_v33, %s3557_s11  ;;  %v2297_v6 = vmul.f32 %v2265_v50, %v1817_v8  ;;  %v909_v10 = vadd.f32 %v877_v46, %v776_v53  ;;  %v1080_v13 = vmul.f32 %v3786_v1, %v3913_v3  ;;  %v4030_v46 = vld [vmem:[#allocation2 + $0x68] sm:$0xff] }
 0x117   : > { %v1214_v49 = vadd.f32 %v1182_v32, %v1113_v45  ;;  %v4012_v48 = vpop.f32.mrb[24].mxu0  ;;  %v1881_v15 = vadd.f32 1.0, %v1849_v43  ;;  %v1588_v20 = vmul.f32 %v3816_v23, %v3999_v41  ;;  %v1181_v60 = vmul.f32 %v3775_v61, %v3915_v17 }
 0x118   : > { %5635 = vst [vmem:[#allocation5_spill] sm:$0xff] %v3989_v57  ;;  %v4003_v4 = vpop.eup %3401  ;;  %v1816_v9 = vand.u32 2147483647, %v3989_v57  ;;  %v4020_v24 = vpop.f32.mrb[25].mxu0  ;;  %v1010_v30 = vadd.f32 %v978_v12, %v909_v10  ;;  %v1282_v18 = vmul.f32 %v3780_v62, %v3939_v36  ;;  %v2333_v28 = vmul.f32 1.442695, %v2297_v6 }
 0x119   : > { %v4014_v29 = vpop.eup %3403  ;;  %v1315_v19 = vadd.f32 %v1283_v59, %v1214_v49  ;;  %v587_v32 = vadd.f32 %v3741_v34, %v586_v27  ;;  %v602_v43 = vadd.f32 %v3325_v42, %v3741_v34  ;;  %v779_v49 = vmul.f32 %v3746_v35, %v3880_v38  ;;  %v4038_v12 = vld [vmem:[#allocation2 + $0x69] sm:$0xff] }
 0x11a   : > { %v1848_v26 = vmul.f32 0.3275911, %v1816_v9  ;;  %v2264_v63 = vsub.f32 0.0, %v1816_v9  ;;  %v4028_v50 = vpop.eup %3405  ;;  %v1112_v59 = vadd.f32 %v1080_v13, %v1010_v30  ;;  %v880_v27 = vmul.f32 %v3751_v37, %v3882_v39 }
 0x11b   : > { %v1418_v8 = vadd.f32 %v1386_v0, %v1315_v19  ;;  %v4034_v10 = vpop.f32.mrb[26].mxu0  ;;  %v1385_v0 = vmul.f32 %v3811_v22, %v4030_v46  ;;  %722 = vst.msk [vmem:[#allocation2 + $0x109] sm:$0xff] %vm645_vm2, %v587_v32  ;;  %725 = vst.msk [vmem:[#allocation2 + $0x129] sm:$0xff] %vm645_vm2, %v602_v43  ;;  %v981_v42 = vmul.f32 %v3761_v47, %v3884_v40  ;;  %3411 = vrcp.f32 %v1881_v15 }
 0x11c   : > { %v1880_v45 = vadd.f32 1.0, %v1848_v26  ;;  %v2296_v53 = vmul.f32 %v2264_v63, %v1816_v9  ;;  %v4046_v9 = vpop.f32.mrb[27].mxu0  ;;  %v4048_v38 = vpop.eup %3407  ;;  %v1486_v13 = vmul.f32 %v3797_v14, %v4038_v12  ;;  %v1587_v19 = vmul.f32 %v3816_v23, %v4024_v31 }
 0x11d   : > { %v1519_v6 = vadd.f32 %v1487_v7, %v1418_v8  ;;  %v1213_v7 = vadd.f32 %v1181_v60, %v1112_v59  ;;  %3413 = vpow2.f32 %v2333_v28  ;;  %v912_v63 = vadd.f32 %v880_v27, %v779_v49  ;;  %v4065_v28 = vld [vmem:[#allocation2 + $0x90] sm:$0xff] }
 0x11e   : > { %v1083_v39 = vmul.f32 %v3786_v1, %v3980_v52  ;;  %3415 = vrcp.f32 %v1880_v45  ;;  %v2331_v40 = vmul.f32 1.442695, %v2296_v53  ;;  %v1184_v8 = vmul.f32 %v3775_v61, %v3997_v2 }
 0x11f   : > { %v1620_v26 = vadd.f32 %v1588_v20, %v1519_v6  ;;  %v1314_v30 = vadd.f32 %v1282_v18, %v1213_v7  ;;  %v4058_v15 = vpop.f32.mrb[28].mxu0  ;;  %v4060_v60 = vpop.eup %3409  ;;  %v1013_v43 = vadd.f32 %v981_v42, %v912_v63  ;;  %v778_v20 = vmul.f32 %v3746_v35, %v3913_v3 }
 0x120   : > { %5636 = vst [vmem:[#allocation6_spill] sm:$0xff] %v4060_v60  ;;  %v879_v45 = vmul.f32 %v3751_v37, %v3915_v17  ;;  %v4071_v18 = vpop.f32.mrb[29].mxu0  ;;  %v1285_v59 = vmul.f32 %v3780_v62, %v3999_v41  ;;  %v1388_v49 = vmul.f32 %v3811_v22, %v4065_v28  ;;  %v980_v6 = vmul.f32 %v3761_v47, %v3939_v36  ;;  %v4084_v17 = vld [vmem:[#allocation2 + $0x91] sm:$0xff] }
 0x121   : > { %v4063_v32 = vadd.f32 %v3869_v21, %v1620_v26  ;;  %v1417_v53 = vadd.f32 %v1385_v0, %v1314_v30  ;;  %v1115_v3 = vadd.f32 %v1083_v39, %v1013_v43  ;;  %v1082_v0 = vmul.f32 %v3786_v1, %v4030_v46 }
 0x122   : > { %v911_v42 = vadd.f32 %v879_v45, %v778_v20  ;;  %v1489_v26 = vmul.f32 %v3797_v14, %v4084_v17  ;;  %v1183_v36 = vmul.f32 %v3775_v61, %v4038_v12  ;;  %v1284_v63 = vmul.f32 %v3780_v62, %v4024_v31 }
 0x123   : > { %5637 = vst [vmem:[#allocation7_spill] sm:$0xff] %v4063_v32  ;;  %v4080_v27 = vmul.f32 0.70710677, %v4063_v32  ;;  %2593 = vrot.lane.b32.xlu0 %v4063_v32, %s3557_s11  ;;  %v1518_v7 = vadd.f32 %v1486_v13, %v1417_v53  ;;  %v4094_v30 = vpop.f32.mrb[30].mxu0  ;;  %v1216_v43 = vadd.f32 %v1184_v8, %v1115_v3  ;;  %v597_v20 = vadd.f32 %v3741_v34, %v3984_v55 }
 0x124   : > { %v1012_v32 = vadd.f32 %v980_v6, %v911_v42  ;;  %v4099_v45 = vpop.f32.mrb[31].mxu0  ;;  %v612_v53 = vadd.f32 %v4012_v48, %v3741_v34  ;;  %v781_v57 = vmul.f32 %v3746_v35, %v3980_v52  ;;  %v882_v33 = vmul.f32 %v3751_v37, %v3997_v2  ;;  %v4115_v48 = vld [vmem:[#allocation2 + $0x80] sm:$0xff] }
 0x125   : > { %5638 = vst [vmem:[#allocation8_spill] sm:$0xff] %v4080_v27  ;;  %v1819_v39 = vand.u32 2147483647, %v4080_v27  ;;  %v1619_v13 = vadd.f32 %v1587_v19, %v1518_v7  ;;  %v1317_v27 = vadd.f32 %v1285_v59, %v1216_v43  ;;  %724 = vst.msk [vmem:[#allocation2 + $0x121] sm:$0xff] %vm645_vm2, %v597_v20  ;;  %v4108_v6 = vpop.eup %3411  ;;  %v4113_v19 = vld [vmem:[#allocation2 + $0x92] sm:$0xff]  ;;  %v983_v2 = vmul.f32 %v3761_v47, %v3999_v41  ;;  %v4126_v43 = vld [vmem:[#allocation2 + $0x82] sm:$0xff] }
 0x126   : > { %v1114_v8 = vadd.f32 %v1082_v0, %v1012_v32  ;;  %727 = vst.msk [vmem:[#allocation2 + $0x141] sm:$0xff] %vm645_vm2, %v612_v53  ;;  %v914_v52 = vadd.f32 %v882_v33, %v781_v57  ;;  %v1085_v32 = vmul.f32 %v3786_v1, %v4065_v28  ;;  %v1387_v7 = vmul.f32 %v3811_v22, %v4115_v48  ;;  %v4135_v57 = vld [vmem:[#allocation2 + $0x81] sm:$0xff] }
 0x127   : > { %v1851_v60 = vmul.f32 0.3275911, %v1819_v39  ;;  %v2267_v11 = vsub.f32 0.0, %v1819_v39  ;;  %v4111_v55 = vadd.f32 %v3869_v21, %v1619_v13  ;;  %v4122_v59 = vpop.eup %3413  ;;  %v1420_v42 = vadd.f32 %v1388_v49, %v1317_v27 }
 0x128   : > { %5640 = vst [vmem:[#allocation10_spill] sm:$0xff] %v4122_v59  ;;  %v1215_v0 = vadd.f32 %v1183_v36, %v1114_v8  ;;  %v4128_v20 = vpop.eup %3415  ;;  %3417 = vpow2.f32 %v2331_v40  ;;  %v1015_v41 = vadd.f32 %v983_v2, %v914_v52  ;;  %v1590_v27 = vmul.f32 %v3816_v23, %v4113_v19 }
 0x129   : > { %5639 = vst [vmem:[#allocation9_spill] sm:$0xff] %v4111_v55  ;;  %v2299_v3 = vmul.f32 %v2267_v11, %v1819_v39  ;;  %v4131_v33 = vmul.f32 0.70710677, %v4111_v55  ;;  %2591 = vrot.lane.b32.xlu1 %v4111_v55, %s3557_s11  ;;  %v1186_v11 = vmul.f32 %v3775_v61, %v4084_v17  ;;  %v1521_v49 = vadd.f32 %v1489_v26, %v1420_v42  ;;  %v4148_v42 = vld [vmem:[#allocation2 + $0xa8] sm:$0xff] }
 0x12a   : > { %v1316_v36 = vadd.f32 %v1284_v63, %v1215_v0  ;;  %v1488_v40 = vmul.f32 %v3797_v14, %v4135_v57  ;;  %v1883_v39 = vadd.f32 1.0, %v1851_v60  ;;  %v1589_v53 = vmul.f32 %v3816_v23, %v4126_v43 }
 0x12b   : > { %5641 = vst [vmem:[#allocation11_spill] sm:$0xff] %v4131_v33  ;;  %v1818_v13 = vand.u32 2147483647, %v4131_v33  ;;  %v1117_v8 = vadd.f32 %v1085_v32, %v1015_v41  ;;  %v2337_v55 = vmul.f32 1.442695, %v2299_v3  ;;  %v1622_v52 = vadd.f32 %v1590_v27, %v1521_v49 }
 0x12c   : > { %v1419_v2 = vadd.f32 %v1387_v7, %v1316_v36  ;;  %v1287_v26 = vmul.f32 %v3780_v62, %v4113_v19  ;;  %v1390_v0 = vmul.f32 %v3811_v22, %v4148_v42  ;;  %v780_v60 = vmul.f32 %v3746_v35, %v4030_v46  ;;  %v4166_v36 = vld [vmem:[#allocation2 + $0xa9] sm:$0xff] }
 0x12d   : > { %v2266_v59 = vsub.f32 0.0, %v1818_v13  ;;  %v1218_v63 = vadd.f32 %v1186_v11, %v1117_v8  ;;  %v4155_v33 = vadd.f32 %v3869_v21, %v1622_v52  ;;  %v881_v3 = vmul.f32 %v3751_v37, %v4038_v12 }
 0x12e   : > { %v1520_v32 = vadd.f32 %v1488_v40, %v1419_v2  ;;  %v982_v7 = vmul.f32 %v3761_v47, %v4024_v31  ;;  %3419 = vrcp.f32 %v1883_v39  ;;  %v1850_v41 = vmul.f32 0.3275911, %v1818_v13  ;;  %v4168_v40 = vld [vmem:[#allocation2 + $0xaa] sm:$0xff] }
 0x12f   : > { %5642 = vst [vmem:[#allocation12_spill] sm:$0xff] %v4155_v33  ;;  %v2298_v49 = vmul.f32 %v2266_v59, %v1818_v13  ;;  %v1319_v11 = vadd.f32 %v1287_v26, %v1218_v63  ;;  %v4162_v27 = vmul.f32 0.70710677, %v4155_v33  ;;  %2597 = vrot.lane.b32.xlu0 %v4155_v33, %s3557_s11  ;;  %v913_v8 = vadd.f32 %v881_v3, %v780_v60 }
 0x130   : > { %v1621_v46 = vadd.f32 %v1589_v53, %v1520_v32  ;;  %v1084_v12 = vmul.f32 %v3786_v1, %v4115_v48  ;;  %3421 = vpow2.f32 %v2337_v55  ;;  %v1491_v59 = vmul.f32 %v3797_v14, %v4166_v36 }
 0x131   : > { %5643 = vst [vmem:[#allocation13_spill] sm:$0xff] %v4162_v27  ;;  %v1422_v31 = vadd.f32 %v1390_v0, %v1319_v11  ;;  %v1821_v39 = vand.u32 2147483647, %v4162_v27  ;;  %v1014_v52 = vadd.f32 %v982_v7, %v913_v8  ;;  %v1185_v53 = vmul.f32 %v3775_v61, %v4135_v57  ;;  %v4198_v27 = vld [vmem:[#allocation2 + $0x98] sm:$0xff] }
 0x132   : > { %v4176_v13 = vadd.f32 %v3869_v21, %v1621_v46  ;;  %v4180_v2 = vpop.eup %3417  ;;  %v1882_v26 = vadd.f32 1.0, %v1850_v41  ;;  %v2335_v63 = vmul.f32 1.442695, %v2298_v49  ;;  %v1592_v55 = vmul.f32 %v3816_v23, %v4168_v40 }
 0x133   : > { %v1523_v60 = vadd.f32 %v1491_v59, %v1422_v31  ;;  %v1853_v0 = vmul.f32 0.3275911, %v1821_v39  ;;  %v2269_v32 = vsub.f32 0.0, %v1821_v39  ;;  %v1116_v7 = vadd.f32 %v1084_v12, %v1014_v52 }
 0x134   : > { %5644 = vst [vmem:[#allocation14_spill] sm:$0xff] %v4176_v13  ;;  %v4185_v3 = vmul.f32 0.70710677, %v4176_v13  ;;  %2595 = vrot.lane.b32.xlu1 %v4176_v13, %s3557_s11  ;;  %v607_v46 = vadd.f32 %v3741_v34, %v4020_v24  ;;  %v622_v41 = vadd.f32 %v4034_v10, %v3741_v34  ;;  %v783_v49 = vmul.f32 %v3746_v35, %v4065_v28 }
 0x135   : > { %v1624_v11 = vadd.f32 %v1592_v55, %v1523_v60  ;;  %v2301_v8 = vmul.f32 %v2269_v32, %v1821_v39  ;;  %v1217_v59 = vadd.f32 %v1185_v53, %v1116_v7  ;;  %v1286_v33 = vmul.f32 %v3780_v62, %v4126_v43 }
 0x136   : > { %5645 = vst [vmem:[#allocation15_spill] sm:$0xff] %v4185_v3  ;;  %v1820_v31 = vand.u32 2147483647, %v4185_v3  ;;  %v1389_v24 = vmul.f32 %v3811_v22, %v4198_v27  ;;  %726 = vst.msk [vmem:[#allocation2 + $0x139] sm:$0xff] %vm645_vm2, %v607_v46  ;;  %v884_v10 = vmul.f32 %v3751_v37, %v4084_v17  ;;  %v985_v28 = vmul.f32 %v3761_v47, %v4113_v19  ;;  %v4233_v3 = vld [vmem:[#allocation2 + $0xc0] sm:$0xff] }
 0x137   : > { %v4201_v12 = vadd.f32 %v3869_v21, %v1624_v11  ;;  %729 = vst.msk [vmem:[#allocation2 + $0x159] sm:$0xff] %vm645_vm2, %v622_v41  ;;  %3423 = vrcp.f32 %v1882_v26  ;;  %v1885_v39 = vadd.f32 1.0, %v1853_v0  ;;  %v1087_v53 = vmul.f32 %v3786_v1, %v4148_v42  ;;  %v4217_v11 = vld [vmem:[#allocation2 + $0x9a] sm:$0xff] }
 0x138   : > { %v1852_v52 = vmul.f32 0.3275911, %v1820_v31  ;;  %v4213_v60 = vpop.eup %3419  ;;  %v2341_v55 = vmul.f32 1.442695, %v2301_v8  ;;  %v2268_v32 = vsub.f32 0.0, %v1820_v31  ;;  %v1318_v7 = vadd.f32 %v1286_v33, %v1217_v59  ;;  %v4222_v26 = vld [vmem:[#allocation2 + $0x99] sm:$0xff] }
 0x139   : > { %5646 = vst [vmem:[#allocation16_spill] sm:$0xff] %v4201_v12  ;;  %2601 = vrot.lane.b32.xlu0 %v4201_v12, %s3557_s11  ;;  %v916_v17 = vadd.f32 %v884_v10, %v783_v49  ;;  %3425 = vpow2.f32 %v2335_v63  ;;  %v4220_v19 = vmul.f32 0.70710677, %v4201_v12  ;;  %v1490_v41 = vmul.f32 %v3797_v14, %v4222_v26 }
 0x13a   : > { %v4224_v0 = vpop.eup %3421  ;;  %v1421_v46 = vadd.f32 %v1389_v24, %v1318_v7  ;;  %v1188_v13 = vmul.f32 %v3775_v61, %v4166_v36  ;;  %3427 = vrcp.f32 %v1885_v39  ;;  %v1884_v33 = vadd.f32 1.0, %v1852_v52 }
 0x13b   : > { %5647 = vst [vmem:[#allocation17_spill] sm:$0xff] %v4220_v19  ;;  %5648 = vst [vmem:[#allocation18_spill] sm:$0xff] %v4224_v0  ;;  %v1017_v8 = vadd.f32 %v985_v28, %v916_v17  ;;  %v1591_v63 = vmul.f32 %v3816_v23, %v4217_v11  ;;  %3429 = vpow2.f32 %v2341_v55  ;;  %v2300_v49 = vmul.f32 %v2268_v32, %v1820_v31  ;;  %v4245_v55 = vld [vmem:[#allocation2 + $0xc2] sm:$0xff] }
 0x13c   : > { %v1522_v59 = vadd.f32 %v1490_v41, %v1421_v46  ;;  %v1823_v12 = vand.u32 2147483647, %v4220_v19  ;;  %v782_v24 = vmul.f32 %v3746_v35, %v4115_v48  ;;  %v883_v28 = vmul.f32 %v3751_v37, %v4135_v57  ;;  %v4247_v32 = vld [vmem:[#allocation2 + $0xc1] sm:$0xff] }
 0x13d   : > { %v1119_v10 = vadd.f32 %v1087_v53, %v1017_v8  ;;  %v984_v39 = vmul.f32 %v3761_v47, %v4126_v43  ;;  %v1289_v31 = vmul.f32 %v3780_v62, %v4168_v40  ;;  %v1392_v53 = vmul.f32 %v3811_v22, %v4233_v3 }
 0x13e   : > { %v1623_v52 = vadd.f32 %v1591_v63, %v1522_v59  ;;  %3431 = vrcp.f32 %v1884_v33  ;;  %v915_v48 = vadd.f32 %v883_v28, %v782_v24  ;;  %v1086_v57 = vmul.f32 %v3786_v1, %v4198_v27 }
 0x13f   : > { %v1220_v7 = vadd.f32 %v1188_v13, %v1119_v10  ;;  %v2339_v17 = vmul.f32 1.442695, %v2300_v49  ;;  %v1493_v46 = vmul.f32 %v3797_v14, %v4247_v32  ;;  %v1855_v8 = vmul.f32 0.3275911, %v1823_v12 }
 0x140   : > { %v4252_v43 = vadd.f32 %v3869_v21, %v1623_v52  ;;  %v1594_v33 = vmul.f32 %v3816_v23, %v4245_v55  ;;  %v1016_v63 = vadd.f32 %v984_v39, %v915_v48  ;;  %v1187_v59 = vmul.f32 %v3775_v61, %v4222_v26 }
 0x141   : > { %v1321_v13 = vadd.f32 %v1289_v31, %v1220_v7  ;;  %v4256_v41 = vpop.eup %3423  ;;  %v2271_v10 = vsub.f32 0.0, %v1823_v12  ;;  %v617_v28 = vadd.f32 %v3741_v34, %v4046_v9  ;;  %v632_v39 = vadd.f32 %v4058_v15, %v3741_v34 }
 0x142   : > { %5649 = vst [vmem:[#allocation19_spill] sm:$0xff] %v4252_v43  ;;  %v4263_v49 = vmul.f32 0.70710677, %v4252_v43  ;;  %2599 = vrot.lane.b32.xlu1 %v4252_v43, %s3557_s11  ;;  %v1118_v7 = vadd.f32 %v1086_v57, %v1016_v63  ;;  %v785_v31 = vmul.f32 %v3746_v35, %v4148_v42  ;;  %v886_v48 = vmul.f32 %v3751_v37, %v4166_v36  ;;  %v4288_v42 = vld [vmem:[#allocation2 + $0xb2] sm:$0xff] }
 0x143   : > { %v1424_v24 = vadd.f32 %v1392_v53, %v1321_v13  ;;  %v4269_v52 = vpop.eup %3425  ;;  %3433 = vpow2.f32 %v2339_v17  ;;  %v1288_v53 = vmul.f32 %v3780_v62, %v4217_v11  ;;  %v4279_v13 = vld [vmem:[#allocation2 + $0xb0] sm:$0xff]  ;;  %728 = vst.msk [vmem:[#allocation2 + $0x151] sm:$0xff] %vm645_vm2, %v617_v28  ;;  %v987_v9 = vmul.f32 %v3761_v47, %v4168_v40  ;;  %731 = vst.msk [vmem:[#allocation2 + $0x171] sm:$0xff] %vm645_vm2, %v632_v39 }
 0x144   : > { %5650 = vst [vmem:[#allocation20_spill] sm:$0xff] %v4263_v49  ;;  %5651 = vst [vmem:[#allocation21_spill] sm:$0xff] %v4269_v52  ;;  %v4284_v57 = vpop.eup %3427  ;;  %v1219_v34 = vadd.f32 %v1187_v59, %v1118_v7  ;;  %v1391_v15 = vmul.f32 %v3811_v22, %v4279_v13  ;;  %v918_v36 = vadd.f32 %v886_v48, %v785_v31  ;;  %v1887_v63 = vadd.f32 1.0, %v1855_v8  ;;  %v4296_v43 = vld [vmem:[#allocation2 + $0xb1] sm:$0xff] }
 0x145   : > { %v1525_v19 = vadd.f32 %v1493_v46, %v1424_v24  ;;  %v1089_v17 = vmul.f32 %v3786_v1, %v4233_v3  ;;  %v4293_v46 = vpop.eup %3429  ;;  %v2303_v24 = vmul.f32 %v2271_v10, %v1823_v12  ;;  %v1822_v40 = vand.u32 2147483647, %v4263_v49 }
 0x146   : > { %5652 = vst [vmem:[#allocation22_spill] sm:$0xff] %v4293_v46  ;;  %v1320_v59 = vadd.f32 %v1288_v53, %v1219_v34  ;;  %v1492_v7 = vmul.f32 %v3797_v14, %v4296_v43  ;;  %v1019_v52 = vadd.f32 %v987_v9, %v918_v36  ;;  %v1190_v39 = vmul.f32 %v3775_v61, %v4247_v32  ;;  %v4313_v53 = vld [vmem:[#allocation2 + $0xd8] sm:$0xff] }
 0x147   : > { %v1626_v28 = vadd.f32 %v1594_v33, %v1525_v19  ;;  %v1593_v8 = vmul.f32 %v3816_v23, %v4288_v42  ;;  %v1291_v12 = vmul.f32 %v3780_v62, %v4245_v55  ;;  %v784_v19 = vmul.f32 %v3746_v35, %v4198_v27  ;;  %v4315_v9 = vld [vmem:[#allocation2 + $0xda] sm:$0xff] }
 0x148   : > { %v4311_v33 = vpop.eup %3431  ;;  %v1423_v10 = vadd.f32 %v1391_v15, %v1320_v59  ;;  %v1121_v48 = vadd.f32 %v1089_v17, %v1019_v52  ;;  %v885_v34 = vmul.f32 %v3751_v37, %v4222_v26  ;;  %v986_v36 = vmul.f32 %v3761_v47, %v4217_v11  ;;  %v4328_v15 = vld [vmem:[#allocation2 + $0xd9] sm:$0xff] }
 0x149   : > { %v4303_v31 = vadd.f32 %v3869_v21, %v1626_v28  ;;  %v1854_v28 = vmul.f32 0.3275911, %v1822_v40  ;;  %v2270_v49 = vsub.f32 0.0, %v1822_v40  ;;  %v1394_v35 = vmul.f32 %v3811_v22, %v4313_v53 }
 0x14a   : > { %v1524_v27 = vadd.f32 %v1492_v7, %v1423_v10  ;;  %v1222_v52 = vadd.f32 %v1190_v39, %v1121_v48  ;;  %v917_v17 = vadd.f32 %v885_v34, %v784_v19  ;;  %v1088_v37 = vmul.f32 %v3786_v1, %v4279_v13 }
 0x14b   : > { %5653 = vst [vmem:[#allocation23_spill] sm:$0xff] %v4303_v31  ;;  %v4322_v46 = vmul.f32 0.70710677, %v4303_v31  ;;  %2605 = vrot.lane.b32.xlu0 %v4303_v31, %s3557_s11  ;;  %3435 = vrcp.f32 %v1887_v63  ;;  %v2345_v47 = vmul.f32 1.442695, %v2303_v24  ;;  %v1495_v11 = vmul.f32 %v3797_v14, %v4328_v15 }
 0x14c   : > { %v1596_v26 = vmul.f32 %v3816_v23, %v4315_v9  ;;  %v1625_v59 = vadd.f32 %v1593_v8, %v1524_v27  ;;  %v1323_v31 = vadd.f32 %v1291_v12, %v1222_v52  ;;  %v1018_v0 = vadd.f32 %v986_v36, %v917_v17  ;;  %v4344_v63 = vld [vmem:[%s5550_s2] ss:$0 sm:$0xff]  ;;  %v4392_v27 = vld [vmem:[%s5551_s3 + $0x4] ss:$0 sm:$0xff] }
 0x14d   : > { %5654 = vst [vmem:[#allocation24_spill] sm:$0xff] %v4322_v46  ;;  %v1189_v7 = vmul.f32 %v3775_v61, %v4296_v43  ;;  %v4338_v39 = vpop.eup %3433  ;;  %v1886_v19 = vadd.f32 1.0, %v1854_v28  ;;  %v2302_v10 = vmul.f32 %v2270_v49, %v1822_v40  ;;  %v1825_v1 = vand.u32 2147483647, %v4322_v46  ;;  %v4351_v61 = vld [vmem:[#allocation2 + $0xc8] sm:$0xff] }
 0x14e   : > { %5655 = vst [vmem:[#allocation25_spill] sm:$0xff] %v4338_v39  ;;  %v627_v14 = vadd.f32 %v4344_v63, %v4071_v18  ;;  %v4349_v23 = vadd.f32 %v3869_v21, %v1625_v59  ;;  %v1426_v24 = vadd.f32 %v1394_v35, %v1323_v31  ;;  %v1120_v8 = vadd.f32 %v1088_v37, %v1018_v0  ;;  %v4363_v18 = vld [vmem:[%s5551_s3] ss:$0 sm:$0xff]  ;;  %v4387_v28 = vld [vmem:[#allocation2 + $0xca] sm:$0xff] }
 0x14f   : > { %v642_v49 = vadd.f32 %v4344_v63, %v4094_v30  ;;  %v1290_v40 = vmul.f32 %v3780_v62, %v4288_v42  ;;  %v1393_v12 = vmul.f32 %v3811_v22, %v4351_v61  ;;  %v787_v0 = vmul.f32 %v4363_v18, %v4233_v3  ;;  %v4370_v30 = vld [vmem:[%s5551_s3 + $0x1] ss:$0 sm:$0xff]  ;;  %v4383_v3 = vld [vmem:[%s5551_s3 + $0x2] ss:$0 sm:$0xff]  ;;  %v4397_v59 = vld [vmem:[#allocation2 + $0xc9] sm:$0xff] }
 0x150   : > { %5656 = vst [vmem:[#allocation26_spill] sm:$0xff] %v4349_v23  ;;  %730 = vst.msk [vmem:[#allocation2 + $0x169] sm:$0xff] %vm645_vm2, %v627_v14  ;;  %v888_v62 = vmul.f32 %v4370_v30, %v4247_v32  ;;  %v4375_v22 = vmul.f32 0.70710677, %v4349_v23  ;;  %2603 = vrot.lane.b32.xlu1 %v4349_v23, %s3557_s11  ;;  %v1527_v31 = vadd.f32 %v1495_v11, %v1426_v24  ;;  %v1857_v36 = vmul.f32 0.3275911, %v1825_v1 }
 0x151   : > { %v1221_v48 = vadd.f32 %v1189_v7, %v1120_v8  ;;  %733 = vst.msk [vmem:[#allocation2 + $0x189] sm:$0xff] %vm645_vm2, %v642_v49  ;;  %v989_v34 = vmul.f32 %v4383_v3, %v4245_v55  ;;  %v2273_v32 = vsub.f32 0.0, %v1825_v1  ;;  %v1091_v52 = vmul.f32 %v4392_v27, %v4313_v53  ;;  %v4402_v14 = vld [vmem:[%s5551_s3 + $0x5] ss:$0 sm:$0xff] }
 0x152   : > { %5657 = vst [vmem:[#allocation27_spill] sm:$0xff] %v4375_v22  ;;  %v920_v35 = vadd.f32 %v888_v62, %v787_v0  ;;  %3437 = vpow2.f32 %v2345_v47  ;;  %v1824_v17 = vand.u32 2147483647, %v4375_v22  ;;  %v1628_v37 = vadd.f32 %v1596_v26, %v1527_v31  ;;  %v4412_v26 = vld [vmem:[%s5551_s3 + $0x9] ss:$0 sm:$0xff]  ;;  %v4455_v22 = vld [vmem:[#allocation2 + $0xf1] sm:$0xff] }
 0x153   : > { %v1322_v11 = vadd.f32 %v1290_v40, %v1221_v48  ;;  %3439 = vrcp.f32 %v1886_v19  ;;  %v2343_v55 = vmul.f32 1.442695, %v2302_v10  ;;  %v1192_v24 = vmul.f32 %v4402_v14, %v4328_v15  ;;  %v4419_v10 = vld [vmem:[%s5551_s3 + $0xa] ss:$0 sm:$0xff] }
 0x154   : > { %v1021_v7 = vadd.f32 %v989_v34, %v920_v35  ;;  %v4407_v8 = vadd.f32 %v3869_v21, %v1628_v37  ;;  %v1494_v19 = vmul.f32 %v4412_v26, %v4397_v59  ;;  %v1595_v49 = vmul.f32 %v4419_v10, %v4387_v28  ;;  %v4435_v37 = vld [vmem:[%s5551_s3 + $0x6] ss:$0 sm:$0xff] }
 0x155   : > { %v1425_v47 = vadd.f32 %v1393_v12, %v1322_v11  ;;  %v4423_v40 = vpop.eup %3435  ;;  %v1889_v0 = vadd.f32 1.0, %v1857_v36  ;;  %v2305_v12 = vmul.f32 %v2273_v32, %v1825_v1  ;;  %v786_v31 = vmul.f32 %v4363_v18, %v4279_v13  ;;  %v4439_v36 = vld [vmem:[#allocation2 + $0xf0] sm:$0xff]  ;;  %v4444_v13 = vld [vmem:[%s5551_s3 + $0x8] ss:$0 sm:$0xff] }
 0x156   : > { %5658 = vst [vmem:[#allocation28_spill] sm:$0xff] %v4407_v8  ;;  %5659 = vst [vmem:[#allocation29_spill] sm:$0xff] %v4423_v40  ;;  %v1123_v62 = vadd.f32 %v1091_v52, %v1021_v7  ;;  %v2272_v48 = vsub.f32 0.0, %v1824_v17  ;;  %v4428_v34 = vmul.f32 0.70710677, %v4407_v8  ;;  %2609 = vrot.lane.b32.xlu0 %v4407_v8, %s3557_s11  ;;  %v1293_v1 = vmul.f32 %v4435_v37, %v4315_v9 }
 0x157   : > { %v1526_v35 = vadd.f32 %v1494_v19, %v1425_v47  ;;  %v1396_v52 = vmul.f32 %v4444_v13, %v4439_v36  ;;  %v887_v11 = vmul.f32 %v4370_v30, %v4296_v43  ;;  %v988_v7 = vmul.f32 %v4383_v3, %v4288_v42 }
 0x158   : > { %5660 = vst [vmem:[#allocation30_spill] sm:$0xff] %v4428_v34  ;;  %v1224_v32 = vadd.f32 %v1192_v24, %v1123_v62  ;;  %3441 = vpow2.f32 %v2343_v55  ;;  %v1856_v47 = vmul.f32 0.3275911, %v1824_v17  ;;  %v1827_v19 = vand.u32 2147483647, %v4428_v34  ;;  %v4453_v24 = vld [vmem:[#allocation2 + $0xf2] sm:$0xff] }
 0x159   : > { %v1627_v8 = vadd.f32 %v1595_v49, %v1526_v35  ;;  %3443 = vrcp.f32 %v1889_v0  ;;  %v919_v23 = vadd.f32 %v887_v11, %v786_v31  ;;  %v1090_v46 = vmul.f32 %v4392_v27, %v4351_v61 }
 0x15a   : > { %v1325_v62 = vadd.f32 %v1293_v1, %v1224_v32  ;;  %v2349_v39 = vmul.f32 1.442695, %v2305_v12  ;;  %v2304_v43 = vmul.f32 %v2272_v48, %v1824_v17  ;;  %v1497_v42 = vmul.f32 %v4412_v26, %v4455_v22 }
 0x15b   : > { %v4460_v40 = vadd.f32 %v3869_v21, %v1627_v8  ;;  %v1598_v49 = vmul.f32 %v4419_v10, %v4453_v24  ;;  %v1020_v0 = vadd.f32 %v988_v7, %v919_v23  ;;  %v1191_v35 = vmul.f32 %v4402_v14, %v4397_v59 }
 0x15c   : > { %v1428_v55 = vadd.f32 %v1396_v52, %v1325_v62  ;;  %v4468_v31 = vpop.eup %3437  ;;  %v1888_v1 = vadd.f32 1.0, %v1856_v47  ;;  %v1859_v32 = vmul.f32 0.3275911, %v1827_v19  ;;  %v2275_v12 = vsub.f32 0.0, %v1827_v19  ;;  %v4484_v62 = vld [vmem:[#allocation2 + $0xe0] sm:$0xff] }
 0x15d   : > { %5661 = vst [vmem:[#allocation31_spill] sm:$0xff] %v4460_v40  ;;  %5662 = vst [vmem:[#allocation32_spill] sm:$0xff] %v4468_v31  ;;  %v4471_v17 = vmul.f32 0.70710677, %v4460_v40  ;;  %2607 = vrot.lane.b32.xlu1 %v4460_v40, %s3557_s11  ;;  %v4475_v21 = vpop.eup %3439  ;;  %v1122_v48 = vadd.f32 %v1090_v46, %v1020_v0  ;;  %v637_v23 = vadd.f32 %v4344_v63, %v4099_v45  ;;  %v2347_v11 = vmul.f32 1.442695, %v2304_v43 }
 0x15e   : > { %v1529_v8 = vadd.f32 %v1497_v42, %v1428_v55  ;;  %v789_v52 = vmul.f32 %v4363_v18, %v4313_v53  ;;  %v1292_v47 = vmul.f32 %v4435_v37, %v4387_v28  ;;  %v890_v40 = vmul.f32 %v4370_v30, %v4328_v15  ;;  %v4493_v63 = vld [vmem:[#allocation2 + $0xe2] sm:$0xff]  ;;  %v4658_v31 = vld [vmem:[#allocation2 + $0x111] sm:$0xff] }
 0x15f   : > { %5663 = vst [vmem:[#allocation33_spill] sm:$0xff] %v4471_v17  ;;  %v1826_v7 = vand.u32 2147483647, %v4471_v17  ;;  %v1223_v42 = vadd.f32 %v1191_v35, %v1122_v48  ;;  %v1395_v46 = vmul.f32 %v4444_v13, %v4484_v62  ;;  %732 = vst.msk [vmem:[#allocation2 + $0x181] sm:$0xff] %vm645_vm2, %v637_v23  ;;  %v991_v45 = vmul.f32 %v4383_v3, %v4315_v9  ;;  %v4568_v17 = vld [vmem:[#allocation2 + $0xf8] sm:$0xff] }
 0x160   : > { %v1630_v34 = vadd.f32 %v1598_v49, %v1529_v8  ;;  %3445 = vpow2.f32 %v2349_v39  ;;  %v2307_v53 = vmul.f32 %v2275_v12, %v1827_v19  ;;  %v922_v43 = vadd.f32 %v890_v40, %v789_v52  ;;  %v4500_v49 = vld [vmem:[%s5552_s4] ss:$0 sm:$0xff]  ;;  %v4507_v19 = vld [vmem:[#allocation2 + $0xe1] sm:$0xff] }
 0x161   : > { %v1093_v55 = vmul.f32 %v4392_v27, %v4439_v36  ;;  %3447 = vrcp.f32 %v1888_v1  ;;  %v1891_v15 = vadd.f32 1.0, %v1859_v32  ;;  %v1324_v35 = vadd.f32 %v1292_v47, %v1223_v42 }
 0x162   : > { %v4503_v0 = vadd.f32 %v4500_v49, %v1630_v34  ;;  %v4505_v9 = vpop.eup %3441  ;;  %3449 = vpow2.f32 %v2347_v11  ;;  %v2274_v39 = vsub.f32 0.0, %v1826_v7  ;;  %v1023_v40 = vadd.f32 %v991_v45, %v922_v43  ;;  %v4524_v45 = vld [vmem:[#allocation2 + $0x108] sm:$0xff] }
 0x163   : > { %5665 = vst [vmem:[#allocation35_spill] sm:$0xff] %v4505_v9  ;;  %v1194_v1 = vmul.f32 %v4402_v14, %v4455_v22  ;;  %v4511_v32 = vpop.eup %3443  ;;  %v1427_v34 = vadd.f32 %v1395_v46, %v1324_v35  ;;  %v1496_v8 = vmul.f32 %v4412_v26, %v4507_v19  ;;  %v1597_v48 = vmul.f32 %v4419_v10, %v4493_v63 }
 0x164   : > { %5664 = vst [vmem:[#allocation34_spill] sm:$0xff] %v4503_v0  ;;  %5666 = vst [vmem:[#allocation36_spill] sm:$0xff] %v4511_v32  ;;  %v4514_v12 = vmul.f32 0.70710677, %v4503_v0  ;;  %2613 = vrot.lane.b32.xlu0 %v4503_v0, %s3557_s11  ;;  %v2353_v23 = vmul.f32 1.442695, %v2307_v53  ;;  %v1125_v11 = vadd.f32 %v1093_v55, %v1023_v40  ;;  %v788_v47 = vmul.f32 %v4363_v18, %v4351_v61 }
 0x165   : > { %v1858_v52 = vmul.f32 0.3275911, %v1826_v7  ;;  %3451 = vrcp.f32 %v1891_v15  ;;  %v1528_v42 = vadd.f32 %v1496_v8, %v1427_v34  ;;  %v889_v43 = vmul.f32 %v4370_v30, %v4397_v59  ;;  %v4535_v40 = vld [vmem:[#allocation2 + $0x10a] sm:$0xff] }
 0x166   : > { %5667 = vst [vmem:[#allocation37_spill] sm:$0xff] %v4514_v12  ;;  %v990_v46 = vmul.f32 %v4383_v3, %v4387_v28  ;;  %v2306_v35 = vmul.f32 %v2274_v39, %v1826_v7  ;;  %v1226_v0 = vadd.f32 %v1194_v1, %v1125_v11  ;;  %v1295_v53 = vmul.f32 %v4435_v37, %v4453_v24  ;;  %v4539_v7 = vld [vmem:[#allocation2 + $0x109] sm:$0xff]  ;;  %v2709_v39 = vld [vmem:[%s5553_s5] sm:$0xff] }
 0x167   : > { %v1398_v55 = vmul.f32 %v4444_v13, %v4524_v45  ;;  %v1829_v61 = vand.u32 2147483647, %v4514_v12  ;;  %v1629_v15 = vadd.f32 %v1597_v48, %v1528_v42  ;;  %v921_v34 = vadd.f32 %v889_v43, %v788_v47  ;;  %3338 = vmatprep.subr.mxu1 %v2709_v39 }
 0x168   : > { %v1092_v59 = vmul.f32 %v4392_v27, %v4484_v62  ;;  %3453 = vpow2.f32 %v2353_v23  ;;  %v1890_v8 = vadd.f32 1.0, %v1858_v52  ;;  %v1327_v28 = vadd.f32 %v1295_v53, %v1226_v0  ;;  %3339 = vmatpush3.msra.mxu1 %v2709_v39 }
 0x169   : > { %v4545_v1 = vadd.f32 %v4500_v49, %v1629_v15  ;;  %v1499_v48 = vmul.f32 %v4412_v26, %v4539_v7  ;;  %v1022_v11 = vadd.f32 %v990_v46, %v921_v34  ;;  %v1193_v47 = vmul.f32 %v4402_v14, %v4507_v19 }
 0x16a   : > { %v4551_v23 = vpop.eup %3445  ;;  %v1430_v0 = vadd.f32 %v1398_v55, %v1327_v28  ;;  %v1600_v52 = vmul.f32 %v4419_v10, %v4535_v40  ;;  %v791_v42 = vmul.f32 %v4363_v18, %v4439_v36  ;;  %v892_v43 = vmul.f32 %v4370_v30, %v4455_v22 }
 0x16b   : > { %5668 = vst [vmem:[#allocation38_spill] sm:$0xff] %v4545_v1  ;;  %5669 = vst [vmem:[#allocation39_spill] sm:$0xff] %v4551_v23  ;;  %v4559_v53 = vpop.eup %3447  ;;  %v2351_v46 = vmul.f32 1.442695, %v2306_v35  ;;  %v1861_v15 = vmul.f32 0.3275911, %v1829_v61  ;;  %2611 = vrot.lane.b32.xlu1 %v4545_v1, %s3557_s11  ;;  %v1124_v55 = vadd.f32 %v1092_v59, %v1022_v11  ;;  %v993_v22 = vmul.f32 %v4383_v3, %v4453_v24 }
 0x16c   : > { %5670 = vst [vmem:[#allocation40_spill] sm:$0xff] %v4559_v53  ;;  %v4562_v34 = vmul.f32 0.70710677, %v4545_v1  ;;  %v4566_v28 = vpop.eup %3449  ;;  %v1531_v12 = vadd.f32 %v1499_v48, %v1430_v0  ;;  %v924_v36 = vadd.f32 %v892_v43, %v791_v42  ;;  %v1095_v35 = vmul.f32 %v4392_v27, %v4524_v45  ;;  %v4578_v48 = vld [vmem:[#allocation2 + $0xf9] sm:$0xff] }
 0x16d   : > { %5672 = vst [vmem:[#allocation42_spill] sm:$0xff] %v4566_v28  ;;  %v2277_v39 = vsub.f32 0.0, %v1829_v61  ;;  %v1225_v23 = vadd.f32 %v1193_v47, %v1124_v55  ;;  %v1294_v9 = vmul.f32 %v4435_v37, %v4493_v63  ;;  %v1397_v59 = vmul.f32 %v4444_v13, %v4568_v17 }
 0x16e   : > { %5671 = vst [vmem:[#allocation41_spill] sm:$0xff] %v4562_v34  ;;  %3455 = vrcp.f32 %v1890_v8  ;;  %v1632_v11 = vadd.f32 %v1600_v52, %v1531_v12  ;;  %v1025_v0 = vadd.f32 %v993_v22, %v924_v36  ;;  %v1196_v42 = vmul.f32 %v4402_v14, %v4539_v7  ;;  %v4590_v12 = vld [vmem:[#allocation2 + $0xfa] sm:$0xff] }
 0x16f   : > { %v4582_v24 = vpop.eup %3451  ;;  %3457 = vpow2.f32 %v2351_v46  ;;  %v1893_v43 = vadd.f32 1.0, %v1861_v15  ;;  %v1326_v1 = vadd.f32 %v1294_v9, %v1225_v23  ;;  %v1498_v47 = vmul.f32 %v4412_v26, %v4578_v48  ;;  %v4596_v9 = vld [vmem:[#allocation2 + $0x120] sm:$0xff] }
 0x170   : > { %5673 = vst [vmem:[#allocation43_spill] sm:$0xff] %v4582_v24  ;;  %v1828_v55 = vand.u32 2147483647, %v4562_v34  ;;  %v4588_v28 = vadd.f32 %v4500_v49, %v1632_v11  ;;  %v1127_v8 = vadd.f32 %v1095_v35, %v1025_v0  ;;  %v790_v52 = vmul.f32 %v4363_v18, %v4484_v62 }
 0x171   : > { %v2309_v36 = vmul.f32 %v2277_v39, %v1829_v61  ;;  %v1429_v22 = vadd.f32 %v1397_v59, %v1326_v1  ;;  %v1297_v46 = vmul.f32 %v4435_v37, %v4535_v40  ;;  %v891_v23 = vmul.f32 %v4370_v30, %v4507_v19 }
 0x172   : > { %5674 = vst [vmem:[#allocation44_spill] sm:$0xff] %v4588_v28  ;;  %v4600_v15 = vpop.eup %3453  ;;  %v4603_v11 = vmul.f32 0.70710677, %v4588_v28  ;;  %2617 = vrot.lane.b32.xlu0 %v4588_v28, %s3557_s11  ;;  %v1228_v35 = vadd.f32 %v1196_v42, %v1127_v8  ;;  %v1400_v62 = vmul.f32 %v4444_v13, %v4596_v9  ;;  %v992_v61 = vmul.f32 %v4383_v3, %v4493_v63  ;;  %v4617_v28 = vld [vmem:[#allocation2 + $0x121] sm:$0xff] }
 0x173   : > { %5675 = vst [vmem:[#allocation45_spill] sm:$0xff] %v4600_v15  ;;  %v1530_v1 = vadd.f32 %v1498_v47, %v1429_v22  ;;  %v1599_v39 = vmul.f32 %v4419_v10, %v4590_v12  ;;  %v923_v19 = vadd.f32 %v891_v23, %v790_v52  ;;  %v1094_v59 = vmul.f32 %v4392_v27, %v4568_v17  ;;  %v4615_v15 = vld [vmem:[#allocation2 + $0x122] sm:$0xff] }
 0x174   : > { %5676 = vst [vmem:[#allocation46_spill] sm:$0xff] %v4603_v11  ;;  %3459 = vrcp.f32 %v1893_v43  ;;  %v2276_v0 = vsub.f32 0.0, %v1828_v55  ;;  %v1329_v34 = vadd.f32 %v1297_v46, %v1228_v35  ;;  %v2357_v42 = vmul.f32 1.442695, %v2309_v36 }
 0x175   : > { %v1631_v8 = vadd.f32 %v1599_v39, %v1530_v1  ;;  %v1024_v24 = vadd.f32 %v992_v61, %v923_v19  ;;  %v1195_v63 = vmul.f32 %v4402_v14, %v4578_v48  ;;  %v1860_v47 = vmul.f32 0.3275911, %v1828_v55 }
 0x176   : > { %v1831_v22 = vand.u32 2147483647, %v4603_v11  ;;  %v1432_v52 = vadd.f32 %v1400_v62, %v1329_v34  ;;  %v1501_v23 = vmul.f32 %v4412_v26, %v4617_v28  ;;  %v1602_v36 = vmul.f32 %v4419_v10, %v4615_v15  ;;  %v4635_v62 = vld [vmem:[#allocation2 + $0x110] sm:$0xff] }
 0x177   : > { %v4625_v43 = vadd.f32 %v4500_v49, %v1631_v8  ;;  %v1126_v46 = vadd.f32 %v1094_v59, %v1024_v24  ;;  %v793_v35 = vmul.f32 %v4363_v18, %v4524_v45  ;;  %v2308_v1 = vmul.f32 %v2276_v0, %v1828_v55 }
 0x178   : > { %v4631_v61 = vpop.eup %3455  ;;  %v1533_v39 = vadd.f32 %v1501_v23, %v1432_v52  ;;  %v1296_v34 = vmul.f32 %v4435_v37, %v4590_v12  ;;  %v894_v19 = vmul.f32 %v4370_v30, %v4539_v7  ;;  %v1399_v24 = vmul.f32 %v4444_v13, %v4635_v62  ;;  %v4650_v52 = vld [vmem:[#allocation2 + $0x112] sm:$0xff] }
 0x179   : > { %5677 = vst [vmem:[#allocation47_spill] sm:$0xff] %v4625_v43  ;;  %5678 = vst [vmem:[#allocation48_spill] sm:$0xff] %v4631_v61  ;;  %v4639_v8 = vpop.eup %3457  ;;  %v4642_v11 = vmul.f32 0.70710677, %v4625_v43  ;;  %2615 = vrot.lane.b32.xlu1 %v4625_v43, %s3557_s11  ;;  %v1227_v45 = vadd.f32 %v1195_v63, %v1126_v46  ;;  %v995_v55 = vmul.f32 %v4383_v3, %v4535_v40  ;;  %v1863_v59 = vmul.f32 0.3275911, %v1831_v22 }
 0x17a   : > { %5679 = vst [vmem:[#allocation49_spill] sm:$0xff] %v4639_v8  ;;  %v1634_v0 = vadd.f32 %v1602_v36, %v1533_v39  ;;  %v926_v7 = vadd.f32 %v894_v19, %v793_v35  ;;  %v1097_v23 = vmul.f32 %v4392_v27, %v4596_v9  ;;  %3461 = vpow2.f32 %v2357_v42 }
 0x17b   : > { %5680 = vst [vmem:[#allocation50_spill] sm:$0xff] %v4642_v11  ;;  %v2279_v8 = vsub.f32 0.0, %v1831_v22  ;;  %v1830_v61 = vand.u32 2147483647, %v4642_v11  ;;  %v1328_v43 = vadd.f32 %v1296_v34, %v1227_v45  ;;  %v1892_v63 = vadd.f32 1.0, %v1860_v47 }
 0x17c   : > { %v4656_v46 = vadd.f32 %v4500_v49, %v1634_v0  ;;  %v1027_v40 = vadd.f32 %v995_v55, %v926_v7  ;;  %v1198_v36 = vmul.f32 %v4402_v14, %v4617_v28  ;;  %v2355_v39 = vmul.f32 1.442695, %v2308_v1 }
 0x17d   : > { %v1431_v35 = vadd.f32 %v1399_v24, %v1328_v43  ;;  %v1500_v19 = vmul.f32 %v4412_v26, %v4658_v31  ;;  %v1601_v42 = vmul.f32 %v4419_v10, %v4650_v52  ;;  %v1895_v47 = vadd.f32 1.0, %v1863_v59  ;;  %v4674_v24 = vld [vmem:[#allocation2 + $0x138] sm:$0xff] }
 0x17e   : > { %5681 = vst [vmem:[#allocation51_spill] sm:$0xff] %v4656_v46  ;;  %v4666_v11 = vpop.eup %3459  ;;  %v2278_v34 = vsub.f32 0.0, %v1830_v61  ;;  %2621 = vrot.lane.b32.xlu0 %v4656_v46, %s3557_s11  ;;  %v1129_v45 = vadd.f32 %v1097_v23, %v1027_v40  ;;  %v792_v55 = vmul.f32 %v4363_v18, %v4568_v17  ;;  %v2311_v0 = vmul.f32 %v2279_v8, %v1831_v22 }
 0x17f   : > { %5682 = vst [vmem:[#allocation52_spill] sm:$0xff] %v4666_v11  ;;  %v1532_v1 = vadd.f32 %v1500_v19, %v1431_v35  ;;  %v1299_v43 = vmul.f32 %v4435_v37, %v4615_v15  ;;  %v893_v7 = vmul.f32 %v4370_v30, %v4578_v48  ;;  %v4679_v59 = vmul.f32 0.70710677, %v4656_v46  ;;  %v4687_v48 = vld [vmem:[#allocation2 + $0x13a] sm:$0xff] }
 0x180   : > { %v1230_v11 = vadd.f32 %v1198_v36, %v1129_v45  ;;  %v1402_v23 = vmul.f32 %v4444_v13, %v4674_v24  ;;  %v994_v17 = vmul.f32 %v4383_v3, %v4590_v12  ;;  %v1862_v22 = vmul.f32 0.3275911, %v1830_v61  ;;  %v4692_v45 = vld [vmem:[#allocation2 + $0x139] sm:$0xff] }
 0x181   : > { %5683 = vst [vmem:[#allocation53_spill] sm:$0xff] %v4679_v59  ;;  %v1633_v8 = vadd.f32 %v1601_v42, %v1532_v1  ;;  %v925_v40 = vadd.f32 %v893_v7, %v792_v55  ;;  %v1096_v35 = vmul.f32 %v4392_v27, %v4635_v62  ;;  %3463 = vrcp.f32 %v1892_v63 }
 0x182   : > { %v2310_v19 = vmul.f32 %v2278_v34, %v1830_v61  ;;  %v1331_v53 = vadd.f32 %v1299_v43, %v1230_v11  ;;  %3465 = vpow2.f32 %v2355_v39  ;;  %v1197_v12 = vmul.f32 %v4402_v14, %v4658_v31 }
 0x183   : > { %v4690_v36 = vadd.f32 %v4500_v49, %v1633_v8  ;;  %v1026_v46 = vadd.f32 %v994_v17, %v925_v40  ;;  %v2361_v42 = vmul.f32 1.442695, %v2311_v0  ;;  %v1833_v55 = vand.u32 2147483647, %v4679_v59 }
 0x184   : > { %v1434_v1 = vadd.f32 %v1402_v23, %v1331_v53  ;;  %v1503_v61 = vmul.f32 %v4412_v26, %v4692_v45  ;;  %v4699_v11 = vpop.eup %3461  ;;  %3467 = vrcp.f32 %v1895_v47  ;;  %v1894_v63 = vadd.f32 1.0, %v1862_v22  ;;  %v4707_v53 = vld [vmem:[#allocation2 + $0x128] sm:$0xff] }
 0x185   : > { %5684 = vst [vmem:[#allocation54_spill] sm:$0xff] %v4690_v36  ;;  %5685 = vst [vmem:[#allocation55_spill] sm:$0xff] %v4699_v11  ;;  %2619 = vrot.lane.b32.xlu1 %v4690_v36, %s3557_s11  ;;  %v1604_v39 = vmul.f32 %v4419_v10, %v4687_v48  ;;  %v1128_v34 = vadd.f32 %v1096_v35, %v1026_v46  ;;  %v2359_v43 = vmul.f32 1.442695, %v2310_v19  ;;  %3469 = vpow2.f32 %v2361_v42 }
 0x186   : > { %v1535_v7 = vadd.f32 %v1503_v61, %v1434_v1  ;;  %v1298_v0 = vmul.f32 %v4435_v37, %v4650_v52  ;;  %v795_v23 = vmul.f32 %v4363_v18, %v4596_v9  ;;  %v1401_v47 = vmul.f32 %v4444_v13, %v4707_v53 }
 0x187   : > { %v1229_v17 = vadd.f32 %v1197_v12, %v1128_v34  ;;  %v896_v22 = vmul.f32 %v4370_v30, %v4617_v28  ;;  %v997_v46 = vmul.f32 %v4383_v3, %v4615_v15  ;;  %v1865_v8 = vmul.f32 0.3275911, %v1833_v55  ;;  %v4725_v28 = vld [vmem:[#allocation2 + $0x129] sm:$0xff] }
 0x188   : > { %v2281_v40 = vsub.f32 0.0, %v1833_v55  ;;  %v1636_v35 = vadd.f32 %v1604_v39, %v1535_v7  ;;  %3471 = vrcp.f32 %v1894_v63  ;;  %v1099_v9 = vmul.f32 %v4392_v27, %v4674_v24  ;;  %v4727_v15 = vld [vmem:[#allocation2 + $0x12a] sm:$0xff] }
 0x189   : > { %v1330_v19 = vadd.f32 %v1298_v0, %v1229_v17  ;;  %v928_v1 = vadd.f32 %v896_v22, %v795_v23  ;;  %3473 = vpow2.f32 %v2359_v43  ;;  %v4720_v12 = vmul.f32 0.70710677, %v4690_v36 }
 0x18a   : > { %v4723_v61 = vadd.f32 %v4500_v49, %v1636_v35  ;;  %v1502_v63 = vmul.f32 %v4412_v26, %v4725_v28  ;;  %v1200_v34 = vmul.f32 %v4402_v14, %v4692_v45  ;;  %v1897_v43 = vadd.f32 1.0, %v1865_v8 }
 0x18b   : > { %5686 = vst [vmem:[#allocation56_spill] sm:$0xff] %v4720_v12  ;;  %v1433_v42 = vadd.f32 %v1401_v47, %v1330_v19  ;;  %v1029_v39 = vadd.f32 %v997_v46, %v928_v1  ;;  %v4733_v7 = vpop.eup %3463  ;;  %v2313_v0 = vmul.f32 %v2281_v40, %v1833_v55  ;;  %v794_v23 = vmul.f32 %v4363_v18, %v4635_v62  ;;  %v4749_v40 = vld [vmem:[#allocation2 + $0x150] sm:$0xff] }
 0x18c   : > { %5687 = vst [vmem:[#allocation57_spill] sm:$0xff] %v4723_v61  ;;  %5688 = vst [vmem:[#allocation58_spill] sm:$0xff] %v4733_v7  ;;  %2625 = vrot.lane.b32.xlu0 %v4723_v61, %s3557_s11  ;;  %v895_v17 = vmul.f32 %v4370_v30, %v4658_v31  ;;  %v4741_v47 = vpop.eup %3465  ;;  %v4744_v22 = vmul.f32 0.70710677, %v4723_v61  ;;  %v1603_v35 = vmul.f32 %v4419_v10, %v4727_v15  ;;  %v1832_v55 = vand.u32 2147483647, %v4720_v12 }
 0x18d   : > { %5689 = vst [vmem:[#allocation59_spill] sm:$0xff] %v4741_v47  ;;  %v1534_v46 = vadd.f32 %v1502_v63, %v1433_v42  ;;  %v1131_v8 = vadd.f32 %v1099_v9, %v1029_v39  ;;  %v996_v62 = vmul.f32 %v4383_v3, %v4650_v52  ;;  %v1098_v31 = vmul.f32 %v4392_v27, %v4707_v53  ;;  %v4761_v63 = vld [vmem:[#allocation2 + $0x152] sm:$0xff]  ;;  %v4802_v7 = vld [vmem:[#allocation2 + $0x141] sm:$0xff] }
 0x18e   : > { %5690 = vst [vmem:[#allocation60_spill] sm:$0xff] %v4744_v22  ;;  %v927_v19 = vadd.f32 %v895_v17, %v794_v23  ;;  %v4755_v1 = vpop.eup %3467  ;;  %v1301_v42 = vmul.f32 %v4435_v37, %v4687_v48  ;;  %v1404_v9 = vmul.f32 %v4444_v13, %v4749_v40  ;;  %3475 = vrcp.f32 %v1897_v43 }
 0x18f   : > { %5691 = vst [vmem:[#allocation61_spill] sm:$0xff] %v4755_v1  ;;  %v1635_v61 = vadd.f32 %v1603_v35, %v1534_v46  ;;  %v1232_v36 = vadd.f32 %v1200_v34, %v1131_v8  ;;  %v1199_v52 = vmul.f32 %v4402_v14, %v4725_v28  ;;  %v2365_v23 = vmul.f32 1.442695, %v2313_v0  ;;  %v4769_v46 = vld [vmem:[#allocation2 + $0x151] sm:$0xff]  ;;  %v4771_v35 = vpop.eup %3469 }
 0x190   : > { %v1028_v39 = vadd.f32 %v996_v62, %v927_v19  ;;  %v1835_v17 = vand.u32 2147483647, %v4744_v22  ;;  %5693 = vst [vmem:[#allocation63_spill] sm:$0xff] %v4771_v35  ;;  %v1864_v8 = vmul.f32 0.3275911, %v1832_v55  ;;  %v2280_v59 = vsub.f32 0.0, %v1832_v55 }
 0x191   : > { %v4767_v12 = vadd.f32 %v4500_v49, %v1635_v61  ;;  %v1333_v34 = vadd.f32 %v1301_v42, %v1232_v36  ;;  %v1505_v43 = vmul.f32 %v4412_v26, %v4769_v46  ;;  %v1606_v61 = vmul.f32 %v4419_v10, %v4761_v63  ;;  %v4781_v36 = vld [vmem:[#allocation2 + $0x140] sm:$0xff] }
 0x192   : > { %v1130_v19 = vadd.f32 %v1098_v31, %v1028_v39  ;;  %v4775_v62 = vpop.eup %3471  ;;  %v797_v42 = vmul.f32 %v4363_v18, %v4674_v24  ;;  %v898_v22 = vmul.f32 %v4370_v30, %v4692_v45  ;;  %v1300_v39 = vmul.f32 %v4435_v37, %v4727_v15 }
 0x193   : > { %5692 = vst [vmem:[#allocation62_spill] sm:$0xff] %v4767_v12  ;;  %5694 = vst [vmem:[#allocation64_spill] sm:$0xff] %v4775_v62  ;;  %2623 = vrot.lane.b32.xlu1 %v4767_v12, %s3557_s11  ;;  %v1436_v0 = vadd.f32 %v1404_v9, %v1333_v34  ;;  %v4787_v35 = vpop.eup %3473  ;;  %v1403_v9 = vmul.f32 %v4444_v13, %v4781_v36  ;;  %v999_v34 = vmul.f32 %v4383_v3, %v4687_v48 }
 0x194   : > { %5695 = vst [vmem:[#allocation65_spill] sm:$0xff] %v4787_v35  ;;  %v1231_v31 = vadd.f32 %v1199_v52, %v1130_v19  ;;  %v2283_v47 = vsub.f32 0.0, %v1835_v17  ;;  %v930_v62 = vadd.f32 %v898_v22, %v797_v42  ;;  %v1101_v24 = vmul.f32 %v4392_v27, %v4749_v40  ;;  %v4797_v35 = vld [vmem:[#allocation2 + $0x142] sm:$0xff] }
 0x195   : > { %v1537_v11 = vadd.f32 %v1505_v43, %v1436_v0  ;;  %3477 = vpow2.f32 %v2365_v23  ;;  %v1896_v45 = vadd.f32 1.0, %v1864_v8  ;;  %v4800_v52 = vmul.f32 0.70710677, %v4767_v12  ;;  %v4840_v12 = vld [vmem:[#allocation2 + $0x169] sm:$0xff] }
 0x196   : > { %v1332_v1 = vadd.f32 %v1300_v39, %v1231_v31  ;;  %v1031_v32 = vadd.f32 %v999_v34, %v930_v62  ;;  %v1202_v48 = vmul.f32 %v4402_v14, %v4769_v46  ;;  %v2312_v43 = vmul.f32 %v2280_v59, %v1832_v55  ;;  %v4815_v39 = vld [vmem:[#allocation2 + $0x168] sm:$0xff] }
 0x197   : > { %5696 = vst [vmem:[#allocation66_spill] sm:$0xff] %v4800_v52  ;;  %v1638_v19 = vadd.f32 %v1606_v61, %v1537_v11  ;;  %v1867_v22 = vmul.f32 0.3275911, %v1835_v17  ;;  %v1504_v23 = vmul.f32 %v4412_v26, %v4802_v7  ;;  %v2315_v8 = vmul.f32 %v2283_v47, %v1835_v17 }
 0x198   : > { %v1435_v0 = vadd.f32 %v1403_v9, %v1332_v1  ;;  %v1605_v31 = vmul.f32 %v4419_v10, %v4797_v35  ;;  %v1133_v11 = vadd.f32 %v1101_v24, %v1031_v32  ;;  %v4813_v61 = vpop.eup %3475  ;;  %v796_v59 = vmul.f32 %v4363_v18, %v4707_v53 }
 0x199   : > { %v4809_v42 = vadd.f32 %v4500_v49, %v1638_v19  ;;  %5698 = vst [vmem:[#allocation68_spill] sm:$0xff] %v4813_v61  ;;  %v897_v55 = vmul.f32 %v4370_v30, %v4725_v28  ;;  %v998_v47 = vmul.f32 %v4383_v3, %v4727_v15  ;;  %v1834_v1 = vand.u32 2147483647, %v4800_v52 }
 0x19a   : > { %v1536_v62 = vadd.f32 %v1504_v23, %v1435_v0  ;;  %v1234_v32 = vadd.f32 %v1202_v48, %v1133_v11  ;;  %v1303_v17 = vmul.f32 %v4435_v37, %v4761_v63  ;;  %v1406_v9 = vmul.f32 %v4444_v13, %v4815_v39  ;;  %v4835_v23 = vld [vmem:[#allocation2 + $0x16a] sm:$0xff] }
 0x19b   : > { %5697 = vst [vmem:[#allocation67_spill] sm:$0xff] %v4809_v42  ;;  %2629 = vrot.lane.b32.xlu0 %v4809_v42, %s3557_s11  ;;  %3479 = vrcp.f32 %v1896_v45  ;;  %v929_v34 = vadd.f32 %v897_v55, %v796_v59  ;;  %v1100_v28 = vmul.f32 %v4392_v27, %v4781_v36  ;;  %v2363_v24 = vmul.f32 1.442695, %v2312_v43 }
 0x19c   : > { %v1637_v53 = vadd.f32 %v1605_v31, %v1536_v62  ;;  %v1899_v15 = vadd.f32 1.0, %v1867_v22  ;;  %v4833_v19 = vmul.f32 0.70710677, %v4809_v42  ;;  %v1335_v0 = vadd.f32 %v1303_v17, %v1234_v32 }
 0x19d   : > { %v2369_v48 = vmul.f32 1.442695, %v2315_v8  ;;  %v1030_v45 = vadd.f32 %v998_v47, %v929_v34  ;;  %v1201_v31 = vmul.f32 %v4402_v14, %v4802_v7  ;;  %v1866_v62 = vmul.f32 0.3275911, %v1834_v1 }
 0x19e   : > { %5699 = vst [vmem:[#allocation69_spill] sm:$0xff] %v4833_v19  ;;  %v4838_v11 = vadd.f32 %v4500_v49, %v1637_v53  ;;  %v2282_v59 = vsub.f32 0.0, %v1834_v1  ;;  %v1438_v43 = vadd.f32 %v1406_v9, %v1335_v0  ;;  %v1507_v22 = vmul.f32 %v4412_v26, %v4840_v12  ;;  %v4859_v0 = vld [vmem:[#allocation2 + $0x158] sm:$0xff] }
 0x19f   : > { %v4846_v55 = vpop.eup %3477  ;;  %v1608_v8 = vmul.f32 %v4419_v10, %v4835_v23  ;;  %v1132_v32 = vadd.f32 %v1100_v28, %v1030_v45  ;;  %v799_v47 = vmul.f32 %v4363_v18, %v4749_v40  ;;  %v900_v17 = vmul.f32 %v4370_v30, %v4769_v46 }
 0x1a0   : > { %5700 = vst [vmem:[#allocation70_spill] sm:$0xff] %v4838_v11  ;;  %5701 = vst [vmem:[#allocation71_spill] sm:$0xff] %v4846_v55  ;;  %2627 = vrot.lane.b32.xlu1 %v4838_v11, %s3557_s11  ;;  %v1837_v9 = vand.u32 2147483647, %v4833_v19  ;;  %v1539_v53 = vadd.f32 %v1507_v22, %v1438_v43  ;;  %v1302_v34 = vmul.f32 %v4435_v37, %v4797_v35  ;;  %3481 = vpow2.f32 %v2363_v24  ;;  %v4870_v55 = vld [vmem:[#allocation2 + $0x15a] sm:$0xff] }
 0x1a1   : > { %v1001_v42 = vmul.f32 %v4383_v3, %v4761_v63  ;;  %v1233_v52 = vadd.f32 %v1201_v31, %v1132_v32  ;;  %v1405_v28 = vmul.f32 %v4444_v13, %v4859_v0  ;;  %v932_v45 = vadd.f32 %v900_v17, %v799_v47  ;;  %v4877_v24 = vld [vmem:[#allocation2 + $0x159] sm:$0xff] }
 0x1a2   : > { %v1103_v40 = vmul.f32 %v4392_v27, %v4815_v39  ;;  %v2314_v46 = vmul.f32 %v2282_v59, %v1834_v1  ;;  %v4868_v43 = vmul.f32 0.70710677, %v4838_v11  ;;  %v1640_v22 = vadd.f32 %v1608_v8, %v1539_v53  ;;  %v1372_v53 = vld [vmem:[#allocation2 + $0x180] sm:$0xff] }
 0x1a3   : > { %3483 = vrcp.f32 %v1899_v15  ;;  %v1334_v19 = vadd.f32 %v1302_v34, %v1233_v52  ;;  %v1033_v61 = vadd.f32 %v1001_v42, %v932_v45  ;;  %v1204_v63 = vmul.f32 %v4402_v14, %v4840_v12 }
 0x1a4   : > { %5702 = vst [vmem:[#allocation72_spill] sm:$0xff] %v4868_v43  ;;  %3485 = vpow2.f32 %v2369_v48  ;;  %v1869_v31 = vmul.f32 0.3275911, %v1837_v9  ;;  %v2285_v32 = vsub.f32 0.0, %v1837_v9  ;;  %v4875_v47 = vadd.f32 %v4500_v49, %v1640_v22 }
 0x1a5   : > { %v4879_v1 = vpop.eup %3479  ;;  %v1898_v59 = vadd.f32 1.0, %v1866_v62  ;;  %v1437_v8 = vadd.f32 %v1405_v28, %v1334_v19  ;;  %v1506_v52 = vmul.f32 %v4412_v26, %v4877_v24  ;;  %v1135_v15 = vadd.f32 %v1103_v40, %v1033_v61 }
 0x1a6   : > { %5703 = vst [vmem:[#allocation73_spill] sm:$0xff] %v4875_v47  ;;  %5704 = vst [vmem:[#allocation74_spill] sm:$0xff] %v4879_v1  ;;  %v2367_v42 = vmul.f32 1.442695, %v2314_v46  ;;  %v1836_v17 = vand.u32 2147483647, %v4868_v43  ;;  %2633 = vrot.lane.b32.xlu0 %v4875_v47, %s3557_s11  ;;  %v1607_v48 = vmul.f32 %v4419_v10, %v4870_v55  ;;  %v798_v34 = vmul.f32 %v4363_v18, %v4781_v36 }
 0x1a7   : > { %v1538_v45 = vadd.f32 %v1506_v52, %v1437_v8  ;;  %v1236_v62 = vadd.f32 %v1204_v63, %v1135_v15  ;;  %v1305_v19 = vmul.f32 %v4435_v37, %v4835_v23  ;;  %v1408_v61 = vmul.f32 %v4444_v13, %v1372_v53  ;;  %v1473_v46 = vld [vmem:[#allocation2 + $0x181] sm:$0xff] }
 0x1a8   : > { %v1901_v28 = vadd.f32 1.0, %v1869_v31  ;;  %v2317_v40 = vmul.f32 %v2285_v32, %v1837_v9  ;;  %v899_v22 = vmul.f32 %v4370_v30, %v4802_v7  ;;  %v1000_v11 = vmul.f32 %v4383_v3, %v4797_v35  ;;  %v1574_v63 = vld [vmem:[#allocation2 + $0x182] sm:$0xff] }
 0x1a9   : > { %3487 = vrcp.f32 %v1898_v59  ;;  %v1639_v43 = vadd.f32 %v1607_v48, %v1538_v45  ;;  %v1337_v1 = vadd.f32 %v1305_v19, %v1236_v62  ;;  %v1868_v36 = vmul.f32 0.3275911, %v1836_v17 }
 0x1aa   : > { %3489 = vpow2.f32 %v2367_v42  ;;  %v931_v8 = vadd.f32 %v899_v22, %v798_v34  ;;  %v1102_v52 = vmul.f32 %v4392_v27, %v4859_v0  ;;  %v4900_v31 = vmul.f32 0.70710677, %v4875_v47  ;;  %v4906_v35 = vpop.eup %3481 }
 0x1ab   : > { %v4903_v9 = vadd.f32 %v4500_v49, %v1639_v43  ;;  %v1440_v7 = vadd.f32 %v1408_v61, %v1337_v1  ;;  %v1509_v32 = vmul.f32 %v4412_v26, %v1473_v46  ;;  %3491 = vrcp.f32 %v1901_v28 }
 0x1ac   : > { %5705 = vst [vmem:[#allocation75_spill] sm:$0xff] %v4900_v31  ;;  %v2373_v59 = vmul.f32 1.442695, %v2317_v40  ;;  %v1032_v15 = vadd.f32 %v1000_v11, %v931_v8  ;;  %v1203_v42 = vmul.f32 %v4402_v14, %v4877_v24  ;;  %v1610_v43 = vmul.f32 %v4419_v10, %v1574_v63  ;;  %v1371_v8 = vld [vmem:[#allocation2 + $0x170] sm:$0xff] }
 0x1ad   : > { %5706 = vst [vmem:[#allocation76_spill] sm:$0xff] %v4903_v9  ;;  %v4910_v48 = vpop.eup %3483  ;;  %2631 = vrot.lane.b32.xlu1 %v4903_v9, %s3557_s11  ;;  %v1541_v34 = vadd.f32 %v1509_v32, %v1440_v7  ;;  %v801_v1 = vmul.f32 %v4363_v18, %v4815_v39  ;;  %v902_v45 = vmul.f32 %v4370_v30, %v4840_v12  ;;  %v1900_v11 = vadd.f32 1.0, %v1868_v36 }
 0x1ae   : > { %v4919_v62 = vpop.eup %3485  ;;  %v2284_v19 = vsub.f32 0.0, %v1836_v17  ;;  %v1134_v61 = vadd.f32 %v1102_v52, %v1032_v15  ;;  %v1003_v28 = vmul.f32 %v4383_v3, %v4835_v23  ;;  %v1839_v40 = vand.u32 2147483647, %v4900_v31 }
 0x1af   : > { %5707 = vst [vmem:[#allocation77_spill] sm:$0xff] %v4919_v62  ;;  %v1642_v22 = vadd.f32 %v1610_v43, %v1541_v34  ;;  %v934_v7 = vadd.f32 %v902_v45, %v801_v1  ;;  %v1105_v32 = vmul.f32 %v4392_v27, %v1372_v53  ;;  %3493 = vpow2.f32 %v2373_v59  ;;  %v1472_v53 = vld [vmem:[#allocation2 + $0x171] sm:$0xff] }
 0x1b0   : > { %v1235_v39 = vadd.f32 %v1203_v42, %v1134_v61  ;;  %v1304_v12 = vmul.f32 %v4435_v37, %v4870_v55  ;;  %v1407_v47 = vmul.f32 %v4444_v13, %v1371_v8  ;;  %v4929_v36 = vmul.f32 0.70710677, %v4903_v9  ;;  %v1374_v59 = vld [vmem:[#allocation2 + $0x198] sm:$0xff] }
 0x1b1   : > { %v4932_v52 = vadd.f32 %v4500_v49, %v1642_v22  ;;  %v1035_v23 = vadd.f32 %v1003_v28, %v934_v7  ;;  %v1206_v15 = vmul.f32 %v4402_v14, %v1473_v46  ;;  %3495 = vrcp.f32 %v1900_v11  ;;  %v1573_v9 = vld [vmem:[#allocation2 + $0x172] sm:$0xff] }
 0x1b2   : > { %5708 = vst [vmem:[#allocation78_spill] sm:$0xff] %v4929_v36  ;;  %v2316_v34 = vmul.f32 %v2284_v19, %v1836_v17  ;;  %v1336_v43 = vadd.f32 %v1304_v12, %v1235_v39  ;;  %v1871_v1 = vmul.f32 0.3275911, %v1839_v40  ;;  %v2287_v45 = vsub.f32 0.0, %v1839_v40  ;;  %v1475_v46 = vld [vmem:[#allocation2 + $0x199] sm:$0xff] }
 0x1b3   : > { %v4935_v42 = vpop.eup %3487  ;;  %2637 = vrot.lane.b32.xlu0 %v4932_v52, %s3557_s11  ;;  %v1508_v61 = vmul.f32 %v4412_v26, %v1472_v53  ;;  %v1137_v22 = vadd.f32 %v1105_v32, %v1035_v23  ;;  %v800_v17 = vmul.f32 %v4363_v18, %v4859_v0  ;;  %v901_v11 = vmul.f32 %v4370_v30, %v4877_v24 }
 0x1b4   : > { %v4940_v31 = vpop.eup %3489  ;;  %v1439_v28 = vadd.f32 %v1407_v47, %v1336_v43  ;;  %v1002_v19 = vmul.f32 %v4383_v3, %v4870_v55  ;;  %v1838_v7 = vand.u32 2147483647, %v4929_v36  ;;  %v1307_v12 = vmul.f32 %v4435_v37, %v1574_v63 }
 0x1b5   : > { %5709 = vst [vmem:[#allocation79_spill] sm:$0xff] %v4940_v31  ;;  %v1238_v39 = vadd.f32 %v1206_v15, %v1137_v22  ;;  %v1410_v32 = vmul.f32 %v4444_v13, %v1374_v59  ;;  %v4951_v23 = vpop.eup %3491  ;;  %v1609_v43 = vmul.f32 %v4419_v10, %v1573_v9  ;;  %v1576_v31 = vld [vmem:[#allocation2 + $0x19a] sm:$0xff]  ;;  %v933_v18 = vadd.f32 %v901_v11, %v800_v17 }
 0x1b6   : > { %v1540_v47 = vadd.f32 %v1508_v61, %v1439_v28  ;;  %v1104_v0 = vmul.f32 %v4392_v27, %v1371_v8  ;;  %v2371_v30 = vmul.f32 1.442695, %v2316_v34  ;;  %v4956_v24 = vmul.f32 0.70710677, %v4932_v52 }
 0x1b7   : > { %v1339_v3 = vadd.f32 %v1307_v12, %v1238_v39  ;;  %v1511_v55 = vmul.f32 %v4412_v26, %v1475_v46  ;;  %v1903_v15 = vadd.f32 1.0, %v1871_v1  ;;  %v1034_v22 = vadd.f32 %v1002_v19, %v933_v18  ;;  %v1373_v39 = vld [vmem:[#allocation2 + $0x188] sm:$0xff]  ;;  %v3538_v26 = vld [vmem:[%s5551_s3] ss:$0 sm:$0xff] }
 0x1b8   : > { %v1641_v63 = vadd.f32 %v1609_v43, %v1540_v47  ;;  %v1205_v59 = vmul.f32 %v4402_v14, %v1472_v53  ;;  %v2319_v36 = vmul.f32 %v2287_v45, %v1839_v40  ;;  %v1870_v61 = vmul.f32 0.3275911, %v1838_v7 }
 0x1b9   : > { %v1442_v28 = vadd.f32 %v1410_v32, %v1339_v3  ;;  %v1612_v62 = vmul.f32 %v4419_v10, %v1576_v31  ;;  %v4961_v17 = vpop.eup %3493  ;;  %v2286_v27 = vsub.f32 0.0, %v1838_v7  ;;  %v1136_v11 = vadd.f32 %v1104_v0, %v1034_v22  ;;  %v3539_v10 = vld [vmem:[%s5551_s3 + $0x1] ss:$0 sm:$0xff]  ;;  %v1474_v32 = vld [vmem:[#allocation2 + $0x189] sm:$0xff]  ;;  %v3541_v0 = vld [vmem:[%s5551_s3 + $0x4] ss:$0 sm:$0xff] }
 0x1ba   : > { %v4964_v34 = vadd.f32 %v4500_v49, %v1641_v63  ;;  %v802_v1 = vmul.f32 %v3538_v26, %v1371_v8  ;;  %v1841_v14 = vand.u32 2147483647, %v4956_v24  ;;  %v1306_v45 = vmul.f32 %v4435_v37, %v1573_v9  ;;  %v3540_v37 = vld [vmem:[%s5551_s3 + $0x2] ss:$0 sm:$0xff] }
 0x1bb   : > { %v1543_v40 = vadd.f32 %v1511_v55, %v1442_v28  ;;  %v903_v31 = vmul.f32 %v3539_v10, %v1472_v53  ;;  %v4974_v46 = vpop.eup %3495  ;;  %v1237_v12 = vadd.f32 %v1205_v59, %v1136_v11  ;;  %v1409_v8 = vmul.f32 %v4444_v13, %v1373_v39  ;;  %v1575_v59 = vld [vmem:[#allocation2 + $0x18a] sm:$0xff]  ;;  %v1476_v10 = vld [vmem:[#allocation2 + $0x1a1] sm:$0xff] }
 0x1bc   : > { %v4977_v19 = vmul.f32 0.70710677, %v4964_v34  ;;  %2635 = vrot.lane.b32.xlu1 %v4964_v34, %s3557_s11  ;;  %v1004_v47 = vmul.f32 %v3540_v37, %v1573_v9  ;;  %v2377_v43 = vmul.f32 1.442695, %v2319_v36  ;;  %v1106_v3 = vmul.f32 %v3541_v0, %v1373_v39  ;;  %v3542_v9 = vld [vmem:[%s5551_s3 + $0x5] ss:$0 sm:$0xff] }
 0x1bd   : > { %v1644_v18 = vadd.f32 %v1612_v62, %v1543_v40  ;;  %v935_v53 = vadd.f32 %v903_v31, %v802_v1  ;;  %3497 = vpow2.f32 %v2371_v30  ;;  %v1902_v55 = vadd.f32 1.0, %v1870_v61  ;;  %v3544_v40 = vld [vmem:[%s5551_s3 + $0xa] ss:$0 sm:$0xff] }
 0x1be   : > { %v2318_v63 = vmul.f32 %v2286_v27, %v1838_v7  ;;  %v1338_v22 = vadd.f32 %v1306_v45, %v1237_v12  ;;  %3499 = vrcp.f32 %v1903_v15  ;;  %v1207_v62 = vmul.f32 %v3542_v9, %v1474_v32  ;;  %v3543_v7 = vld [vmem:[%s5551_s3 + $0x9] ss:$0 sm:$0xff]  ;;  %v1375_v15 = vld [vmem:[#allocation2 + $0x1a0] sm:$0xff] }
 0x1bf   : > { %v4989_v13 = vadd.f32 %v4500_v49, %v1644_v18  ;;  %v1036_v28 = vadd.f32 %v1004_v47, %v935_v53  ;;  %v2289_v36 = vsub.f32 0.0, %v1841_v14  ;;  %v1840_v11 = vand.u32 2147483647, %v4977_v19  ;;  %v3545_v12 = vld [vmem:[%s5551_s3 + $0x6] ss:$0 sm:$0xff] }
 0x1c0   : > { %v1441_v26 = vadd.f32 %v1409_v8, %v1338_v22  ;;  %v1510_v30 = vmul.f32 %v3543_v7, %v1474_v32  ;;  %3501 = vpow2.f32 %v2377_v43  ;;  %v1873_v61 = vmul.f32 0.3275911, %v1841_v14  ;;  %v3546_v32 = vld [vmem:[%s5551_s3 + $0x8] ss:$0 sm:$0xff] }
 0x1c1   : > { %2641 = vrot.lane.b32.xlu0 %v4989_v13, %s3557_s11  ;;  %v1138_v27 = vadd.f32 %v1106_v3, %v1036_v28  ;;  %3503 = vrcp.f32 %v1902_v55  ;;  %v2375_v39 = vmul.f32 1.442695, %v2318_v63  ;;  %v1611_v45 = vmul.f32 %v3544_v40, %v1575_v59  ;;  %v1577_v3 = vld [vmem:[#allocation2 + $0x1a2] sm:$0xff] }
 0x1c2   : > { %v1542_v1 = vadd.f32 %v1510_v30, %v1441_v26  ;;  %v1308_v8 = vmul.f32 %v3545_v12, %v1575_v59  ;;  %v1411_v37 = vmul.f32 %v3546_v32, %v1375_v15  ;;  %v1973_v47 = vmul.f32 1.0614054, %v3986_v56 }
 0x1c3   : > { %v1239_v31 = vadd.f32 %v1207_v62, %v1138_v27  ;;  %v2321_v43 = vmul.f32 %v2289_v36, %v1841_v14  ;;  %v2288_v18 = vsub.f32 0.0, %v1840_v11  ;;  %v5011_v53 = vmul.f32 0.70710677, %v4989_v13 }
 0x1c4   : > { %v1643_v0 = vadd.f32 %v1611_v45, %v1542_v1  ;;  %v1905_v55 = vadd.f32 1.0, %v1873_v61  ;;  %v1512_v22 = vmul.f32 %v3543_v7, %v1476_v10  ;;  %v2005_v28 = vadd.f32 -1.4531521, %v1973_v47 }
 0x1c5   : > { %v1340_v63 = vadd.f32 %v1308_v8, %v1239_v31  ;;  %3505 = vpow2.f32 %v2375_v39  ;;  %v1974_v9 = vmul.f32 1.0614054, %v4003_v4  ;;  %v1872_v62 = vmul.f32 0.3275911, %v1840_v11 }
 0x1c6   : > { %v5014_v59 = vadd.f32 %v4500_v49, %v1643_v0  ;;  %v1613_v30 = vmul.f32 %v3544_v40, %v1577_v3  ;;  %v2037_v14 = vmul.f32 %v3986_v56, %v2005_v28  ;;  %v2381_v15 = vmul.f32 1.442695, %v2321_v43  ;;  %v3547_v0 = vld [vmem:[%s5552_s4] ss:$0 sm:$0xff] }
 0x1c7   : > { %v1443_v26 = vadd.f32 %v1411_v37, %v1340_v63  ;;  %v5018_v36 = vpop.eup %3497  ;;  %v2320_v27 = vmul.f32 %v2288_v18, %v1840_v11  ;;  %v1843_v61 = vand.u32 2147483647, %v5011_v53  ;;  %v2006_v7 = vadd.f32 -1.4531521, %v1974_v9 }
 0x1c8   : > { %2639 = vrot.lane.b32.xlu1 %v5014_v59, %s3557_s11  ;;  %v5023_v39 = vpop.eup %3499  ;;  %3507 = vrcp.f32 %v1905_v55  ;;  %v2069_v1 = vadd.f32 1.4214138, %v2037_v14  ;;  %vm1749_vm4 = vcmp.ge.f32.partialorder %v3909_v58, 0.0  ;;  %v1975_v45 = vmul.f32 1.0614054, %v4048_v38 }
 0x1c9   : > { %v1544_v49 = vadd.f32 %v1512_v22, %v1443_v26  ;;  %v2038_v40 = vmul.f32 %v4003_v4, %v2006_v7  ;;  %v1904_v11 = vadd.f32 1.0, %v1872_v62  ;;  %v5031_v31 = vmul.f32 0.70710677, %v5014_v59 }
 0x1ca   : > { %v5028_v10 = vpop.eup %3501  ;;  %v2101_v8 = vmul.f32 %v3986_v56, %v2069_v1  ;;  %3509 = vpow2.f32 %v2381_v15  ;;  %v2379_v37 = vmul.f32 1.442695, %v2320_v27  ;;  %v1875_v47 = vmul.f32 0.3275911, %v1843_v61 }
 0x1cb   : > { %v1645_v12 = vadd.f32 %v1613_v30, %v1544_v49  ;;  %v5034_v32 = vpop.eup %3503  ;;  %v2070_v43 = vadd.f32 1.4214138, %v2038_v40  ;;  %v2291_v18 = vsub.f32 0.0, %v1843_v61  ;;  %v2007_v63 = vadd.f32 -1.4531521, %v1975_v45 }
 0x1cc   : > { %v2133_v55 = vadd.f32 -0.28449672, %v2101_v8  ;;  %v5042_v22 = vmul.f32 0.5, %v3893_v51  ;;  %v5629_v28 = vmov -1.0   ;;  %vm1750_vm5 = vcmp.ge.f32.partialorder %v3919_v5, 0.0 }
 0x1cd   : > { %v5039_v3 = vadd.f32 %v3547_v0, %v1645_v12  ;;  %v1781_v9 = vsel %vm1749_vm4, 1.0, %v5629_v28  ;;  %v2102_v62 = vmul.f32 %v4003_v4, %v2070_v43  ;;  %v1842_v26 = vand.u32 2147483647, %v5031_v31 }
 0x1ce   : > { %v2165_v30 = vmul.f32 %v3986_v56, %v2133_v55  ;;  %v2039_v14 = vmul.f32 %v4048_v38, %v2007_v63  ;;  %v1977_v51 = vmul.f32 1.0614054, %v4108_v6  ;;  %3511 = vrcp.f32 %v1904_v11 }
 0x1cf   : > { %5710 = vst [vmem:[#allocation80_spill] sm:$0xff] %v5039_v3  ;;  %2643 = vrot.lane.b32.xlu1 %v5039_v3, %s3557_s11  ;;  %v5055_v15 = vpop.eup %3505  ;;  %v1907_v58 = vadd.f32 1.0, %v1875_v47  ;;  %v5058_v27 = vmul.f32 0.5, %v3897_v54  ;;  %v2134_v7 = vadd.f32 -0.28449672, %v2102_v62  ;;  %3513 = vpow2.f32 %v2379_v37 }
 0x1d0   : > { %v2323_v49 = vmul.f32 %v2291_v18, %v1843_v61  ;;  %v2197_v1 = vadd.f32 0.2548296, %v2165_v30  ;;  %v2071_v40 = vadd.f32 1.4214138, %v2039_v14  ;;  %v1782_v45 = vsel %vm1750_vm5, 1.0, %v5629_v28 }
 0x1d1   : > { %v2166_v12 = vmul.f32 %v4003_v4, %v2134_v7  ;;  %v5065_v8 = vmul.f32 0.5, %v3936_v25  ;;  %v2009_v43 = vadd.f32 -1.4531521, %v1977_v51  ;;  %v2290_v47 = vsub.f32 0.0, %v1842_v26 }
 0x1d2   : > { %v5067_v11 = vpop.eup %3507  ;;  %v2229_v54 = vmul.f32 %v3986_v56, %v2197_v1  ;;  %vm1751_vm6 = vcmp.ge.f32.partialorder %v3944_v44, 0.0  ;;  %v2103_v61 = vmul.f32 %v4048_v38, %v2071_v40  ;;  %3515 = vrcp.f32 %v1907_v58 }
 0x1d3   : > { %v2198_v37 = vadd.f32 0.2548296, %v2166_v12  ;;  %v2041_v5 = vmul.f32 %v4108_v6, %v2009_v43  ;;  %v1976_v18 = vmul.f32 1.0614054, %v4128_v20  ;;  %v5074_v0 = vmul.f32 1.442695, %v2323_v49  ;;  %v2582_v12 = vpop.permute.xlu0 %2581 }
 0x1d4   : > { %v1874_v25 = vmul.f32 0.3275911, %v1842_v26  ;;  %v2389_v55 = vmul.f32 %v4014_v29, %v2229_v54  ;;  %v2135_v63 = vadd.f32 -0.28449672, %v2103_v61  ;;  %v5077_v62 = vpop.eup %3509  ;;  %v1783_v44 = vsel %vm1751_vm6, 1.0, %v5629_v28  ;;  %v5712_v61 = vld [vmem:[#allocation3_spill] sm:$0xff] }
 0x1d5   : > { %v2230_v56 = vmul.f32 %v4003_v4, %v2198_v37  ;;  %v2073_v30 = vadd.f32 1.4214138, %v2041_v5  ;;  %v2008_v14 = vadd.f32 -1.4531521, %v1976_v18  ;;  %v2322_v51 = vmul.f32 %v2290_v47, %v1842_v26 }
 0x1d6   : > { %v2421_v58 = vsub.f32 1.0, %v2389_v55  ;;  %v2167_v7 = vmul.f32 %v4048_v38, %v2135_v63  ;;  %vm1753_vm8 = vcmp.ge.f32.partialorder %v3965_v16, 0.0  ;;  %v5084_v49 = vmul.f32 0.70710677, %v5039_v3 }
 0x1d7   : > { %v2390_v29 = vmul.f32 %v4028_v50, %v2230_v56  ;;  %v2105_v1 = vmul.f32 %v4108_v6, %v2073_v30  ;;  %v2040_v40 = vmul.f32 %v4128_v20, %v2008_v14  ;;  %v1906_v4 = vadd.f32 1.0, %v1874_v25  ;;  %v2584_v3 = vpop.permute.xlu0 %2583 }
 0x1d8   : > { %5711 = vst [vmem:[#allocation81_spill] sm:$0xff] %v5084_v49  ;;  %v2453_v43 = vmul.f32 %v2421_v58, %v1781_v9  ;;  %v2199_v54 = vadd.f32 0.2548296, %v2167_v7  ;;  %v5090_v26 = vmul.f32 0.5, %v5712_v61  ;;  %v5092_v47 = vpop.eup %3511  ;;  %v1785_v16 = vsel %vm1753_vm8, 1.0, %v5629_v28 }
 0x1d9   : > { %v2422_v37 = vsub.f32 1.0, %v2390_v29  ;;  %v2137_v5 = vadd.f32 -0.28449672, %v2105_v1  ;;  %v2072_v18 = vadd.f32 1.4214138, %v2040_v40  ;;  %v5095_v55 = vpop.eup %3513  ;;  %v5713_v29 = vld [vmem:[#allocation6_spill] sm:$0xff]  ;;  %3517 = vrcp.f32 %v1906_v4 }
 0x1da   : > { %v5097_v50 = vmul.f32 1.442695, %v2322_v51  ;;  %v2485_v63 = vadd.f32 1.0, %v2453_v43  ;;  %v2231_v25 = vmul.f32 %v4048_v38, %v2199_v54  ;;  %v1979_v9 = vmul.f32 1.0614054, %v4213_v60 }
 0x1db   : > { %v5102_v56 = vand.u32 2147483647, %v5084_v49  ;;  %v2454_v30 = vmul.f32 %v2422_v37, %v1782_v45  ;;  %v2169_v14 = vmul.f32 %v4108_v6, %v2137_v5  ;;  %v2104_v58 = vmul.f32 %v4128_v20, %v2072_v18  ;;  %v5748_v49 = vld [vmem:[#allocation42_spill] sm:$0xff] }
 0x1dc   : > { %v2517_v7 = vmul.f32 %v2485_v63, %v5042_v22  ;;  %v2391_v1 = vmul.f32 %v5713_v29, %v2231_v25  ;;  %v2011_v40 = vadd.f32 -1.4531521, %v1979_v9  ;;  %v1978_v51 = vmul.f32 1.0614054, %v4256_v41  ;;  %v5109_v43 = vpop.eup %3515  ;;  %v5714_v63 = vld [vmem:[#allocation4_spill] sm:$0xff] }
 0x1dd   : > { %v2486_v38 = vadd.f32 1.0, %v2454_v30  ;;  %v2201_v54 = vadd.f32 0.2548296, %v2169_v14  ;;  %v2136_v61 = vadd.f32 -0.28449672, %v2104_v58  ;;  %v1688_v25 = vmul.f32 0.5, %v5714_v63 }
 0x1de   : > { %v2677_v28 = vmul.f32 %v2582_v12, %v2517_v7  ;;  %v2423_v45 = vsub.f32 1.0, %v2391_v1  ;;  %v2043_v37 = vmul.f32 %v4213_v60, %v2011_v40  ;;  %v2010_v5 = vadd.f32 -1.4531521, %v1978_v51  ;;  %v5715_v30 = vld [vmem:[#allocation5_spill] sm:$0xff]  ;;  %v5716_v7 = vld [vmem:[#allocation10_spill] sm:$0xff] }
 0x1df   : > { %v2518_v18 = vmul.f32 %v2486_v38, %v5058_v27  ;;  %v2233_v22 = vmul.f32 %v4108_v6, %v2201_v54  ;;  %v2168_v9 = vmul.f32 %v4128_v20, %v2136_v61  ;;  %vm1752_vm9 = vcmp.ge.f32.partialorder %v5715_v30, 0.0  ;;  %v5718_v30 = vld [vmem:[#allocation8_spill] sm:$0xff] }
 0x1e0   : > { %3340 = vmatprep.mubr.msk.f32.mxu1 %vm2717_vm7, %v2677_v28  ;;  %v2455_v4 = vmul.f32 %v2423_v45, %v1783_v44  ;;  %v2075_v14 = vadd.f32 1.4214138, %v2043_v37  ;;  %v2042_v12 = vmul.f32 %v4256_v41, %v2010_v5  ;;  %v1981_v27 = vmul.f32 1.0614054, %v4284_v57  ;;  %v2586_v44 = vpop.permute.xlu1 %2585 }
 0x1e1   : > { %v2678_v58 = vmul.f32 %v2584_v3, %v2518_v18  ;;  %v2393_v29 = vmul.f32 %v5716_v7, %v2233_v22  ;;  %v2200_v1 = vadd.f32 0.2548296, %v2168_v9  ;;  %v1876_v6 = vmul.f32 0.3275911, %v5102_v56 }
 0x1e2   : > { %v2487_v40 = vadd.f32 1.0, %v2455_v4  ;;  %v2107_v51 = vmul.f32 %v4213_v60, %v2075_v14  ;;  %v2074_v38 = vadd.f32 1.4214138, %v2042_v12  ;;  %v2013_v3 = vadd.f32 -1.4531521, %v1981_v27 }
 0x1e3   : > { %3341 = vmatmul.mubr.msk.f32.vlgmr.msra.gmra.mrb[0].mxu1 %vm2717_vm7, %v2678_v58  ;;  %v2425_v54 = vsub.f32 1.0, %v2393_v29  ;;  %v2232_v61 = vmul.f32 %v4128_v20, %v2200_v1  ;;  %v5717_v37 = vmov -1.0   ;;  %v1980_v14 = vmul.f32 1.0614054, %v4311_v33 }
 0x1e4   : > { %v2519_v45 = vmul.f32 %v2487_v40, %v5065_v8  ;;  %v1784_v5 = vsel %vm1752_vm9, 1.0, %v5717_v37  ;;  %v2139_v18 = vadd.f32 -0.28449672, %v2107_v51  ;;  %v2106_v22 = vmul.f32 %v4256_v41, %v2074_v38  ;;  %v5135_v8 = vpop.eup %3517  ;;  %v5719_v51 = vld [vmem:[#allocation29_spill] sm:$0xff] }
 0x1e5   : > { %v2457_v63 = vmul.f32 %v2425_v54, %v1785_v16  ;;  %v2392_v9 = vmul.f32 %v4180_v2, %v2232_v61  ;;  %v2045_v4 = vmul.f32 %v4284_v57, %v2013_v3  ;;  %v1908_v12 = vadd.f32 1.0, %v1876_v6 }
 0x1e6   : > { %v2679_v58 = vmul.f32 %v2586_v44, %v2519_v45  ;;  %v2171_v20 = vmul.f32 %v4213_v60, %v2139_v18  ;;  %v2138_v7 = vadd.f32 -0.28449672, %v2106_v22  ;;  %vm1755_vm10 = vcmp.ge.f32.partialorder %v5718_v30, 0.0  ;;  %v5720_v44 = vld [vmem:[#allocation7_spill] sm:$0xff] }
 0x1e7   : > { %v2424_v29 = vsub.f32 1.0, %v2392_v9  ;;  %v2077_v1 = vadd.f32 1.4214138, %v2045_v4  ;;  %v2012_v27 = vadd.f32 -1.4531521, %v1980_v14  ;;  %v2489_v40 = vadd.f32 1.0, %v2457_v63  ;;  %v2590_v63 = vpop.permute.xlu0 %2589 }
 0x1e8   : > { %3343 = vmatprep.mubr.msk.f32.mxu1 %vm2717_vm7, %v2679_v58  ;;  %v2203_v2 = vadd.f32 0.2548296, %v2171_v20  ;;  %v2170_v16 = vmul.f32 %v4256_v41, %v2138_v7  ;;  %v1983_v38 = vmul.f32 1.0614054, %v5719_v51  ;;  %v1691_v54 = vmul.f32 0.5, %v5720_v44  ;;  %v2588_v20 = vpop.permute.xlu1 %2587  ;;  %v5721_v7 = vld [vmem:[#allocation18_spill] sm:$0xff] }
 0x1e9   : > { %v2456_v6 = vmul.f32 %v2424_v29, %v1784_v5  ;;  %v2109_v61 = vmul.f32 %v4284_v57, %v2077_v1  ;;  %v2044_v3 = vmul.f32 %v4311_v33, %v2012_v27  ;;  %3519 = vrcp.f32 %v1908_v12  ;;  %v5722_v27 = vld [vmem:[#allocation11_spill] sm:$0xff] }
 0x1ea   : > { %v2235_v45 = vmul.f32 %v4213_v60, %v2203_v2  ;;  %v2202_v18 = vadd.f32 0.2548296, %v2170_v16  ;;  %v2015_v22 = vadd.f32 -1.4531521, %v1983_v38  ;;  %v1787_v4 = vsel %vm1755_vm10, 1.0, %v5717_v37 }
 0x1eb   : > { %v2488_v9 = vadd.f32 1.0, %v2456_v6  ;;  %v2141_v14 = vadd.f32 -0.28449672, %v2109_v61  ;;  %v2076_v58 = vadd.f32 1.4214138, %v2044_v3  ;;  %v2521_v5 = vmul.f32 %v2489_v40, %v5090_v26  ;;  %v5723_v6 = vld [vmem:[#allocation21_spill] sm:$0xff] }
 0x1ec   : > { %v2395_v29 = vmul.f32 %v5721_v7, %v2235_v45  ;;  %v2234_v1 = vmul.f32 %v4256_v41, %v2202_v18  ;;  %v2047_v12 = vmul.f32 %v5719_v51, %v2015_v22  ;;  %vm1754_vm11 = vcmp.ge.f32.partialorder %v5722_v27, 0.0 }
 0x1ed   : > { %v2520_v60 = vmul.f32 %v2488_v9, %v1688_v25  ;;  %v2173_v2 = vmul.f32 %v4284_v57, %v2141_v14  ;;  %v2108_v16 = vmul.f32 %v4311_v33, %v2076_v58  ;;  %v2681_v30 = vmul.f32 %v2590_v63, %v2521_v5  ;;  %v5724_v9 = vld [vmem:[#allocation13_spill] sm:$0xff] }
 0x1ee   : > { %v2427_v38 = vsub.f32 1.0, %v2395_v29  ;;  %v2394_v44 = vmul.f32 %v5723_v6, %v2234_v1  ;;  %v2079_v61 = vadd.f32 1.4214138, %v2047_v12  ;;  %v1982_v45 = vmul.f32 1.0614054, %v4475_v21  ;;  %v2594_v1 = vpop.permute.xlu0 %2593  ;;  %v5726_v12 = vld [vmem:[#allocation22_spill] sm:$0xff] }
 0x1ef   : > { %v2680_v26 = vmul.f32 %v2588_v20, %v2520_v60  ;;  %v2205_v40 = vadd.f32 0.2548296, %v2173_v2  ;;  %v2140_v3 = vadd.f32 -0.28449672, %v2108_v16  ;;  %v1786_v18 = vsel %vm1754_vm11, 1.0, %v5717_v37  ;;  %v5725_v20 = vld [vmem:[#allocation9_spill] sm:$0xff] }
 0x1f0   : > { %v2459_v41 = vmul.f32 %v2427_v38, %v1787_v4  ;;  %v2426_v25 = vsub.f32 1.0, %v2394_v44  ;;  %v2111_v22 = vmul.f32 %v5719_v51, %v2079_v61  ;;  %vm1757_vm12 = vcmp.ge.f32.partialorder %v5724_v9, 0.0  ;;  %v5727_v16 = vld [vmem:[#allocation36_spill] sm:$0xff] }
 0x1f1   : > { %3344 = vmatmul.mubr.msk.f32.gmra.mrb[2].mxu1 %vm2717_vm7, %v2680_v26  ;;  %v2237_v63 = vmul.f32 %v4284_v57, %v2205_v40  ;;  %v2172_v14 = vmul.f32 %v4311_v33, %v2140_v3  ;;  %v2014_v58 = vadd.f32 -1.4531521, %v1982_v45  ;;  %v1690_v7 = vmul.f32 0.5, %v5725_v20 }
 0x1f2   : > { %v2491_v5 = vadd.f32 1.0, %v2459_v41  ;;  %v2458_v29 = vmul.f32 %v2426_v25, %v1786_v18  ;;  %3346 = vmatprep.mubr.msk.f32.mxu1 %vm2717_vm7, %v2681_v30  ;;  %v2143_v4 = vadd.f32 -0.28449672, %v2111_v22  ;;  %v1985_v38 = vmul.f32 1.0614054, %v5727_v16  ;;  %v2592_v30 = vpop.permute.xlu1 %2591  ;;  %v5728_v22 = vld [vmem:[#allocation15_spill] sm:$0xff] }
 0x1f3   : > { %v2397_v60 = vmul.f32 %v5726_v12, %v2237_v63  ;;  %v2204_v27 = vadd.f32 0.2548296, %v2172_v14  ;;  %v2046_v2 = vmul.f32 %v4475_v21, %v2014_v58  ;;  %v5168_v6 = vpop.eup %3519  ;;  %v1789_v61 = vsel %vm1757_vm12, 1.0, %v5717_v37 }
 0x1f4   : > { %v2523_v57 = vmul.f32 %v2491_v5, %v1691_v54  ;;  %v2490_v44 = vadd.f32 1.0, %v2458_v29  ;;  %v2175_v26 = vmul.f32 %v5719_v51, %v2143_v4  ;;  %v2017_v41 = vadd.f32 -1.4531521, %v1985_v38  ;;  %v5729_v54 = vld [vmem:[#allocation25_spill] sm:$0xff]  ;;  %v5730_v29 = vld [vmem:[#allocation12_spill] sm:$0xff] }
 0x1f5   : > { %v2429_v40 = vsub.f32 1.0, %v2397_v60  ;;  %v2236_v3 = vmul.f32 %v4311_v33, %v2204_v27  ;;  %v2078_v45 = vadd.f32 1.4214138, %v2046_v2  ;;  %vm1756_vm13 = vcmp.ge.f32.partialorder %v5728_v22, 0.0  ;;  %v5731_v33 = vld [vmem:[#allocation40_spill] sm:$0xff] }
 0x1f6   : > { %v2683_v18 = vmul.f32 %v2594_v1, %v2523_v57  ;;  %v2522_v25 = vmul.f32 %v2490_v44, %v1690_v7  ;;  %v2207_v63 = vadd.f32 0.2548296, %v2175_v26  ;;  %v2049_v9 = vmul.f32 %v5727_v16, %v2017_v41  ;;  %v5732_v57 = vld [vmem:[#allocation17_spill] sm:$0xff]  ;;  %v5733_v44 = vld [vmem:[#allocation32_spill] sm:$0xff] }
 0x1f7   : > { %v2461_v14 = vmul.f32 %v2429_v40, %v1789_v61  ;;  %v2396_v58 = vmul.f32 %v5729_v54, %v2236_v3  ;;  %v2110_v5 = vmul.f32 %v4475_v21, %v2078_v45  ;;  %v1693_v4 = vmul.f32 0.5, %v5730_v29  ;;  %v5735_v41 = vld [vmem:[#allocation16_spill] sm:$0xff] }
 0x1f8   : > { %v2682_v20 = vmul.f32 %v2592_v30, %v2522_v25  ;;  %v2239_v12 = vmul.f32 %v5719_v51, %v2207_v63  ;;  %v1984_v60 = vmul.f32 1.0614054, %v5731_v33  ;;  %v1788_v1 = vsel %vm1756_vm13, 1.0, %v5717_v37  ;;  %v5734_v30 = vld [vmem:[#allocation14_spill] sm:$0xff] }
 0x1f9   : > { %v2428_v7 = vsub.f32 1.0, %v2396_v58  ;;  %v2142_v27 = vadd.f32 -0.28449672, %v2110_v5  ;;  %v2081_v2 = vadd.f32 1.4214138, %v2049_v9  ;;  %v2493_v38 = vadd.f32 1.0, %v2461_v14  ;;  %v2598_v58 = vpop.permute.xlu0 %2597 }
 0x1fa   : > { %3347 = vmatmul.mubr.msk.f32.gmra.mrb[4].mxu1 %vm2717_vm7, %v2682_v20  ;;  %vm1759_vm14 = vcmp.ge.f32.partialorder %v5732_v57, 0.0  ;;  %v2399_v61 = vmul.f32 %v5733_v44, %v2239_v12  ;;  %v2016_v26 = vadd.f32 -1.4531521, %v1984_v60  ;;  %v1692_v40 = vmul.f32 0.5, %v5734_v30  ;;  %v5736_v14 = vld [vmem:[#allocation43_spill] sm:$0xff]  ;;  %v2596_v60 = vpop.permute.xlu1 %2595  ;;  %v5738_v57 = vld [vmem:[#allocation24_spill] sm:$0xff] }
 0x1fb   : > { %v2460_v3 = vmul.f32 %v2428_v7, %v1788_v1  ;;  %3349 = vmatprep.mubr.msk.f32.mxu1 %vm2717_vm7, %v2683_v18  ;;  %v2174_v51 = vmul.f32 %v4475_v21, %v2142_v27  ;;  %v2113_v45 = vmul.f32 %v5727_v16, %v2081_v2  ;;  %v1695_v25 = vmul.f32 0.5, %v5735_v41  ;;  %v5737_v18 = vld [vmem:[#allocation20_spill] sm:$0xff] }
 0x1fc   : > { %v2431_v22 = vsub.f32 1.0, %v2399_v61  ;;  %v2048_v63 = vmul.f32 %v5731_v33, %v2016_v26  ;;  %v1987_v54 = vmul.f32 1.0614054, %v5736_v14  ;;  %v1791_v9 = vsel %vm1759_vm14, 1.0, %v5717_v37  ;;  %v5740_v41 = vld [vmem:[#allocation48_spill] sm:$0xff] }
 0x1fd   : > { %v2492_v5 = vadd.f32 1.0, %v2460_v3  ;;  %v2206_v20 = vadd.f32 0.2548296, %v2174_v51  ;;  %v2145_v29 = vadd.f32 -0.28449672, %v2113_v45  ;;  %v2525_v12 = vmul.f32 %v2493_v38, %v1693_v4  ;;  %v5739_v4 = vld [vmem:[#allocation35_spill] sm:$0xff] }
 0x1fe   : > { %vm1758_vm15 = vcmp.ge.f32.partialorder %v5737_v18, 0.0  ;;  %v2080_v1 = vadd.f32 1.4214138, %v2048_v63  ;;  %v2019_v7 = vadd.f32 -1.4531521, %v1987_v54  ;;  %vm1761_vm0 = vcmp.ge.f32.partialorder %v5738_v57, 0.0 }
 0x1ff   : > { %v2524_v27 = vmul.f32 %v2492_v5, %v1692_v40  ;;  %v2238_v2 = vmul.f32 %v4475_v21, %v2206_v20  ;;  %v2177_v44 = vmul.f32 %v5727_v16, %v2145_v29  ;;  %v2685_v61 = vmul.f32 %v2598_v58, %v2525_v12  ;;  %v5741_v54 = vld [vmem:[#allocation19_spill] sm:$0xff] }
 0x200   : > { %v2463_v26 = vmul.f32 %v2431_v22, %v1791_v9  ;;  %v2112_v30 = vmul.f32 %v5731_v33, %v2080_v1  ;;  %v2051_v3 = vmul.f32 %v5736_v14, %v2019_v7  ;;  %v1986_v63 = vmul.f32 1.0614054, %v5740_v41  ;;  %v5742_v58 = vld [vmem:[#allocation23_spill] sm:$0xff] }
 0x201   : > { %v2684_v51 = vmul.f32 %v2596_v60, %v2524_v27  ;;  %v2398_v38 = vmul.f32 %v5739_v4, %v2238_v2  ;;  %v2209_v45 = vadd.f32 0.2548296, %v2177_v44  ;;  %v1694_v40 = vmul.f32 0.5, %v5741_v54  ;;  %v5743_v2 = vld [vmem:[#allocation39_spill] sm:$0xff] }
 0x202   : > { %v1790_v21 = vsel %vm1758_vm15, 1.0, %v5717_v37  ;;  %v2144_v5 = vadd.f32 -0.28449672, %v2112_v30  ;;  %v2083_v20 = vadd.f32 1.4214138, %v2051_v3  ;;  %v1697_v9 = vmul.f32 0.5, %v5742_v58 }
 0x203   : > { %3350 = vmatmul.mubr.msk.f32.gmra.mrb[6].mxu1 %vm2717_vm7, %v2684_v51  ;;  %v2430_v22 = vsub.f32 1.0, %v2398_v38  ;;  %v2241_v29 = vmul.f32 %v5727_v16, %v2209_v45  ;;  %v2018_v12 = vadd.f32 -1.4531521, %v1986_v63  ;;  %v2495_v60 = vadd.f32 1.0, %v2463_v26  ;;  %v5744_v3 = vld [vmem:[#allocation52_spill] sm:$0xff]  ;;  %v5745_v16 = vld [vmem:[#allocation26_spill] sm:$0xff]  ;;  %v2602_v45 = vpop.permute.xlu0 %2601 }
 0x204   : > { %3352 = vmatprep.mubr.msk.f32.mxu1 %vm2717_vm7, %v2685_v61  ;;  %v1793_v1 = vsel %vm1761_vm0, 1.0, %v5717_v37  ;;  %v2176_v18 = vmul.f32 %v5731_v33, %v2144_v5  ;;  %v2115_v7 = vmul.f32 %v5736_v14, %v2083_v20  ;;  %v1989_v51 = vmul.f32 1.0614054, %v5744_v3  ;;  %v5746_v26 = vld [vmem:[#allocation27_spill] sm:$0xff]  ;;  %v2600_v20 = vpop.permute.xlu1 %2599 }
 0x205   : > { %v2462_v27 = vmul.f32 %v2430_v22, %v1790_v21  ;;  %v2401_v44 = vmul.f32 %v5743_v2, %v2241_v29  ;;  %v2050_v30 = vmul.f32 %v5740_v41, %v2018_v12  ;;  %v1696_v4 = vmul.f32 0.5, %v5745_v16  ;;  %v5747_v29 = vld [vmem:[#allocation58_spill] sm:$0xff] }
 0x206   : > { %vm1760_vm2 = vcmp.ge.f32.partialorder %v5746_v26, 0.0  ;;  %v2208_v61 = vadd.f32 0.2548296, %v2176_v18  ;;  %v2147_v38 = vadd.f32 -0.28449672, %v2115_v7  ;;  %v2527_v58 = vmul.f32 %v2495_v60, %v1695_v25 }
 0x207   : > { %v2494_v57 = vadd.f32 1.0, %v2462_v27  ;;  %v2433_v63 = vsub.f32 1.0, %v2401_v44  ;;  %v2082_v54 = vadd.f32 1.4214138, %v2050_v30  ;;  %v2021_v5 = vadd.f32 -1.4531521, %v1989_v51 }
 0x208   : > { %v2240_v21 = vmul.f32 %v5731_v33, %v2208_v61  ;;  %v2179_v22 = vmul.f32 %v5736_v14, %v2147_v38  ;;  %v1988_v12 = vmul.f32 1.0614054, %v5747_v29  ;;  %v2687_v7 = vmul.f32 %v2602_v45, %v2527_v58  ;;  %v5749_v38 = vld [vmem:[#allocation30_spill] sm:$0xff] }
 0x209   : > { %v2526_v2 = vmul.f32 %v2494_v57, %v1694_v40  ;;  %v2465_v28 = vmul.f32 %v2433_v63, %v1793_v1  ;;  %v2114_v16 = vmul.f32 %v5740_v41, %v2082_v54  ;;  %v2053_v18 = vmul.f32 %v5744_v3, %v2021_v5  ;;  %v5751_v5 = vld [vmem:[#allocation45_spill] sm:$0xff] }
 0x20a   : > { %v2400_v27 = vmul.f32 %v5748_v49, %v2240_v21  ;;  %v2211_v44 = vadd.f32 0.2548296, %v2179_v22  ;;  %v2020_v30 = vadd.f32 -1.4531521, %v1988_v12  ;;  %v1792_v33 = vsel %vm1760_vm2, 1.0, %v5717_v37  ;;  %v5750_v49 = vld [vmem:[#allocation28_spill] sm:$0xff] }
 0x20b   : > { %v2686_v51 = vmul.f32 %v2600_v20, %v2526_v2  ;;  %v2146_v25 = vadd.f32 -0.28449672, %v2114_v16  ;;  %v2085_v60 = vadd.f32 1.4214138, %v2053_v18  ;;  %vm1763_vm3 = vcmp.ge.f32.partialorder %v5749_v38, 0.0  ;;  %v5752_v21 = vld [vmem:[#allocation61_spill] sm:$0xff]  ;;  %v2606_v16 = vpop.permute.xlu0 %2605 }
 0x20c   : > { %v2432_v61 = vsub.f32 1.0, %v2400_v27  ;;  %v2243_v40 = vmul.f32 %v5736_v14, %v2211_v44  ;;  %v2052_v1 = vmul.f32 %v5747_v29, %v2020_v30  ;;  %v2497_v45 = vadd.f32 1.0, %v2465_v28  ;;  %v5753_v12 = vld [vmem:[#allocation33_spill] sm:$0xff] }
 0x20d   : > { %3353 = vmatmul.mubr.msk.f32.gmra.mrb[8].mxu1 %vm2717_vm7, %v2686_v51  ;;  %v1699_v57 = vmul.f32 0.5, %v5750_v49  ;;  %v2178_v63 = vmul.f32 %v5740_v41, %v2146_v25  ;;  %v2117_v54 = vmul.f32 %v5744_v3, %v2085_v60  ;;  %v1991_v22 = vmul.f32 1.0614054, %v5752_v21  ;;  %v5754_v60 = vld [vmem:[#allocation64_spill] sm:$0xff] }
 0x20e   : > { %v2464_v26 = vmul.f32 %v2432_v61, %v1792_v33  ;;  %3355 = vmatprep.mubr.msk.f32.mxu1 %vm2717_vm7, %v2687_v7  ;;  %v2403_v58 = vmul.f32 %v5751_v5, %v2243_v40  ;;  %v2084_v20 = vadd.f32 1.4214138, %v2052_v1  ;;  %v1795_v14 = vsel %vm1763_vm3, 1.0, %v5717_v37  ;;  %v2604_v33 = vpop.permute.xlu1 %2603 }
 0x20f   : > { %vm1762_vm4 = vcmp.ge.f32.partialorder %v5753_v12, 0.0  ;;  %v2210_v2 = vadd.f32 0.2548296, %v2178_v63  ;;  %v2149_v28 = vadd.f32 -0.28449672, %v2117_v54  ;;  %v2529_v51 = vmul.f32 %v2497_v45, %v1697_v9  ;;  %v5755_v54 = vld [vmem:[#allocation49_spill] sm:$0xff] }
 0x210   : > { %v2496_v18 = vadd.f32 1.0, %v2464_v26  ;;  %v2435_v27 = vsub.f32 1.0, %v2403_v58  ;;  %v2116_v44 = vmul.f32 %v5747_v29, %v2084_v20  ;;  %v2023_v30 = vadd.f32 -1.4531521, %v1991_v22  ;;  %v5756_v22 = vld [vmem:[#allocation37_spill] sm:$0xff] }
 0x211   : > { %v2242_v7 = vmul.f32 %v5740_v41, %v2210_v2  ;;  %v2181_v25 = vmul.f32 %v5744_v3, %v2149_v28  ;;  %v1990_v61 = vmul.f32 1.0614054, %v5754_v60  ;;  %v2689_v63 = vmul.f32 %v2606_v16, %v2529_v51  ;;  %v5758_v51 = vld [vmem:[#allocation55_spill] sm:$0xff] }
 0x212   : > { %v2528_v38 = vmul.f32 %v2496_v18, %v1696_v4  ;;  %v2467_v40 = vmul.f32 %v2435_v27, %v1795_v14  ;;  %v2148_v1 = vadd.f32 -0.28449672, %v2116_v44  ;;  %v2055_v49 = vmul.f32 %v5752_v21, %v2023_v30  ;;  %v5757_v14 = vld [vmem:[#allocation31_spill] sm:$0xff] }
 0x213   : > { %v2402_v26 = vmul.f32 %v5755_v54, %v2242_v7  ;;  %v2213_v5 = vadd.f32 0.2548296, %v2181_v25  ;;  %v2022_v58 = vadd.f32 -1.4531521, %v1990_v61  ;;  %vm1765_vm5 = vcmp.ge.f32.partialorder %v5756_v22, 0.0  ;;  %v5759_v7 = vld [vmem:[#allocation41_spill] sm:$0xff]  ;;  %v2610_v25 = vpop.permute.xlu0 %2609 }
 0x214   : > { %v2688_v20 = vmul.f32 %v2604_v33, %v2528_v38  ;;  %v2180_v9 = vmul.f32 %v5747_v29, %v2148_v1  ;;  %v2087_v41 = vadd.f32 1.4214138, %v2055_v49  ;;  %v2499_v45 = vadd.f32 1.0, %v2467_v40  ;;  %v5760_v40 = vld [vmem:[#allocation68_spill] sm:$0xff] }
 0x215   : > { %v2434_v2 = vsub.f32 1.0, %v2402_v26  ;;  %v2245_v28 = vmul.f32 %v5744_v3, %v2213_v5  ;;  %v2054_v4 = vmul.f32 %v5754_v60, %v2022_v58  ;;  %v1698_v16 = vmul.f32 0.5, %v5757_v14  ;;  %v2608_v5 = vpop.permute.xlu1 %2607 }
 0x216   : > { %3356 = vmatmul.mubr.msk.f32.gmra.mrb[10].mxu1 %vm2717_vm7, %v2688_v20  ;;  %v1794_v18 = vsel %vm1762_vm4, 1.0, %v5717_v37  ;;  %v2212_v27 = vadd.f32 0.2548296, %v2180_v9  ;;  %v2119_v44 = vmul.f32 %v5752_v21, %v2087_v41  ;;  %vm1764_vm6 = vcmp.ge.f32.partialorder %v5759_v7, 0.0  ;;  %v5761_v20 = vld [vmem:[#allocation59_spill] sm:$0xff] }
 0x217   : > { %v2466_v30 = vmul.f32 %v2434_v2, %v1794_v18  ;;  %3358 = vmatprep.mubr.msk.f32.mxu1 %vm2717_vm7, %v2689_v63  ;;  %v2405_v33 = vmul.f32 %v5758_v51, %v2245_v28  ;;  %v2086_v3 = vadd.f32 1.4214138, %v2054_v4  ;;  %v1797_v61 = vsel %vm1765_vm5, 1.0, %v5717_v37  ;;  %v5763_v51 = vld [vmem:[#allocation46_spill] sm:$0xff] }
 0x218   : > { %v2244_v38 = vmul.f32 %v5747_v29, %v2212_v27  ;;  %v2151_v12 = vadd.f32 -0.28449672, %v2119_v44  ;;  %v1993_v1 = vmul.f32 1.0614054, %v5760_v40  ;;  %v2531_v49 = vmul.f32 %v2499_v45, %v1699_v57  ;;  %v5762_v45 = vld [vmem:[#allocation74_spill] sm:$0xff] }
 0x219   : > { %v2498_v54 = vadd.f32 1.0, %v2466_v30  ;;  %v2437_v26 = vsub.f32 1.0, %v2405_v33  ;;  %v2118_v63 = vmul.f32 %v5754_v60, %v2086_v3  ;;  %v1796_v58 = vsel %vm1764_vm6, 1.0, %v5717_v37 }
 0x21a   : > { %v2404_v9 = vmul.f32 %v5761_v20, %v2244_v38  ;;  %v2183_v41 = vmul.f32 %v5752_v21, %v2151_v12  ;;  %v2025_v2 = vadd.f32 -1.4531521, %v1993_v1  ;;  %v2691_v22 = vmul.f32 %v2610_v25, %v2531_v49  ;;  %v5765_v12 = vld [vmem:[#allocation38_spill] sm:$0xff] }
 0x21b   : > { %v2530_v28 = vmul.f32 %v2498_v54, %v1698_v16  ;;  %v2469_v4 = vmul.f32 %v2437_v26, %v1797_v61  ;;  %v2150_v29 = vadd.f32 -0.28449672, %v2118_v63  ;;  %v1992_v27 = vmul.f32 1.0614054, %v5762_v45  ;;  %v5764_v16 = vld [vmem:[#allocation34_spill] sm:$0xff]  ;;  %v2614_v26 = vpop.permute.xlu0 %2613 }
 0x21c   : > { %v2436_v14 = vsub.f32 1.0, %v2404_v9  ;;  %v2215_v18 = vadd.f32 0.2548296, %v2183_v41  ;;  %v2057_v57 = vmul.f32 %v5760_v40, %v2025_v2  ;;  %vm1767_vm8 = vcmp.ge.f32.partialorder %v5763_v51, 0.0  ;;  %v2612_v41 = vpop.permute.xlu1 %2611 }
 0x21d   : > { %v2690_v44 = vmul.f32 %v2608_v5, %v2530_v28  ;;  %v2501_v30 = vadd.f32 1.0, %v2469_v4  ;;  %v2182_v33 = vmul.f32 %v5754_v60, %v2150_v29  ;;  %v2024_v25 = vadd.f32 -1.4531521, %v1992_v27  ;;  %v5766_v5 = vld [vmem:[#allocation63_spill] sm:$0xff]  ;;  %v5767_v27 = vld [vmem:[#allocation50_spill] sm:$0xff] }
 0x21e   : > { %v2468_v7 = vmul.f32 %v2436_v14, %v1796_v58  ;;  %v2247_v3 = vmul.f32 %v5752_v21, %v2215_v18  ;;  %v2089_v38 = vadd.f32 1.4214138, %v2057_v57  ;;  %v1701_v61 = vmul.f32 0.5, %v5764_v16 }
 0x21f   : > { %3359 = vmatmul.mubr.msk.f32.gmra.mrb[12].mxu1 %vm2717_vm7, %v2690_v44  ;;  %v1700_v1 = vmul.f32 0.5, %v5765_v12  ;;  %v2214_v49 = vadd.f32 0.2548296, %v2182_v33  ;;  %v1995_v54 = vmul.f32 1.0614054, %v4910_v48  ;;  %v2056_v21 = vmul.f32 %v5762_v45, %v2024_v25  ;;  %v5768_v44 = vld [vmem:[#allocation65_spill] sm:$0xff] }
 0x220   : > { %v2500_v63 = vadd.f32 1.0, %v2468_v7  ;;  %3361 = vmatprep.mubr.msk.f32.mxu1 %vm2717_vm7, %v2691_v22  ;;  %v2407_v20 = vmul.f32 %v5766_v5, %v2247_v3  ;;  %v2121_v58 = vmul.f32 %v5760_v40, %v2089_v38  ;;  %v2533_v9 = vmul.f32 %v2501_v30, %v1701_v61 }
 0x221   : > { %v1799_v2 = vsel %vm1767_vm8, 1.0, %v5717_v37  ;;  %v2246_v28 = vmul.f32 %v5754_v60, %v2214_v49  ;;  %v2027_v4 = vadd.f32 -1.4531521, %v1995_v54  ;;  %v2088_v57 = vadd.f32 1.4214138, %v2056_v21  ;;  %v5769_v60 = vld [vmem:[#allocation53_spill] sm:$0xff] }
 0x222   : > { %v2532_v29 = vmul.f32 %v2500_v63, %v1700_v1  ;;  %v2439_v14 = vsub.f32 1.0, %v2407_v20  ;;  %v2153_v18 = vadd.f32 -0.28449672, %v2121_v58  ;;  %v2693_v22 = vmul.f32 %v2614_v26, %v2533_v9  ;;  %v5770_v26 = vld [vmem:[#allocation44_spill] sm:$0xff]  ;;  %v5771_v21 = vld [vmem:[#allocation47_spill] sm:$0xff] }
 0x223   : > { %vm1766_vm9 = vcmp.ge.f32.partialorder %v5767_v27, 0.0  ;;  %v2406_v33 = vmul.f32 %v5768_v44, %v2246_v28  ;;  %v2059_v7 = vmul.f32 %v4910_v48, %v2027_v4  ;;  %v2120_v51 = vmul.f32 %v5762_v45, %v2088_v57  ;;  %v2618_v4 = vpop.permute.xlu0 %2617  ;;  %v5772_v44 = vld [vmem:[#allocation71_spill] sm:$0xff] }
 0x224   : > { %v2692_v30 = vmul.f32 %v2612_v41, %v2532_v29  ;;  %v2471_v3 = vmul.f32 %v2439_v14, %v1799_v2  ;;  %v2185_v38 = vmul.f32 %v5760_v40, %v2153_v18  ;;  %vm1769_vm10 = vcmp.ge.f32.partialorder %v5769_v60, 0.0 }
 0x225   : > { %v2438_v25 = vsub.f32 1.0, %v2406_v33  ;;  %v2091_v16 = vadd.f32 1.4214138, %v2059_v7  ;;  %v1994_v61 = vmul.f32 1.0614054, %v4935_v42  ;;  %v1798_v1 = vsel %vm1766_vm9, 1.0, %v5717_v37 }
 0x226   : > { %3362 = vmatmul.mubr.msk.f32.gmra.mrb[14].mxu1 %vm2717_vm7, %v2692_v30  ;;  %v2503_v12 = vadd.f32 1.0, %v2471_v3  ;;  %v2217_v49 = vadd.f32 0.2548296, %v2185_v38  ;;  %v2152_v54 = vadd.f32 -0.28449672, %v2120_v51  ;;  %v1703_v63 = vmul.f32 0.5, %v5770_v26 }
 0x227   : > { %v2470_v5 = vmul.f32 %v2438_v25, %v1798_v1  ;;  %3364 = vmatprep.mubr.msk.f32.mxu1 %vm2717_vm7, %v2693_v22  ;;  %v2123_v20 = vmul.f32 %v4910_v48, %v2091_v16  ;;  %v2026_v58 = vadd.f32 -1.4531521, %v1994_v61  ;;  %v1702_v9 = vmul.f32 0.5, %v5771_v21  ;;  %v2616_v22 = vpop.permute.xlu1 %2615  ;;  %v5773_v7 = vld [vmem:[#allocation56_spill] sm:$0xff]  ;;  %v5774_v26 = vld [vmem:[#allocation51_spill] sm:$0xff]  ;;  %v5775_v21 = vld [vmem:[#allocation54_spill] sm:$0xff] }
 0x228   : > { %v1801_v41 = vsel %vm1769_vm10, 1.0, %v5717_v37  ;;  %v2249_v2 = vmul.f32 %v5760_v40, %v2217_v49  ;;  %v2184_v28 = vmul.f32 %v5762_v45, %v2152_v54  ;;  %v1997_v57 = vmul.f32 1.0614054, %v4951_v23 }
 0x229   : > { %v2502_v29 = vadd.f32 1.0, %v2470_v5  ;;  %v2155_v14 = vadd.f32 -0.28449672, %v2123_v20  ;;  %v2058_v18 = vmul.f32 %v4935_v42, %v2026_v58  ;;  %v2535_v27 = vmul.f32 %v2503_v12, %v1703_v63 }
 0x22a   : > { %v2409_v33 = vmul.f32 %v5772_v44, %v2249_v2  ;;  %vm1768_vm11 = vcmp.ge.f32.partialorder %v5773_v7, 0.0  ;;  %v2216_v30 = vadd.f32 0.2548296, %v2184_v28  ;;  %v2029_v51 = vadd.f32 -1.4531521, %v1997_v57  ;;  %v5778_v44 = vld [vmem:[#allocation66_spill] sm:$0xff] }
 0x22b   : > { %v2534_v3 = vmul.f32 %v2502_v29, %v1702_v9  ;;  %v2187_v38 = vmul.f32 %v4910_v48, %v2155_v14  ;;  %v2090_v40 = vadd.f32 1.4214138, %v2058_v18  ;;  %v2695_v25 = vmul.f32 %v2618_v4, %v2535_v27  ;;  %v5776_v14 = vld [vmem:[#allocation60_spill] sm:$0xff]  ;;  %v5777_v18 = vld [vmem:[#allocation77_spill] sm:$0xff] }
 0x22c   : > { %v2441_v60 = vsub.f32 1.0, %v2409_v33  ;;  %v2248_v16 = vmul.f32 %v5762_v45, %v2216_v30  ;;  %v1996_v61 = vmul.f32 1.0614054, %v4974_v46  ;;  %v2061_v54 = vmul.f32 %v4951_v23, %v2029_v51  ;;  %v5779_v30 = vld [vmem:[#allocation57_spill] sm:$0xff] }
 0x22d   : > { %v2694_v1 = vmul.f32 %v2616_v22, %v2534_v3  ;;  %v2219_v49 = vadd.f32 0.2548296, %v2187_v38  ;;  %v2122_v12 = vmul.f32 %v4935_v42, %v2090_v40  ;;  %v1705_v63 = vmul.f32 0.5, %v5774_v26 }
 0x22e   : > { %v2473_v5 = vmul.f32 %v2441_v60, %v1801_v41  ;;  %v2408_v20 = vmul.f32 %v4906_v35, %v2248_v16  ;;  %v2028_v58 = vadd.f32 -1.4531521, %v1996_v61  ;;  %v1704_v9 = vmul.f32 0.5, %v5775_v21 }
 0x22f   : > { %3365 = vmatmul.mubr.msk.f32.gmra.mrb[16].mxu1 %vm2717_vm7, %v2694_v1  ;;  %v2251_v45 = vmul.f32 %v4910_v48, %v2219_v49  ;;  %v2154_v2 = vadd.f32 -0.28449672, %v2122_v12  ;;  %v2093_v28 = vadd.f32 1.4214138, %v2061_v54  ;;  %v1800_v4 = vsel %vm1768_vm11, 1.0, %v5717_v37  ;;  %v2620_v12 = vpop.permute.xlu1 %2619 }
 0x230   : > { %v2440_v29 = vsub.f32 1.0, %v2408_v20  ;;  %3367 = vmatprep.mubr.msk.f32.mxu1 %vm2717_vm7, %v2695_v25  ;;  %vm1771_vm12 = vcmp.ge.f32.partialorder %v5776_v14, 0.0  ;;  %v2060_v35 = vmul.f32 %v4974_v46, %v2028_v58  ;;  %v2505_v41 = vadd.f32 1.0, %v2473_v5  ;;  %v2622_v25 = vpop.permute.xlu0 %2621 }
 0x231   : > { %v2411_v57 = vmul.f32 %v5777_v18, %v2251_v45  ;;  %v2186_v27 = vmul.f32 %v4935_v42, %v2154_v2  ;;  %v2125_v48 = vmul.f32 %v4951_v23, %v2093_v28  ;;  %vm1770_vm13 = vcmp.ge.f32.partialorder %v5778_v44, 0.0  ;;  %v5780_v28 = vld [vmem:[#allocation79_spill] sm:$0xff] }
 0x232   : > { %v2472_v22 = vmul.f32 %v2440_v29, %v1800_v4  ;;  %v2092_v33 = vadd.f32 1.4214138, %v2060_v35  ;;  %v1999_v7 = vmul.f32 1.0614054, %v5023_v39  ;;  %v1707_v3 = vmul.f32 0.5, %v5779_v30 }
 0x233   : > { %v2443_v38 = vsub.f32 1.0, %v2411_v57  ;;  %v2218_v40 = vadd.f32 0.2548296, %v2186_v27  ;;  %v2157_v51 = vadd.f32 -0.28449672, %v2125_v48  ;;  %v1803_v16 = vsel %vm1771_vm12, 1.0, %v5717_v37 }
 0x234   : > { %v2504_v60 = vadd.f32 1.0, %v2472_v22  ;;  %v2124_v61 = vmul.f32 %v4974_v46, %v2092_v33  ;;  %v2031_v1 = vadd.f32 -1.4531521, %v1999_v7  ;;  %v2537_v49 = vmul.f32 %v2505_v41, %v1705_v63  ;;  %v5781_v63 = vld [vmem:[#allocation69_spill] sm:$0xff]  ;;  %v5783_v7 = vld [vmem:[#allocation62_spill] sm:$0xff] }
 0x235   : > { %v1802_v54 = vsel %vm1770_vm13, 1.0, %v5717_v37  ;;  %v2250_v26 = vmul.f32 %v4935_v42, %v2218_v40  ;;  %v2189_v5 = vmul.f32 %v4951_v23, %v2157_v51  ;;  %v2475_v58 = vmul.f32 %v2443_v38, %v1803_v16 }
 0x236   : > { %v2536_v20 = vmul.f32 %v2504_v60, %v1704_v9  ;;  %v2156_v21 = vadd.f32 -0.28449672, %v2124_v61  ;;  %v2063_v45 = vmul.f32 %v5023_v39, %v2031_v1  ;;  %v2697_v2 = vmul.f32 %v2622_v25, %v2537_v49  ;;  %v5782_v9 = vld [vmem:[#allocation72_spill] sm:$0xff]  ;;  %v2626_v61 = vpop.permute.xlu0 %2625 }
 0x237   : > { %v2410_v4 = vmul.f32 %v5780_v28, %v2250_v26  ;;  %v2221_v29 = vadd.f32 0.2548296, %v2189_v5  ;;  %v1998_v14 = vmul.f32 1.0614054, %v5034_v32  ;;  %vm1773_vm14 = vcmp.ge.f32.partialorder %v5781_v63, 0.0 }
 0x238   : > { %v2696_v35 = vmul.f32 %v2620_v12, %v2536_v20  ;;  %v2188_v41 = vmul.f32 %v4974_v46, %v2156_v21  ;;  %v2095_v18 = vadd.f32 1.4214138, %v2063_v45  ;;  %vm1772_vm15 = vcmp.ge.f32.partialorder %v5782_v9, 0.0  ;;  %v5784_v45 = vld [vmem:[#allocation75_spill] sm:$0xff] }
 0x239   : > { %v2442_v42 = vsub.f32 1.0, %v2410_v4  ;;  %v2253_v57 = vmul.f32 %v4951_v23, %v2221_v29  ;;  %v2030_v27 = vadd.f32 -1.4531521, %v1998_v14  ;;  %v2507_v48 = vadd.f32 1.0, %v2475_v58 }
 0x23a   : > { %3368 = vmatmul.mubr.msk.f32.gmra.mrb[18].mxu1 %vm2717_vm7, %v2696_v35  ;;  %v2220_v22 = vadd.f32 0.2548296, %v2188_v41  ;;  %v2127_v44 = vmul.f32 %v5023_v39, %v2095_v18  ;;  %v2001_v33 = vmul.f32 1.0614054, %v5067_v11  ;;  %v1706_v30 = vmul.f32 0.5, %v5783_v7  ;;  %v2630_v7 = vpop.permute.xlu0 %2629 }
 0x23b   : > { %v2474_v38 = vmul.f32 %v2442_v42, %v1802_v54  ;;  %3370 = vmatprep.mubr.msk.f32.mxu1 %vm2717_vm7, %v2697_v2  ;;  %v2413_v40 = vmul.f32 %v4961_v17, %v2253_v57  ;;  %v2062_v23 = vmul.f32 %v5034_v32, %v2030_v27  ;;  %v1805_v51 = vsel %vm1773_vm14, 1.0, %v5717_v37  ;;  %v2624_v17 = vpop.permute.xlu1 %2623  ;;  %v5786_v27 = vld [vmem:[#allocation70_spill] sm:$0xff] }
 0x23c   : > { %v2252_v25 = vmul.f32 %v4974_v46, %v2220_v22  ;;  %v2159_v60 = vadd.f32 -0.28449672, %v2127_v44  ;;  %v2033_v16 = vadd.f32 -1.4531521, %v2001_v33  ;;  %v1804_v12 = vsel %vm1772_vm15, 1.0, %v5717_v37 }
 0x23d   : > { %v2506_v1 = vadd.f32 1.0, %v2474_v38  ;;  %v2445_v49 = vsub.f32 1.0, %v2413_v40  ;;  %v2094_v54 = vadd.f32 1.4214138, %v2062_v23  ;;  %v2539_v26 = vmul.f32 %v2507_v48, %v1707_v3 }
 0x23e   : > { %v2412_v5 = vmul.f32 %v5018_v36, %v2252_v25  ;;  %v2191_v20 = vmul.f32 %v5023_v39, %v2159_v60  ;;  %v2065_v58 = vmul.f32 %v5067_v11, %v2033_v16  ;;  %vm1775_vm0 = vcmp.ge.f32.partialorder %v5784_v45, 0.0  ;;  %v5785_v36 = vld [vmem:[#allocation67_spill] sm:$0xff]  ;;  %v5787_v25 = vld [vmem:[#allocation78_spill] sm:$0xff] }
 0x23f   : > { %v2538_v21 = vmul.f32 %v2506_v1, %v1706_v30  ;;  %v2477_v46 = vmul.f32 %v2445_v49, %v1805_v51  ;;  %v2126_v2 = vmul.f32 %v5034_v32, %v2094_v54  ;;  %v2699_v28 = vmul.f32 %v2626_v61, %v2539_v26  ;;  %v2628_v51 = vpop.permute.xlu1 %2627 }
 0x240   : > { %v2444_v4 = vsub.f32 1.0, %v2412_v5  ;;  %v2223_v29 = vadd.f32 0.2548296, %v2191_v20  ;;  %v2097_v14 = vadd.f32 1.4214138, %v2065_v58  ;;  %v1709_v18 = vmul.f32 0.5, %v5785_v36 }
 0x241   : > { %v2698_v35 = vmul.f32 %v2624_v17, %v2538_v21  ;;  %v2509_v63 = vadd.f32 1.0, %v2477_v46  ;;  %v2158_v3 = vadd.f32 -0.28449672, %v2126_v2  ;;  %v2000_v41 = vmul.f32 1.0614054, %v5092_v47 }
 0x242   : > { %v2476_v42 = vmul.f32 %v2444_v4, %v1804_v12  ;;  %v2255_v57 = vmul.f32 %v5023_v39, %v2223_v29  ;;  %v2129_v9 = vmul.f32 %v5067_v11, %v2097_v14  ;;  %v1708_v48 = vmul.f32 0.5, %v5786_v27 }
 0x243   : > { %3371 = vmatmul.mubr.msk.f32.gmra.mrb[20].mxu1 %vm2717_vm7, %v2698_v35  ;;  %v1807_v22 = vsel %vm1775_vm0, 1.0, %v5717_v37  ;;  %v2190_v44 = vmul.f32 %v5034_v32, %v2158_v3  ;;  %v2032_v33 = vadd.f32 -1.4531521, %v2000_v41  ;;  %v2003_v40 = vmul.f32 1.0614054, %v5109_v43 }
 0x244   : > { %v2508_v30 = vadd.f32 1.0, %v2476_v42  ;;  %3373 = vmatprep.mubr.msk.f32.mxu1 %vm2717_vm7, %v2699_v28  ;;  %v2415_v38 = vmul.f32 %v5028_v10, %v2255_v57  ;;  %v2161_v39 = vadd.f32 -0.28449672, %v2129_v9  ;;  %v2541_v23 = vmul.f32 %v2509_v63, %v1709_v18  ;;  %v5789_v18 = vld [vmem:[#allocation73_spill] sm:$0xff]  ;;  %v5790_v57 = vld [vmem:[#allocation76_spill] sm:$0xff] }
 0x245   : > { %vm1774_vm2 = vcmp.ge.f32.partialorder %v5787_v25, 0.0  ;;  %v2222_v60 = vadd.f32 0.2548296, %v2190_v44  ;;  %v2064_v16 = vmul.f32 %v5092_v47, %v2032_v33  ;;  %v2035_v12 = vadd.f32 -1.4531521, %v2003_v40 }
 0x246   : > { %v2540_v61 = vmul.f32 %v2508_v30, %v1708_v48  ;;  %v2447_v1 = vsub.f32 1.0, %v2415_v38  ;;  %v2193_v49 = vmul.f32 %v5067_v11, %v2161_v39  ;;  %v2701_v54 = vmul.f32 %v2630_v7, %v2541_v23  ;;  %v2632_v39 = vpop.permute.xlu1 %2631 }
 0x247   : > { %v2254_v26 = vmul.f32 %v5034_v32, %v2222_v60  ;;  %v2096_v17 = vadd.f32 1.4214138, %v2064_v16  ;;  %v2002_v10 = vmul.f32 1.0614054, %v5135_v8  ;;  %v2067_v21 = vmul.f32 %v5109_v43, %v2035_v12 }
 0x248   : > { %v2700_v5 = vmul.f32 %v2628_v51, %v2540_v61  ;;  %v2479_v20 = vmul.f32 %v2447_v1, %v1807_v22  ;;  %v2225_v58 = vadd.f32 0.2548296, %v2193_v49  ;;  %3521 = vpow2.f32 %v5074_v0  ;;  %v2634_v22 = vpop.permute.xlu0 %2633 }
 0x249   : > { %v2414_v46 = vmul.f32 %v5055_v15, %v2254_v26  ;;  %v2128_v45 = vmul.f32 %v5092_v47, %v2096_v17  ;;  %v2034_v2 = vadd.f32 -1.4531521, %v2002_v10  ;;  %3523 = vpow2.f32 %v5097_v50 }
 0x24a   : > { %v5788_v32 = vsub.f32 0.0, %v5102_v56  ;;  %3374 = vmatmul.mubr.msk.f32.gmra.mrb[22].mxu1 %vm2717_vm7, %v2700_v5  ;;  %v2257_v4 = vmul.f32 %v5067_v11, %v2225_v58  ;;  %v2099_v29 = vadd.f32 1.4214138, %v2067_v21  ;;  %v1806_v0 = vsel %vm1774_vm2, 1.0, %v5717_v37 }
 0x24b   : > { %v2446_v14 = vsub.f32 1.0, %v2414_v46  ;;  %3376 = vmatprep.mubr.msk.f32.mxu1 %vm2717_vm7, %v2701_v54  ;;  %v2160_v15 = vadd.f32 -0.28449672, %v2128_v45  ;;  %v2066_v35 = vmul.f32 %v5135_v8, %v2034_v2  ;;  %v2511_v50 = vadd.f32 1.0, %v2479_v20 }
 0x24c   : > { %v2324_v28 = vmul.f32 %v5788_v32, %v5102_v56  ;;  %vm1777_vm3 = vcmp.ge.f32.partialorder %v4956_v24, 0.0  ;;  %v2417_v56 = vmul.f32 %v5077_v62, %v2257_v4  ;;  %v2131_v63 = vmul.f32 %v5109_v43, %v2099_v29  ;;  %v2638_v29 = vpop.permute.xlu0 %2637 }
 0x24d   : > { %v2478_v3 = vmul.f32 %v2446_v14, %v1806_v0  ;;  %v2192_v11 = vmul.f32 %v5092_v47, %v2160_v15  ;;  %v2098_v41 = vadd.f32 1.4214138, %v2066_v35  ;;  %v2004_v36 = vmul.f32 1.0614054, %v5168_v6  ;;  %v2636_v35 = vpop.permute.xlu1 %2635 }
 0x24e   : > { %v1711_v42 = vmul.f32 0.5, %v5789_v18  ;;  %v1710_v9 = vmul.f32 0.5, %v5790_v57  ;;  %v2449_v27 = vsub.f32 1.0, %v2417_v56  ;;  %v2163_v48 = vadd.f32 -0.28449672, %v2131_v63 }
 0x24f   : > { %v2510_v44 = vadd.f32 1.0, %v2478_v3  ;;  %v2224_v33 = vadd.f32 0.2548296, %v2192_v11  ;;  %v2130_v7 = vmul.f32 %v5135_v8, %v2098_v41  ;;  %v2036_v62 = vadd.f32 -1.4531521, %v2004_v36 }
 0x250   : > { %v2387_v30 = vmul.f32 1.442695, %v2324_v28  ;;  %v2543_v38 = vmul.f32 %v2511_v50, %v1711_v42  ;;  %v1809_v40 = vsel %vm1777_vm3, 1.0, %v5717_v37  ;;  %v2195_v23 = vmul.f32 %v5109_v43, %v2163_v48  ;;  %v2642_v42 = vpop.permute.xlu0 %2641 }
 0x251   : > { %v2542_v51 = vmul.f32 %v2510_v44, %v1710_v9  ;;  %v2256_v25 = vmul.f32 %v5092_v47, %v2224_v33  ;;  %v2162_v60 = vadd.f32 -0.28449672, %v2130_v7  ;;  %v2068_v16 = vmul.f32 %v5168_v6, %v2036_v62  ;;  %v2640_v44 = vpop.permute.xlu1 %2639 }
 0x252   : > { %v2703_v61 = vmul.f32 %v2634_v22, %v2543_v38  ;;  %v2481_v1 = vmul.f32 %v2449_v27, %v1809_v40  ;;  %vm1776_vm4 = vcmp.ge.f32.partialorder %v4977_v19, 0.0  ;;  %v2227_v49 = vadd.f32 0.2548296, %v2195_v23  ;;  %v3522_v12 = vpop.eup %3521  ;;  %v5791_v27 = vld [vmem:[#allocation81_spill] sm:$0xff]  ;;  %v5792_v38 = vld [vmem:[#allocation80_spill] sm:$0xff] }
 0x253   : > { %v2702_v54 = vmul.f32 %v2632_v39, %v2542_v51  ;;  %v2416_v26 = vmul.f32 %v5095_v55, %v2256_v25  ;;  %v2194_v24 = vmul.f32 %v5135_v8, %v2162_v60  ;;  %v2100_v17 = vadd.f32 1.4214138, %v2068_v16  ;;  %v3524_v10 = vpop.eup %3523  ;;  %v5440_v25 = vld [vmem:[%s5554_s6] ss:$0 sm:$0xff] }
 0x254   : > { %3525 = vpow2.f32 %v2387_v30  ;;  %v2259_v5 = vmul.f32 %v5109_v43, %v2227_v49  ;;  %vm1779_vm5 = vcmp.ge.f32.partialorder %v5011_v53, 0.0  ;;  %v2513_v21 = vadd.f32 1.0, %v2481_v1 }
 0x255   : > { %3377 = vmatmul.mubr.msk.f32.gmra.mrb[24].mxu1 %vm2717_vm7, %v2702_v54  ;;  %v2448_v47 = vsub.f32 1.0, %v2416_v26  ;;  %v2226_v20 = vadd.f32 0.2548296, %v2194_v24  ;;  %v2132_v58 = vmul.f32 %v5168_v6, %v2100_v17  ;;  %v1808_v55 = vsel %vm1776_vm4, 1.0, %v5717_v37  ;;  %v2644_v40 = vpop.permute.xlu1 %2643 }
 0x256   : > { %3379 = vmatprep.mubr.msk.f32.mxu1 %vm2717_vm7, %v2703_v61  ;;  %v2419_v46 = vmul.f32 %v3522_v12, %v2259_v5  ;;  %v1713_v32 = vmul.f32 0.5, %v4932_v52  ;;  %v1712_v28 = vmul.f32 0.5, %v4964_v34  ;;  %v1811_v53 = vsel %vm1779_vm5, 1.0, %v5717_v37 }
 0x257   : > { %v2480_v45 = vmul.f32 %v2448_v47, %v1808_v55  ;;  %v2258_v2 = vmul.f32 %v5135_v8, %v2226_v20  ;;  %v2164_v43 = vadd.f32 -0.28449672, %v2132_v58  ;;  %vm1778_vm6 = vcmp.ge.f32.partialorder %v5031_v31, 0.0 }
 0x258   : > { %v2451_v4 = vsub.f32 1.0, %v2419_v46  ;;  %v2545_v15 = vmul.f32 %v2513_v21, %v1713_v32  ;;  %v1810_v34 = vsel %vm1778_vm6, 1.0, %v5717_v37  ;;  %v1715_v31 = vmul.f32 0.5, %v4989_v13 }
 0x259   : > { %v2512_v0 = vadd.f32 1.0, %v2480_v45  ;;  %v2418_v19 = vmul.f32 %v3524_v10, %v2258_v2  ;;  %v2196_v14 = vmul.f32 %v5168_v6, %v2164_v43  ;;  %v1714_v57 = vmul.f32 0.5, %v5014_v59 }
 0x25a   : > { %v2483_v50 = vmul.f32 %v2451_v4, %v1811_v53  ;;  %v2705_v3 = vmul.f32 %v2638_v29, %v2545_v15  ;;  %vm1780_vm8 = vcmp.ge.f32.partialorder %v5791_v27, 0.0  ;;  %v1716_v59 = vmul.f32 0.5, %v5792_v38 }
 0x25b   : > { %v2544_v56 = vmul.f32 %v2512_v0, %v1712_v28  ;;  %v2450_v8 = vsub.f32 1.0, %v2418_v19  ;;  %v2228_v63 = vadd.f32 0.2548296, %v2196_v14  ;;  %v1812_v62 = vsel %vm1780_vm8, 1.0, %v5717_v37 }
 0x25c   : > { %v2515_v52 = vadd.f32 1.0, %v2483_v50 }
 0x25d   : > { %v2704_v11 = vmul.f32 %v2636_v35, %v2544_v56  ;;  %v2482_v41 = vmul.f32 %v2450_v8, %v1810_v34  ;;  %v2260_v36 = vmul.f32 %v5168_v6, %v2228_v63 }
 0x25e   : > { %v3526_v18 = vpop.eup %3525  ;;  %v2547_v22 = vmul.f32 %v2515_v52, %v1715_v31 }
 0x25f   : > { %3380 = vmatmul.mubr.msk.f32.gmra.mrb[26].mxu1 %vm2717_vm7, %v2704_v11  ;;  %v2514_v9 = vadd.f32 1.0, %v2482_v41  ;;  %v2420_v48 = vmul.f32 %v3526_v18, %v2260_v36 }
 0x260   : > { %3382 = vmatprep.mubr.msk.f32.mxu1 %vm2717_vm7, %v2705_v3  ;;  %v2707_v6 = vmul.f32 %v2642_v42, %v2547_v22 }
 0x261   : > { %v2546_v33 = vmul.f32 %v2514_v9, %v1714_v57  ;;  %v2452_v7 = vsub.f32 1.0, %v2420_v48 }
 0x263   : > { %v2706_v13 = vmul.f32 %v2640_v44, %v2546_v33  ;;  %v2484_v30 = vmul.f32 %v2452_v7, %v1812_v62 }
 0x265   : > { %3383 = vmatmul.mubr.msk.f32.gmra.mrb[28].mxu1 %vm2717_vm7, %v2706_v13  ;;  %v2516_v39 = vadd.f32 1.0, %v2484_v30 }
 0x266   : > { %3385 = vmatprep.mubr.msk.f32.mxu1 %vm2717_vm7, %v2707_v6 }
 0x267   : > { %v2548_v23 = vmul.f32 %v2516_v39, %v1716_v59 }
 0x269   : > { %v2708_v51 = vmul.f32 %v2644_v40, %v2548_v23 }
 0x26b   : > { %3386 = vmatmul.mubr.msk.f32.gmra.mrb[30].mxu1 %vm2717_vm7, %v2708_v51 }
 0x2b6   : > { %v3342_v37 = vpop.f32.mrb[0].mxu1 }
 0x2b7   : > { %v2886_v60 = vadd.f32 %v3342_v37, %v5440_v25  ;;  %v2880_v16 = vpop.f32.mrb[1].mxu1 }
 0x2b8   : > { %v2881_v61 = vadd.f32 %v5440_v25, %v2880_v16 }
 0x2b9   : > { %3040 = vst.msk [vmem:[%s5447_s21 + $0x8] sm:$0xff] %vm319_vm1, %v2886_v60 }
 0x2ba   : > { %3039 = vst.msk [vmem:[%s5447_s21] sm:$0xff] %vm319_vm1, %v2881_v61 }
 0x2c4   : > { %v3345_v1 = vpop.f32.mrb[2].mxu1 }
 0x2c5   : > { %v2896_v49 = vadd.f32 %v3345_v1, %v5440_v25  ;;  %v2890_v12 = vpop.f32.mrb[3].mxu1 }
 0x2c6   : > { %v2891_v54 = vadd.f32 %v5440_v25, %v2890_v12 }
 0x2c7   : > { %3042 = vst.msk [vmem:[%s5447_s21 + $0x18] sm:$0xff] %vm319_vm1, %v2896_v49 }
 0x2c8   : > { %3041 = vst.msk [vmem:[%s5447_s21 + $0x10] sm:$0xff] %vm319_vm1, %v2891_v54 }
 0x2cd   : > { %v3348_v26 = vpop.f32.mrb[4].mxu1 }
 0x2ce   : > { %v2906_v24 = vadd.f32 %v3348_v26, %v5440_v25  ;;  %v2900_v17 = vpop.f32.mrb[5].mxu1 }
 0x2cf   : > { %v2901_v10 = vadd.f32 %v5440_v25, %v2900_v17 }
 0x2d0   : > { %3044 = vst.msk [vmem:[%s5447_s21 + $0x28] sm:$0xff] %vm319_vm1, %v2906_v24 }
 0x2d1   : > { %3043 = vst.msk [vmem:[%s5447_s21 + $0x20] sm:$0xff] %vm319_vm1, %v2901_v10 }
 0x2d6   : > { %v3351_v5 = vpop.f32.mrb[6].mxu1 }
 0x2d7   : > { %v2916_v47 = vadd.f32 %v3351_v5, %v5440_v25  ;;  %v2910_v20 = vpop.f32.mrb[7].mxu1 }
 0x2d8   : > { %v2911_v58 = vadd.f32 %v5440_v25, %v2910_v20 }
 0x2d9   : > { %3046 = vst.msk [vmem:[%s5447_s21 + $0x38] sm:$0xff] %vm319_vm1, %v2916_v47 }
 0x2da   : > { %3045 = vst.msk [vmem:[%s5447_s21 + $0x30] sm:$0xff] %vm319_vm1, %v2911_v58 }
 0x2e0   : > { %v3354_v21 = vpop.f32.mrb[8].mxu1 }
 0x2e1   : > { %v2926_v55 = vadd.f32 %v3354_v21, %v5440_v25  ;;  %v2920_v46 = vpop.f32.mrb[9].mxu1 }
 0x2e2   : > { %v2921_v45 = vadd.f32 %v5440_v25, %v2920_v46 }
 0x2e3   : > { %3048 = vst.msk [vmem:[%s5447_s21 + $0x48] sm:$0xff] %vm319_vm1, %v2926_v55 }
 0x2e4   : > { %3047 = vst.msk [vmem:[%s5447_s21 + $0x40] sm:$0xff] %vm319_vm1, %v2921_v45 }
 0x2e9   : > { %v3357_v2 = vpop.f32.mrb[10].mxu1 }
 0x2ea   : > { %v2936_v43 = vadd.f32 %v3357_v2, %v5440_v25  ;;  %v2930_v32 = vpop.f32.mrb[11].mxu1 }
 0x2eb   : > { %v2931_v28 = vadd.f32 %v5440_v25, %v2930_v32 }
 0x2ec   : > { %3050 = vst.msk [vmem:[%s5447_s21 + $0x58] sm:$0xff] %vm319_vm1, %v2936_v43 }
 0x2ed   : > { %3049 = vst.msk [vmem:[%s5447_s21 + $0x50] sm:$0xff] %vm319_vm1, %v2931_v28 }
 0x2f2   : > { %v3360_v53 = vpop.f32.mrb[12].mxu1 }
 0x2f3   : > { %v2946_v4 = vadd.f32 %v3360_v53, %v5440_v25  ;;  %v2940_v29 = vpop.f32.mrb[13].mxu1 }
 0x2f4   : > { %v2941_v0 = vadd.f32 %v5440_v25, %v2940_v29 }
 0x2f5   : > { %3052 = vst.msk [vmem:[%s5447_s21 + $0x68] sm:$0xff] %vm319_vm1, %v2946_v4 }
 0x2f6   : > { %3051 = vst.msk [vmem:[%s5447_s21 + $0x60] sm:$0xff] %vm319_vm1, %v2941_v0 }
 0x2f9   : > { %v3363_v19 = vpop.f32.mrb[14].mxu1 }
 0x2fa   : > { %v2956_v14 = vadd.f32 %v3363_v19, %v5440_v25  ;;  %v2950_v15 = vpop.f32.mrb[15].mxu1 }
 0x2fb   : > { %v2951_v35 = vadd.f32 %v5440_v25, %v2950_v15 }
 0x2fc   : > { %3054 = vst.msk [vmem:[%s5447_s21 + $0x78] sm:$0xff] %vm319_vm1, %v2956_v14 }
 0x2fd   : > { %3053 = vst.msk [vmem:[%s5447_s21 + $0x70] sm:$0xff] %vm319_vm1, %v2951_v35 }
 0x302   : > { %v3366_v50 = vpop.f32.mrb[16].mxu1 }
 0x303   : > { %v2966_v56 = vadd.f32 %v3366_v50, %v5440_v25  ;;  %v2960_v8 = vpop.f32.mrb[17].mxu1 }
 0x304   : > { %v2961_v63 = vadd.f32 %v5440_v25, %v2960_v8 }
 0x305   : > { %3056 = vst.msk [vmem:[%s5447_s21 + $0x88] sm:$0xff] %vm319_vm1, %v2966_v56 }
 0x306   : > { %3055 = vst.msk [vmem:[%s5447_s21 + $0x80] sm:$0xff] %vm319_vm1, %v2961_v63 }
 0x30d   : > { %v3369_v3 = vpop.f32.mrb[18].mxu1 }
 0x30e   : > { %v2976_v52 = vadd.f32 %v3369_v3, %v5440_v25  ;;  %v2970_v34 = vpop.f32.mrb[19].mxu1 }
 0x30f   : > { %v2971_v11 = vadd.f32 %v5440_v25, %v2970_v34 }
 0x310   : > { %3058 = vst.msk [vmem:[%s5447_s21 + $0x98] sm:$0xff] %vm319_vm1, %v2976_v52 }
 0x311   : > { %3057 = vst.msk [vmem:[%s5447_s21 + $0x90] sm:$0xff] %vm319_vm1, %v2971_v11 }
 0x316   : > { %v3372_v41 = vpop.f32.mrb[20].mxu1 }
 0x317   : > { %v2986_v36 = vadd.f32 %v3372_v41, %v5440_v25  ;;  %v2980_v18 = vpop.f32.mrb[21].mxu1 }
 0x318   : > { %v2981_v31 = vadd.f32 %v5440_v25, %v2980_v18 }
 0x319   : > { %3060 = vst.msk [vmem:[%s5447_s21 + $0xa8] sm:$0xff] %vm319_vm1, %v2986_v36 }
 0x31a   : > { %3059 = vst.msk [vmem:[%s5447_s21 + $0xa0] sm:$0xff] %vm319_vm1, %v2981_v31 }
 0x31d   : > { %v3375_v42 = vpop.f32.mrb[22].mxu1 }
 0x31e   : > { %v2996_v57 = vadd.f32 %v3375_v42, %v5440_v25  ;;  %v2990_v9 = vpop.f32.mrb[23].mxu1 }
 0x31f   : > { %v2991_v27 = vadd.f32 %v5440_v25, %v2990_v9 }
 0x320   : > { %3062 = vst.msk [vmem:[%s5447_s21 + $0xb8] sm:$0xff] %vm319_vm1, %v2996_v57 }
 0x321   : > { %3061 = vst.msk [vmem:[%s5447_s21 + $0xb0] sm:$0xff] %vm319_vm1, %v2991_v27 }
 0x328   : > { %v3378_v48 = vpop.f32.mrb[24].mxu1 }
 0x329   : > { %v3006_v22 = vadd.f32 %v3378_v48, %v5440_v25  ;;  %v3000_v44 = vpop.f32.mrb[25].mxu1 }
 0x32a   : > { %v3001_v33 = vadd.f32 %v5440_v25, %v3000_v44 }
 0x32b   : > { %3064 = vst.msk [vmem:[%s5447_s21 + $0xc8] sm:$0xff] %vm319_vm1, %v3006_v22 }
 0x32c   : > { %3063 = vst.msk [vmem:[%s5447_s21 + $0xc0] sm:$0xff] %vm319_vm1, %v3001_v33 }
 0x332   : > { %v3381_v7 = vpop.f32.mrb[26].mxu1 }
 0x333   : > { %v3016_v6 = vadd.f32 %v3381_v7, %v5440_v25  ;;  %v3010_v62 = vpop.f32.mrb[27].mxu1 }
 0x334   : > { %v3011_v13 = vadd.f32 %v5440_v25, %v3010_v62 }
 0x335   : > { %3066 = vst.msk [vmem:[%s5447_s21 + $0xd8] sm:$0xff] %vm319_vm1, %v3016_v6 }
 0x336   : > { %3065 = vst.msk [vmem:[%s5447_s21 + $0xd0] sm:$0xff] %vm319_vm1, %v3011_v13 }
 0x338   : > { %v3384_v30 = vpop.f32.mrb[28].mxu1 }
 0x339   : > { %v3026_v38 = vadd.f32 %v3384_v30, %v5440_v25  ;;  %v3020_v59 = vpop.f32.mrb[29].mxu1 }
 0x33a   : > { %v3021_v39 = vadd.f32 %v5440_v25, %v3020_v59 }
 0x33b   : > { %3068 = vst.msk [vmem:[%s5447_s21 + $0xe8] sm:$0xff] %vm319_vm1, %v3026_v38 }
 0x33c   : > { %3067 = vst.msk [vmem:[%s5447_s21 + $0xe0] sm:$0xff] %vm319_vm1, %v3021_v39 }
 0x33e   : > { %v3387_v40 = vpop.f32.mrb[30].mxu1 }
 0x33f   : > { %v3036_v23 = vadd.f32 %v3387_v40, %v5440_v25  ;;  %v3030_v51 = vpop.f32.mrb[31].mxu1 }
 0x340   : > { %v3031_v37 = vadd.f32 %v5440_v25, %v3030_v51 }
 0x341   : > { %3070 = vst.msk [vmem:[%s5447_s21 + $0xf8] sm:$0xff] %vm319_vm1, %v3036_v23 }
 0x342   : > { %3069 = vst.msk [vmem:[%s5447_s21 + $0xf0] sm:$0xff] %vm319_vm1, %v3031_v37 }
 0x343 PF: > { %s17_s24 = sadd.s32 1, %s3554_s24  }
 0x344   : > { %p14_p4 = scmp.ge.s32.totalorder %s17_s24, 4  }
 0x346   :  { %16 = sbr.rel (!%p14_p4) target bundleno = 1 (0x1), region = 82 }

</bundles_post_ra>
